<compile_context>
chip_gen: v5e
topology: v5e:2x2
jax: 0.10.0
libtpu: 0.0.40
codegen_flags: <defaults>
</compile_context>

<pallas_src>
import functools

import jax
import jax.numpy as jnp
from jax import lax
from jax.experimental import pallas as pl
from jax.experimental.pallas import tpu as pltpu

LANE = 128  # TPU lane width: every kernel output is padded to this (lane-dense stores)


def _round_up(x, m):
    return ((x + m - 1) // m) * m


def _detect_vmem_bytes():
    # Per-generation VMEM (v5e/v6e: 128 MiB, v7x: 64 MiB per core); fall back
    # to the conservative v7x figure if the query is unavailable.
    try:
        return int(pltpu.get_tpu_info().vmem_capacity_bytes)
    except Exception:
        return 64 * 1024 * 1024


def _detect_num_tensorcores():
    # v7x has 2 TensorCores per chip -> only then is forcing >=2 grid steps
    # useful (megacore sharding); on single-TC v5e/v6e it is pure overhead.
    try:
        kind = jax.devices()[0].device_kind.lower()
    except Exception:
        return 1
    return 2 if "7" in kind else 1


_PHYS_VMEM = _detect_vmem_bytes()
_VMEM_LIMIT = int(min(_PHYS_VMEM * 3 // 4, 100 * 1024 * 1024))
_TM_CAP = 1024 if _PHYS_VMEM >= (96 << 20) else 512
_NUM_TC = _detect_num_tensorcores()


def _cparams(sem):
    return pltpu.CompilerParams(dimension_semantics=sem,
                                vmem_limit_bytes=_VMEM_LIMIT)


def _choose_tm(M, cap=None):
    """Largest multiple-of-8 row tile dividing M (<= cap)."""
    cap = _TM_CAP if cap is None else cap
    if M % 8 != 0:
        return None
    t = min(M, cap)
    t -= t % 8
    best = None
    while t >= 8:
        if M % t == 0:
            best = t
            break
        t -= 8
    if best is None:
        return None
    # Only split a single-step grid when there are 2 TensorCores to feed (v7x).
    if best == M and _NUM_TC >= 2 and (M // 2) >= 8 and (M // 2) % 8 == 0:
        return M // 2
    return best


# ----------------------------------------------------------------------------
# Shared in-kernel helpers
# ----------------------------------------------------------------------------

def _layernorm_pad(y, gamma, beta, d_true, eps):
    """LayerNorm over the first d_true lanes of a (rows, LANE) slab.
    Padded lanes are masked out of the statistics and come out exactly zero
    (gamma/beta are zero there), so the lane-padding invariant is preserved."""
    lane = lax.broadcasted_iota(jnp.int32, y.shape, 1)
    valid = lane < d_true
    inv_d = 1.0 / d_true
    mu = jnp.sum(jnp.where(valid, y, 0.0), axis=-1, keepdims=True) * inv_d
    yc = jnp.where(valid, y - mu, 0.0)
    var = jnp.sum(yc * yc, axis=-1, keepdims=True) * inv_d
    yn = yc * lax.rsqrt(var + eps)
    return yn * gamma + beta


# ----------------------------------------------------------------------------
# Generic matmul kernel (bf16 operands, f32 accumulate)
# ----------------------------------------------------------------------------

def _matmul_kernel(x_ref, w_ref, b_ref, o_ref, *, activation):
    acc = jnp.dot(x_ref[...].astype(jnp.bfloat16), w_ref[...],
                  preferred_element_type=jnp.float32) + b_ref[...]
    if activation == "relu":
        acc = jnp.maximum(acc, 0.0)
    o_ref[...] = acc.astype(o_ref.dtype)


def pallas_matmul(x, w, b=None, activation=None, cap=None):
    """y = act(x @ w + b).  x: (M, K) f32, w: (K, N) bf16, b: (N,) f32."""
    M, K = x.shape
    N = w.shape[1]
    if b is None:
        b = jnp.zeros((N,), jnp.float32)
    tm = _choose_tm(M, cap)
    if tm is None:                       # ragged M (e.g. speaker path, M=B)
        Mp = _round_up(M, 8)
        x = jnp.pad(x, ((0, Mp - M), (0, 0)))
        tm = _choose_tm(Mp, cap)
    else:
        Mp = M
    out = pl.pallas_call(
        functools.partial(_matmul_kernel, activation=activation),
        out_shape=jax.ShapeDtypeStruct((Mp, N), jnp.float32),
        grid=(Mp // tm,),
        in_specs=[
            pl.BlockSpec((tm, K), lambda i: (i, 0)),
            pl.BlockSpec((K, N), lambda i: (0, 0)),
            pl.BlockSpec((1, N), lambda i: (0, 0)),
        ],
        out_specs=pl.BlockSpec((tm, N), lambda i: (i, 0)),
        compiler_params=_cparams(("parallel",)),
    )(x, w, b.reshape(1, N))
    return out if Mp == M else out[:M]


# ----------------------------------------------------------------------------
# Frontend: bias + ReLU + spatial GAP (reshape/sum) + projection, fused
# ----------------------------------------------------------------------------

def _gap_proj_kernel(x_ref, bc_ref, wp_ref, bp_ref, o_ref, *, inv_s):
    # x: (bt_tile, S, Cr) conv output.  GAP is a sublane reduce, not a matmul.
    y = jnp.maximum(x_ref[...] + bc_ref[...], 0.0)          # conv bias + ReLU
    gap = jnp.sum(y, axis=1) * inv_s                        # spatial mean (bt, Cr)
    out = jnp.dot(gap.astype(jnp.bfloat16), wp_ref[...],
                  preferred_element_type=jnp.float32) + bp_ref[...]
    o_ref[...] = out.astype(o_ref.dtype)


def pallas_gap_proj(feats, bc, wp, bp):
    """feats: (B*Tp, S, Cr) last-conv output (b-major, t-minor) -> (B*Tp, LANE)."""
    BT, S, Cr = feats.shape
    bt_cap = max(8, ((_VMEM_LIMIT // 4) // (S * Cr * 4)) // 8 * 8)
    bt_tile = _choose_tm(BT, cap=bt_cap)
    if bt_tile is None:
        BTp = _round_up(BT, 8)
        feats = jnp.pad(feats, ((0, BTp - BT), (0, 0), (0, 0)))
        bt_tile = _choose_tm(BTp, cap=bt_cap)
    else:
        BTp = BT
    out = pl.pallas_call(
        functools.partial(_gap_proj_kernel, inv_s=1.0 / S),
        out_shape=jax.ShapeDtypeStruct((BTp, LANE), jnp.float32),
        grid=(BTp // bt_tile,),
        in_specs=[
            pl.BlockSpec((bt_tile, S, Cr), lambda i: (i, 0, 0)),
            pl.BlockSpec((1, 1, Cr), lambda i: (0, 0, 0)),
            pl.BlockSpec((Cr, LANE), lambda i: (0, 0)),
            pl.BlockSpec((1, LANE), lambda i: (0, 0)),
        ],
        out_specs=pl.BlockSpec((bt_tile, LANE), lambda i: (i, 0)),
        compiler_params=_cparams(("parallel",)),
    )(feats, bc.reshape(1, 1, Cr), wp, bp.reshape(1, LANE))
    return out if BTp == BT else out[:BT]


# ----------------------------------------------------------------------------
# Fused transformer encoder layer (PE + masked MHA + res/LN + FFN + res/LN)
# ----------------------------------------------------------------------------

def _enc_layer_kernel(dl_ref, x_ref, pe_ref, wqkv_ref, bqkv_ref, wo_ref, bo_ref,
                      g1_ref, be1_ref, w1_ref, b1_ref, w2_ref, b2_ref,
                      g2_ref, be2_ref, o_ref, *, n_head, dh, d, eps, add_pe,
                      scale):
    x = x_ref[0].astype(jnp.float32)                          # (Tp, LANE)
    if add_pe:
        x = x + pe_ref[...]                                   # fold PE add in
    tq = x.shape[0]

    # additive key mask from data_len (scalar prefetch, built in-kernel)
    dlen = dl_ref[pl.program_id(0)]
    key_col = lax.broadcasted_iota(jnp.int32, (tq, tq), 1)
    kmask = jnp.where(key_col < dlen, 0.0, -1e9).astype(jnp.float32)

    # fused QKV projection (bf16 operands, f32 accumulation)
    qkv = jnp.dot(x.astype(jnp.bfloat16), wqkv_ref[...],
                  preferred_element_type=jnp.float32) + bqkv_ref[...]

    # per-head attention; head outputs are lane-concatenated (no placement matmul)
    # TODO(synk): for long Tp, tile queries with online softmax; at small Tp the
    #             (Tp, Tp) per-head scores fit comfortably in VMEM/vregs.
    heads = []
    for h in range(n_head):
        q = qkv[:, h * dh:(h + 1) * dh]
        k = qkv[:, d + h * dh:d + (h + 1) * dh]
        v = qkv[:, 2 * d + h * dh:2 * d + (h + 1) * dh]
        s = jnp.dot(q, k.T, preferred_element_type=jnp.float32) * scale + kmask
        s = s - jnp.max(s, axis=-1, keepdims=True)
        p = jnp.exp(s)
        p = p / jnp.sum(p, axis=-1, keepdims=True)            # exact softmax
        heads.append(jnp.dot(p.astype(jnp.bfloat16), v.astype(jnp.bfloat16),
                             preferred_element_type=jnp.float32))
    attn = jnp.concatenate(heads, axis=-1)                    # (Tp, d)

    # out-projection + residual + LayerNorm 1
    wo = wo_ref[...]
    y = (jnp.dot(attn.astype(jnp.bfloat16), wo[:d, :],
                 preferred_element_type=jnp.float32) + bo_ref[...] + x)
    x1 = _layernorm_pad(y, g1_ref[...], be1_ref[...], d, eps)

    # FFN + residual + LayerNorm 2
    h1 = jnp.dot(x1.astype(jnp.bfloat16), w1_ref[...],
                 preferred_element_type=jnp.float32) + b1_ref[...]
    h1 = jnp.maximum(h1, 0.0)
    y2 = (jnp.dot(h1.astype(jnp.bfloat16), w2_ref[...],
                  preferred_element_type=jnp.float32) + b2_ref[...] + x1)
    x2 = _layernorm_pad(y2, g2_ref[...], be2_ref[...], d, eps)
    o_ref[0] = x2.astype(o_ref.dtype)


def pallas_encoder_layer(x, data_len, pe, lp, *, n_head, d, add_pe):
    """x: (B, Tp, LANE) f32; data_len: (B,) int32 (scalar-prefetched)."""
    B, Tp, DP = x.shape
    dffp = lp["w1"].shape[1]
    dh = d // n_head
    const2 = lambda b, dl: (0, 0)
    grid_spec = pltpu.PrefetchScalarGridSpec(
        num_scalar_prefetch=1,
        grid=(B,),
        in_specs=[
            pl.BlockSpec((1, Tp, DP), lambda b, dl: (b, 0, 0)),   # x
            pl.BlockSpec((Tp, DP), const2),                       # positional enc
            pl.BlockSpec((DP, DP), const2),                       # wqkv
            pl.BlockSpec((1, DP), const2),                        # bqkv
            pl.BlockSpec((DP, DP), const2),                       # wo
            pl.BlockSpec((1, DP), const2),                        # bo
            pl.BlockSpec((1, DP), const2),                        # ln1 gamma
            pl.BlockSpec((1, DP), const2),                        # ln1 beta
            pl.BlockSpec((DP, dffp), const2),                     # ffn w1
            pl.BlockSpec((1, dffp), const2),                      # ffn b1
            pl.BlockSpec((dffp, DP), const2),                     # ffn w2
            pl.BlockSpec((1, DP), const2),                        # ffn b2
            pl.BlockSpec((1, DP), const2),                        # ln2 gamma
            pl.BlockSpec((1, DP), const2),                        # ln2 beta
        ],
        out_specs=pl.BlockSpec((1, Tp, DP), lambda b, dl: (b, 0, 0)),
    )
    kern = functools.partial(_enc_layer_kernel, n_head=n_head, dh=dh, d=d,
                             eps=1e-5, add_pe=add_pe,
                             scale=1.0 / float(dh) ** 0.5)
    return pl.pallas_call(
        kern,
        out_shape=jax.ShapeDtypeStruct((B, Tp, DP), jnp.float32),
        grid_spec=grid_spec,
        compiler_params=_cparams(("parallel",)),
    )(data_len, x, pe,
      lp["wqkv"], lp["bqkv"].reshape(1, DP),
      lp["wo"], lp["bo"].reshape(1, DP),
      lp["ln1_g"].reshape(1, DP), lp["ln1_b"].reshape(1, DP),
      lp["w1"], lp["b1"].reshape(1, dffp),
      lp["w2"], lp["b2"].reshape(1, DP),
      lp["ln2_g"].reshape(1, DP), lp["ln2_b"].reshape(1, DP))


# ----------------------------------------------------------------------------
# Fused pre_vq projection + VQ (constant distance terms hoisted to inputs)
# ----------------------------------------------------------------------------

def _prevq_vq_kernel(x_ref, wp_ref, bp_ref, cb_ref, cbt_ref, c2_ref, o_ref, *, de):
    x = x_ref[...]
    pre = jnp.dot(x.astype(jnp.bfloat16), wp_ref[...],
                  preferred_element_type=jnp.float32) + bp_ref[...]
    x2 = jnp.sum(pre * pre, axis=-1, keepdims=True)                  # (tm, 1)
    xc = jnp.dot(pre, cbt_ref[...], preferred_element_type=jnp.float32)  # (tm, Kc)
    dist = jnp.maximum(x2 - 2.0 * xc + c2_ref[...], 0.0)             # clamp >= 0
    dmin = jnp.min(dist, axis=-1, keepdims=True)
    kc = dist.shape[-1]
    col = lax.broadcasted_iota(jnp.int32, dist.shape, 1)
    idx = jnp.min(jnp.where(dist <= dmin, col, kc), axis=-1, keepdims=True)
    onehot = (col == idx).astype(jnp.float32)
    q = jnp.dot(onehot, cb_ref[...], preferred_element_type=jnp.float32)
    lane = lax.broadcasted_iota(jnp.int32, q.shape, 1)
    # pack: lanes [0, de) = quantized vector, lane de = min squared distance
    out = q + jnp.where(lane == de, 1.0, 0.0) * dmin
    o_ref[...] = out.astype(o_ref.dtype)


def pallas_prevq_vq(x, wpre, bpre, codebook, vq_emb_dim):
    M, DP = x.shape
    Kc = codebook.shape[0]
    c2 = jnp.sum(codebook * codebook, axis=-1)[None, :]   # hoisted (1, Kc)
    cbt = codebook.T                                      # hoisted (DP, Kc)
    tm = _choose_tm(M)
    assert tm is not None
    return pl.pallas_call(
        functools.partial(_prevq_vq_kernel, de=vq_emb_dim),
        out_shape=jax.ShapeDtypeStruct((M, DP), jnp.float32),
        grid=(M // tm,),
        in_specs=[
            pl.BlockSpec((tm, DP), lambda i: (i, 0)),
            pl.BlockSpec((DP, DP), lambda i: (0, 0)),
            pl.BlockSpec((1, DP), lambda i: (0, 0)),
            pl.BlockSpec((Kc, DP), lambda i: (0, 0)),
            pl.BlockSpec((DP, Kc), lambda i: (0, 0)),
            pl.BlockSpec((1, Kc), lambda i: (0, 0)),
        ],
        out_specs=pl.BlockSpec((tm, DP), lambda i: (i, 0)),
        compiler_params=_cparams(("parallel",)),
    )(x, wpre, bpre.reshape(1, DP), codebook, cbt, c2)


# ----------------------------------------------------------------------------
# Decoder residual temporal conv (kernel 3) via XLU roll, no Tp x Tp matmuls
# ----------------------------------------------------------------------------

def _dec_conv_kernel(h_ref, w_ref, b_ref, o_ref):
    h = h_ref[0].astype(jnp.float32)                         # (Tp, LANE)
    tn = h.shape[0]
    row = lax.broadcasted_iota(jnp.int32, h.shape, 0)
    prev = jnp.where(row == 0, 0.0, pltpu.roll(h, shift=1, axis=0))
    nxt = jnp.where(row == tn - 1, 0.0, pltpu.roll(h, shift=tn - 1, axis=0))
    y = (jnp.dot(prev.astype(jnp.bfloat16), w_ref[0],
                 preferred_element_type=jnp.float32)
         + jnp.dot(h.astype(jnp.bfloat16), w_ref[1],
                   preferred_element_type=jnp.float32)
         + jnp.dot(nxt.astype(jnp.bfloat16), w_ref[2],
                   preferred_element_type=jnp.float32)
         + b_ref[...])
    y = jnp.maximum(y, 0.0)
    o_ref[0] = (h + y).astype(o_ref.dtype)


def pallas_dec_conv(h, w, b, B, Tp):
    h3 = h.reshape(B, Tp, LANE)
    out = pl.pallas_call(
        _dec_conv_kernel,
        out_shape=jax.ShapeDtypeStruct((B, Tp, LANE), jnp.float32),
        grid=(B,),
        in_specs=[
            pl.BlockSpec((1, Tp, LANE), lambda i: (i, 0, 0)),
            pl.BlockSpec((3, LANE, LANE), lambda i: (0, 0, 0)),
            pl.BlockSpec((1, LANE), lambda i: (0, 0)),
        ],
        out_specs=pl.BlockSpec((1, Tp, LANE), lambda i: (i, 0, 0)),
        compiler_params=_cparams(("parallel",)),
    )(h3, w, b.reshape(1, LANE))
    return out.reshape(B * Tp, LANE)


# ----------------------------------------------------------------------------
# Model configuration & deterministic parameter init (lane-padded weights)
# ----------------------------------------------------------------------------

CFG = dict(
    in_channels=3, out_channels=80,
    res_layers=1, res_inner_channels=16, norm_type="bn",
    separate_frontend=False, which_res="simple",
    d_model=32, n_layers=1, n_head=4, conformer_conv_kernel_size=31,
    rnn_hidden_channels=32, rnn_n_layers=1,
    vq_emb_dim=16, vq_num_emb=32,
    dec_n_layers=2, dec_inner_channels=32, dec_kernel_size=3,
    tc_n_attn_layer=1, tc_n_head=4, tc_d_model=32,
    feat_add_channels=80, feat_add_layers=1,
    n_speaker=4, spk_emb_dim=8,
    which_encoder="transformer", which_decoder="restc",
    apply_first_bn=False, use_feat_add=False, phoneme_classes=40, use_phoneme=False,
    use_dec_attention=False, upsample_method="interpolate", compress_rate=1,
    dec_dropout=0.0, res_dropout=0.0, reduction_factor=2,
)


def init_params(key, cfg):
    d = cfg["d_model"]
    assert d % cfg["n_head"] == 0
    assert d == cfg["rnn_hidden_channels"]
    assert 3 * d <= LANE and cfg["dec_inner_channels"] <= LANE
    assert cfg["vq_emb_dim"] + 1 <= LANE and cfg["out_channels"] <= LANE
    dff = 4 * d
    dffp = max(dff, LANE)
    Cr = cfg["res_inner_channels"]
    Cd = cfg["dec_inner_channels"]
    De = cfg["vq_emb_dim"]

    keys = iter(jax.random.split(key, 128))

    def nrm(shape, scale=0.05):
        return scale * jax.random.normal(next(keys), shape, dtype=jnp.float32)

    def padw(a, shape):        # zero-pad + bf16 (MXU operand)
        return jnp.pad(a, [(0, s - n) for n, s in zip(a.shape, shape)]
                       ).astype(jnp.bfloat16)

    def padf(a, shape):        # zero-pad, keep f32
        return jnp.pad(a, [(0, s - n) for n, s in zip(a.shape, shape)])

    p = {}
    # --- "simple" frontend: 3x3x3 conv stages (spatial stride 2) + GAP + proj
    conv = []
    cin = cfg["in_channels"]
    for _ in range(cfg["res_layers"]):
        conv.append((nrm((Cr, cin, 3, 3, 3)), jnp.zeros((Cr,), jnp.float32)))
        cin = Cr
    p["res_conv"] = conv
    p["res_proj_w"] = padw(nrm((Cr, d)), (Cr, LANE))
    p["res_proj_b"] = jnp.zeros((LANE,), jnp.float32)

    # --- transformer encoder (fused QKV, lane-padded, bf16 matmul weights)
    enc = []
    for _ in range(cfg["n_layers"]):
        wq, wk, wv = nrm((d, d)), nrm((d, d)), nrm((d, d))
        enc.append(dict(
            wqkv=padw(jnp.concatenate([wq, wk, wv], axis=1), (LANE, LANE)),
            bqkv=jnp.zeros((LANE,), jnp.float32),
            wo=padw(nrm((d, d)), (LANE, LANE)),
            bo=jnp.zeros((LANE,), jnp.float32),
            ln1_g=padf(jnp.ones((d,), jnp.float32), (LANE,)),
            ln1_b=jnp.zeros((LANE,), jnp.float32),
            w1=padw(nrm((d, dff)), (LANE, dffp)),
            b1=jnp.zeros((dffp,), jnp.float32),
            w2=padw(nrm((dff, d)), (dffp, LANE)),
            b2=jnp.zeros((LANE,), jnp.float32),
            ln2_g=padf(jnp.ones((d,), jnp.float32), (LANE,)),
            ln2_b=jnp.zeros((LANE,), jnp.float32),
        ))
    p["enc_layers"] = enc

    # --- pre_vq Conv1d(k=1) + VQ codebook
    p["pre_vq_w"] = padw(nrm((d, De)), (LANE, LANE))
    p["pre_vq_b"] = jnp.zeros((LANE,), jnp.float32)
    p["vq_codebook"] = padf(nrm((cfg["vq_num_emb"], De), scale=0.1),
                            (cfg["vq_num_emb"], LANE))

    # --- speaker embedding
    p["spk_emb_table"] = nrm((cfg["n_speaker"], cfg["spk_emb_dim"]))
    p["dec_spk_w"] = padw(nrm((cfg["spk_emb_dim"], Cd)),
                          (cfg["spk_emb_dim"], LANE))
    p["dec_spk_b"] = jnp.zeros((LANE,), jnp.float32)

    # --- ResTC decoder (rows >= vq_emb_dim of dec_in_w are zero, so the packed
    #     dmin lane of the VQ output never leaks into the decoder)
    p["dec_in_w"] = padw(nrm((De, Cd)), (LANE, LANE))
    p["dec_in_b"] = jnp.zeros((LANE,), jnp.float32)
    dec_layers = []
    for _ in range(cfg["dec_n_layers"]):
        dec_layers.append((padw(nrm((3, Cd, Cd)), (3, LANE, LANE)),
                           jnp.zeros((LANE,), jnp.float32)))
    p["dec_layers"] = dec_layers
    p["dec_out_w"] = padw(nrm((Cd, cfg["out_channels"])), (LANE, LANE))
    p["dec_out_b"] = jnp.zeros((LANE,), jnp.float32)
    return p


# ----------------------------------------------------------------------------
# Forward pass (mirrors Lip2SP_NARVQ.forward)
# ----------------------------------------------------------------------------

def frontend_forward(params, lip, cfg):
    """'simple' ResNet_GAP frontend.  lip: (B, C, H, W, T) -> (B*Tp, LANE)."""
    # TODO(synk): BatchNorm / dropout of the original frontend are inference
    #             no-ops here (norm folded away, dropout disabled).
    B, C, H, W, T = lip.shape
    Tp = _round_up(T, 8)
    if Tp != T:
        lip = jnp.pad(lip, ((0, 0), (0, 0), (0, 0), (0, 0), (0, Tp - T)))
    x = lip
    n_res = len(params["res_conv"])
    for li, (wc, bc) in enumerate(params["res_conv"]):
        # Strided 3x3x3 conv runs as one XLA conv op: no 27x im2col HBM blowup.
        dn = lax.conv_dimension_numbers(x.shape, wc.shape,
                                        ("NCHWT", "OIHWT", "NCHWT"))
        y = lax.conv_general_dilated(x, wc, window_strides=(2, 2, 1),
                                     padding=((1, 1), (1, 1), (1, 1)),
                                     dimension_numbers=dn)
        if li < n_res - 1:
            # TODO(synk): non-final conv stages keep bias+ReLU in XLA (fused
            #             with the conv); only the final-stage epilogue is Pallas.
            x = jnp.maximum(y + bc.reshape(1, -1, 1, 1, 1), 0.0)
        else:
            Bc, Co, Ho, Wo, Tc = y.shape
            feats = y.transpose(0, 4, 2, 3, 1).reshape(Bc * Tc, Ho * Wo, Co)
            out = pallas_gap_proj(feats, bc, params["res_proj_w"],
                                  params["res_proj_b"])
            return out, Tp


def _sinusoidal_pe(T, d):
    pos = jnp.arange(T, dtype=jnp.float32)[:, None]
    i = jnp.arange(d // 2, dtype=jnp.float32)[None, :]
    angle = pos / jnp.power(10000.0, 2.0 * i / d)
    pe = jnp.zeros((T, d), jnp.float32)
    pe = pe.at[:, 0::2].set(jnp.sin(angle))
    pe = pe.at[:, 1::2].set(jnp.cos(angle))
    return pe


def encoder_forward(params, x, data_len, B, Tp, cfg):
    """Transformer encoder: one fused Pallas kernel per layer, gridded over B."""
    # TODO(synk): conformer / lstm / gru encoder variants are not implemented.
    d = cfg["d_model"]
    pe = jnp.pad(_sinusoidal_pe(Tp, d), ((0, 0), (0, LANE - d)))
    xb = x.reshape(B, Tp, LANE)
    dl = data_len.astype(jnp.int32)
    for li, lp in enumerate(params["enc_layers"]):
        xb = pallas_encoder_layer(xb, dl, pe, lp, n_head=cfg["n_head"], d=d,
                                  add_pe=(li == 0))
    return xb.reshape(B * Tp, LANE)


def decoder_forward(params, quantize_pad, spk_emb, B, Tp, T, cfg):
    """ResTC decoder.  quantize_pad: (B*Tp, LANE) -> (B, out_channels, T*r)."""
    h = pallas_matmul(quantize_pad, params["dec_in_w"], params["dec_in_b"],
                      activation="relu")
    if spk_emb is not None:
        s = pallas_matmul(spk_emb, params["dec_spk_w"], params["dec_spk_b"])
        h = (h.reshape(B, Tp, LANE) + s[:, None, :]).reshape(B * Tp, LANE)

    tmask = None
    if Tp != T:
        tmask = (jnp.arange(Tp) < T).astype(h.dtype)[None, :, None]
    for (w, b) in params["dec_layers"]:
        if tmask is not None:    # keep padded frames from leaking into valid ones
            h = (h.reshape(B, Tp, LANE) * tmask).reshape(B * Tp, LANE)
        h = pallas_dec_conv(h, w, b, B, Tp)

    # Output projection BEFORE nearest-neighbour upsample (they commute).
    out = pallas_matmul(h, params["dec_out_w"], params["dec_out_b"])
    out = out.reshape(B, Tp, LANE)[:, :T, :cfg["out_channels"]]
    r = cfg["reduction_factor"]
    out = jnp.repeat(out, r, axis=1).transpose(0, 2, 1)       # (B, out_ch, T*r)
    feat_add_out = None   # use_feat_add=False
    phoneme = None        # use_phoneme=False
    return out, feat_add_out, phoneme, None


def lip2sp_narvq_forward(params, cfg, lip=None, data_len=None, gc=None):
    B, _, _, _, T = lip.shape
    # lip_feature = ResNet_GAP(lip)
    feat, Tp = frontend_forward(params, lip, cfg)                 # (B*Tp, LANE)
    # enc_output = encoder(lip_feature, data_len)
    enc = encoder_forward(params, feat, data_len, B, Tp, cfg)     # (B*Tp, LANE)
    # pre_vq_layer + VQ fused: lanes [0, De) = quantize, lane De = ||x-e||^2
    vq_out = pallas_prevq_vq(enc, params["pre_vq_w"], params["pre_vq_b"],
                             params["vq_codebook"], cfg["vq_emb_dim"])
    De = cfg["vq_emb_dim"]
    dmin = vq_out[:, De].reshape(B, Tp)[:, :T]
    mse = jnp.mean(dmin) / De
    vq_loss = 1.25 * mse     # codebook loss + 0.25 * commitment loss (same value)
    # TODO(synk): straight-through gradient estimator is training-only; the
    #             forward value is identical.
    if gc is not None:
        spk_emb = params["spk_emb_table"][gc]
    else:
        spk_emb = None
    output, feat_add_out, phoneme, _ = decoder_forward(
        params, vq_out, spk_emb, B, Tp, T, cfg)
    return output, feat_add_out, phoneme, vq_loss


# ----------------------------------------------------------------------------
# Demo
# ----------------------------------------------------------------------------

if __name__ == "__main__":
    cfg = CFG
    key = jax.random.PRNGKey(0)
    pkey, dkey = jax.random.split(key)
    params = init_params(pkey, cfg)

    B, C, H, W, T = 2, cfg["in_channels"], 16, 16, 8
    lip = jax.random.normal(dkey, (B, C, H, W, T), dtype=jnp.float32)
    data_len = jnp.array([T, T - 2], dtype=jnp.int32)

    fwd = jax.jit(lambda p, l, dl: lip2sp_narvq_forward(p, cfg, lip=l,
                                                        data_len=dl, gc=None))
    output, feat_add_out, phoneme, vq_loss = fwd(params, lip, data_len)

    jax.block_until_ready(output)
    jax.block_until_ready(vq_loss)
    assert output.shape == (B, cfg["out_channels"], T * cfg["reduction_factor"])
    assert feat_add_out is None and phoneme is None
    assert vq_loss.shape == ()
    print("KERNEL_OK")
</pallas_src>

<mosaic_0001>
module attributes {stable_mosaic.version = 11 : i64} {
  func.func @_gap_proj_kernel(%arg0: i32, %arg1: memref<16x64x16xf32, #tpu.memory_space<vmem>>, %arg2: memref<1x1x16xf32, #tpu.memory_space<vmem>>, %arg3: memref<16x128xbf16, #tpu.memory_space<vmem>>, %arg4: memref<1x128xf32, #tpu.memory_space<vmem>>, %arg5: memref<16x128xf32, #tpu.memory_space<vmem>>) attributes {dimension_semantics = [#tpu.dimension_semantics<parallel>], iteration_bounds = array<i64: 1>, scalar_prefetch = 0 : i64, scratch_operands = 0 : i64, tpu.core_type = #tpu.core_type<tc>, window_params = [{transform_indices = @transform_0, window_bounds = array<i64: 16, 64, 16>}, {pipeline_mode = #tpu.pipeline_mode<synchronous>, transform_indices = @transform_1, window_bounds = array<i64: 1, 1, 16>}, {pipeline_mode = #tpu.pipeline_mode<synchronous>, transform_indices = @transform_2, window_bounds = array<i64: 16, 128>}, {pipeline_mode = #tpu.pipeline_mode<synchronous>, transform_indices = @transform_3, window_bounds = array<i64: 1, 128>}, {transform_indices = @transform_4, window_bounds = array<i64: 16, 128>}]} {
    %c0 = arith.constant 0 : index
    %c0_0 = arith.constant 0 : index
    %c0_1 = arith.constant 0 : index
    %0 = vector.load %arg1[%c0, %c0_0, %c0_1] : memref<16x64x16xf32, #tpu.memory_space<vmem>>, vector<16x64x16xf32>
    %c0_2 = arith.constant 0 : index
    %c0_3 = arith.constant 0 : index
    %c0_4 = arith.constant 0 : index
    %1 = vector.load %arg2[%c0_2, %c0_3, %c0_4] : memref<1x1x16xf32, #tpu.memory_space<vmem>>, vector<1x1x16xf32>
    %2 = vector.broadcast %1 : vector<1x1x16xf32> to vector<16x64x16xf32>
    %3 = arith.addf %0, %2 : vector<16x64x16xf32>
    %cst = arith.constant 0.000000e+00 : f32
    %4 = vector.broadcast %cst : f32 to vector<16x64x16xf32>
    %5 = arith.maximumf %3, %4 : vector<16x64x16xf32>
    %cst_5 = arith.constant dense<0.000000e+00> : vector<16x16xf32>
    %6 = vector.multi_reduction <add>, %5, %cst_5 [1] : vector<16x64x16xf32> to vector<16x16xf32>
    %cst_6 = arith.constant 1.562500e-02 : f32
    %7 = vector.broadcast %cst_6 : f32 to vector<16x16xf32>
    %8 = arith.mulf %6, %7 : vector<16x16xf32>
    %9 = arith.truncf %8 : vector<16x16xf32> to vector<16x16xbf16>
    %c0_7 = arith.constant 0 : index
    %c0_8 = arith.constant 0 : index
    %10 = vector.load %arg3[%c0_7, %c0_8] : memref<16x128xbf16, #tpu.memory_space<vmem>>, vector<16x128xbf16>
    %cst_9 = arith.constant dense<0.000000e+00> : vector<16x128xf32>
    %11 = tpu.matmul %9, %10, %cst_9 {dimension_numbers = #tpu.dot_dimension_numbers<[1], [0], [0], [1], [0, 0, 1, 1], [], []>} : vector<16x16xbf16>, vector<16x128xbf16>, vector<16x128xf32> -> vector<16x128xf32>
    %c0_10 = arith.constant 0 : index
    %c0_11 = arith.constant 0 : index
    %12 = vector.load %arg4[%c0_10, %c0_11] : memref<1x128xf32, #tpu.memory_space<vmem>>, vector<1x128xf32>
    %13 = vector.broadcast %12 : vector<1x128xf32> to vector<16x128xf32>
    %14 = arith.addf %11, %13 : vector<16x128xf32>
    %c0_12 = arith.constant 0 : index
    %c0_13 = arith.constant 0 : index
    %15 = vector.load %arg5[%c0_12, %c0_13] : memref<16x128xf32, #tpu.memory_space<vmem>>, vector<16x128xf32>
    tpu.vector_store %arg5[%c0_12, %c0_13], %14 {strides = array<i32>} : memref<16x128xf32, #tpu.memory_space<vmem>>, vector<16x128xf32>,
    return
  }
  func.func @transform_0(%arg0: i32) -> (i32, i32, i32) {
    %c0_i32 = arith.constant 0 : i32
    %c0_i32_0 = arith.constant 0 : i32
    %c0_i32_1 = arith.constant 0 : i32
    return %arg0, %c0_i32, %c0_i32_0 : i32, i32, i32
  }
  func.func @transform_1(%arg0: i32) -> (i32, i32, i32) {
    %c0_i32 = arith.constant 0 : i32
    %c0_i32_0 = arith.constant 0 : i32
    %c0_i32_1 = arith.constant 0 : i32
    %c0_i32_2 = arith.constant 0 : i32
    return %c0_i32, %c0_i32_0, %c0_i32_1 : i32, i32, i32
  }
  func.func @transform_2(%arg0: i32) -> (i32, i32) {
    %c0_i32 = arith.constant 0 : i32
    %c0_i32_0 = arith.constant 0 : i32
    %c0_i32_1 = arith.constant 0 : i32
    return %c0_i32, %c0_i32_0 : i32, i32
  }
  func.func @transform_3(%arg0: i32) -> (i32, i32) {
    %c0_i32 = arith.constant 0 : i32
    %c0_i32_0 = arith.constant 0 : i32
    %c0_i32_1 = arith.constant 0 : i32
    return %c0_i32, %c0_i32_0 : i32, i32
  }
  func.func @transform_4(%arg0: i32) -> (i32, i32) {
    %c0_i32 = arith.constant 0 : i32
    %c0_i32_0 = arith.constant 0 : i32
    return %arg0, %c0_i32 : i32, i32
  }
}

module attributes {stable_mosaic.version = 11 : i64} {
  func.func @_prevq_vq_kernel(%arg0: i32, %arg1: memref<16x128xf32, #tpu.memory_space<vmem>>, %arg2: memref<128x128xbf16, #tpu.memory_space<vmem>>, %arg3: memref<1x128xf32, #tpu.memory_space<vmem>>, %arg4: memref<32x128xf32, #tpu.memory_space<vmem>>, %arg5: memref<128x32xf32, #tpu.memory_space<vmem>>, %arg6: memref<1x32xf32, #tpu.memory_space<vmem>>, %arg7: memref<16x128xf32, #tpu.memory_space<vmem>>) attributes {dimension_semantics = [#tpu.dimension_semantics<parallel>], iteration_bounds = array<i64: 1>, scalar_prefetch = 0 : i64, scratch_operands = 0 : i64, tpu.core_type = #tpu.core_type<tc>, window_params = [{transform_indices = @transform_0, window_bounds = array<i64: 16, 128>}, {pipeline_mode = #tpu.pipeline_mode<synchronous>, transform_indices = @transform_1, window_bounds = array<i64: 128, 128>}, {pipeline_mode = #tpu.pipeline_mode<synchronous>, transform_indices = @transform_2, window_bounds = array<i64: 1, 128>}, {pipeline_mode = #tpu.pipeline_mode<synchronous>, transform_indices = @transform_3, window_bounds = array<i64: 32, 128>}, {pipeline_mode = #tpu.pipeline_mode<synchronous>, transform_indices = @transform_4, window_bounds = array<i64: 128, 32>}, {pipeline_mode = #tpu.pipeline_mode<synchronous>, transform_indices = @transform_5, window_bounds = array<i64: 1, 32>}, {transform_indices = @transform_6, window_bounds = array<i64: 16, 128>}]} {
    %c0 = arith.constant 0 : index
    %c0_0 = arith.constant 0 : index
    %0 = vector.load %arg1[%c0, %c0_0] : memref<16x128xf32, #tpu.memory_space<vmem>>, vector<16x128xf32>
    %1 = arith.truncf %0 : vector<16x128xf32> to vector<16x128xbf16>
    %c0_1 = arith.constant 0 : index
    %c0_2 = arith.constant 0 : index
    %2 = vector.load %arg2[%c0_1, %c0_2] : memref<128x128xbf16, #tpu.memory_space<vmem>>, vector<128x128xbf16>
    %cst = arith.constant dense<0.000000e+00> : vector<16x128xf32>
    %3 = tpu.matmul %1, %2, %cst {dimension_numbers = #tpu.dot_dimension_numbers<[1], [0], [0], [1], [0, 0, 1, 1], [], []>} : vector<16x128xbf16>, vector<128x128xbf16>, vector<16x128xf32> -> vector<16x128xf32>
    %c0_3 = arith.constant 0 : index
    %c0_4 = arith.constant 0 : index
    %4 = vector.load %arg3[%c0_3, %c0_4] : memref<1x128xf32, #tpu.memory_space<vmem>>, vector<1x128xf32>
    %5 = vector.broadcast %4 : vector<1x128xf32> to vector<16x128xf32>
    %6 = arith.addf %3, %5 : vector<16x128xf32>
    %7 = arith.mulf %6, %6 : vector<16x128xf32>
    %cst_5 = arith.constant dense<0.000000e+00> : vector<16xf32>
    %8 = vector.multi_reduction <add>, %7, %cst_5 [1] : vector<16x128xf32> to vector<16xf32>
    %9 = vector.shape_cast %8 : vector<16xf32> to vector<16x1xf32>
    %c0_6 = arith.constant 0 : index
    %c0_7 = arith.constant 0 : index
    %10 = vector.load %arg5[%c0_6, %c0_7] : memref<128x32xf32, #tpu.memory_space<vmem>>, vector<128x32xf32>
    %cst_8 = arith.constant dense<0.000000e+00> : vector<16x32xf32>
    %11 = tpu.matmul %6, %10, %cst_8 {dimension_numbers = #tpu.dot_dimension_numbers<[1], [0], [0], [1], [0, 0, 1, 1], [], []>} : vector<16x128xf32>, vector<128x32xf32>, vector<16x32xf32> -> vector<16x32xf32>
    %cst_9 = arith.constant 2.000000e+00 : f32
    %12 = vector.broadcast %cst_9 : f32 to vector<16x32xf32>
    %13 = arith.mulf %12, %11 : vector<16x32xf32>
    %14 = vector.broadcast %9 : vector<16x1xf32> to vector<16x32xf32>
    %15 = arith.subf %14, %13 : vector<16x32xf32>
    %c0_10 = arith.constant 0 : index
    %c0_11 = arith.constant 0 : index
    %16 = vector.load %arg6[%c0_10, %c0_11] : memref<1x32xf32, #tpu.memory_space<vmem>>, vector<1x32xf32>
    %17 = vector.broadcast %16 : vector<1x32xf32> to vector<16x32xf32>
    %18 = arith.addf %15, %17 : vector<16x32xf32>
    %cst_12 = arith.constant 0.000000e+00 : f32
    %19 = vector.broadcast %cst_12 : f32 to vector<16x32xf32>
    %20 = arith.maximumf %18, %19 : vector<16x32xf32>
    %cst_13 = arith.constant dense<0x7F800000> : vector<16xf32>
    %21 = vector.multi_reduction <minimumf>, %20, %cst_13 [1] : vector<16x32xf32> to vector<16xf32>
    %22 = vector.shape_cast %21 : vector<16xf32> to vector<16x1xf32>
    %23 = tpu.iota {dimensions = array<i32: 1>} : vector<16x32xi32>
    %24 = vector.broadcast %22 : vector<16x1xf32> to vector<16x32xf32>
    %25 = arith.cmpf ole, %20, %24 : vector<16x32xf32>
    %c32_i32 = arith.constant 32 : i32
    %26 = vector.broadcast %c32_i32 : i32 to vector<16x32xi32>
    %27 = arith.select %25, %23, %26 : vector<16x32xi1>, vector<16x32xi32>
    %cst_14 = arith.constant dense<2147483647> : vector<16xi32>
    %28 = vector.multi_reduction <minsi>, %27, %cst_14 [1] : vector<16x32xi32> to vector<16xi32>
    %29 = vector.shape_cast %28 : vector<16xi32> to vector<16x1xi32>
    %30 = vector.broadcast %29 : vector<16x1xi32> to vector<16x32xi32>
    %31 = arith.cmpi eq, %23, %30 : vector<16x32xi32>
    %32 = arith.extui %31 : vector<16x32xi1> to vector<16x32xi32>
    %33 = arith.sitofp %32 : vector<16x32xi32> to vector<16x32xf32>
    %c0_15 = arith.constant 0 : index
    %c0_16 = arith.constant 0 : index
    %34 = vector.load %arg4[%c0_15, %c0_16] : memref<32x128xf32, #tpu.memory_space<vmem>>, vector<32x128xf32>
    %cst_17 = arith.constant dense<0.000000e+00> : vector<16x128xf32>
    %35 = tpu.matmul %33, %34, %cst_17 {dimension_numbers = #tpu.dot_dimension_numbers<[1], [0], [0], [1], [0, 0, 1, 1], [], []>} : vector<16x32xf32>, vector<32x128xf32>, vector<16x128xf32> -> vector<16x128xf32>
    %36 = tpu.iota {dimensions = array<i32: 1>} : vector<16x128xi32>
    %c16_i32 = arith.constant 16 : i32
    %37 = vector.broadcast %c16_i32 : i32 to vector<16x128xi32>
    %38 = arith.cmpi eq, %36, %37 : vector<16x128xi32>
    %cst_18 = arith.constant 1.000000e+00 : f32
    %cst_19 = arith.constant 0.000000e+00 : f32
    %39 = vector.broadcast %cst_18 : f32 to vector<16x128xf32>
    %40 = vector.broadcast %cst_19 : f32 to vector<16x128xf32>
    %41 = arith.select %38, %39, %40 : vector<16x128xi1>, vector<16x128xf32>
    %42 = vector.broadcast %22 : vector<16x1xf32> to vector<16x128xf32>
    %43 = arith.mulf %41, %42 : vector<16x128xf32>
    %44 = arith.addf %35, %43 : vector<16x128xf32>
    %c0_20 = arith.constant 0 : index
    %c0_21 = arith.constant 0 : index
    %45 = vector.load %arg7[%c0_20, %c0_21] : memref<16x128xf32, #tpu.memory_space<vmem>>, vector<16x128xf32>
    tpu.vector_store %arg7[%c0_20, %c0_21], %44 {strides = array<i32>} : memref<16x128xf32, #tpu.memory_space<vmem>>, vector<16x128xf32>,
    return
  }
  func.func @transform_0(%arg0: i32) -> (i32, i32) {
    %c0_i32 = arith.constant 0 : i32
    %c0_i32_0 = arith.constant 0 : i32
    return %arg0, %c0_i32 : i32, i32
  }
  func.func @transform_1(%arg0: i32) -> (i32, i32) {
    %c0_i32 = arith.constant 0 : i32
    %c0_i32_0 = arith.constant 0 : i32
    %c0_i32_1 = arith.constant 0 : i32
    return %c0_i32, %c0_i32_0 : i32, i32
  }
  func.func @transform_2(%arg0: i32) -> (i32, i32) {
    %c0_i32 = arith.constant 0 : i32
    %c0_i32_0 = arith.constant 0 : i32
    %c0_i32_1 = arith.constant 0 : i32
    return %c0_i32, %c0_i32_0 : i32, i32
  }
  func.func @transform_3(%arg0: i32) -> (i32, i32) {
    %c0_i32 = arith.constant 0 : i32
    %c0_i32_0 = arith.constant 0 : i32
    %c0_i32_1 = arith.constant 0 : i32
    return %c0_i32, %c0_i32_0 : i32, i32
  }
  func.func @transform_4(%arg0: i32) -> (i32, i32) {
    %c0_i32 = arith.constant 0 : i32
    %c0_i32_0 = arith.constant 0 : i32
    %c0_i32_1 = arith.constant 0 : i32
    return %c0_i32, %c0_i32_0 : i32, i32
  }
  func.func @transform_5(%arg0: i32) -> (i32, i32) {
    %c0_i32 = arith.constant 0 : i32
    %c0_i32_0 = arith.constant 0 : i32
    %c0_i32_1 = arith.constant 0 : i32
    return %c0_i32, %c0_i32_0 : i32, i32
  }
  func.func @transform_6(%arg0: i32) -> (i32, i32) {
    %c0_i32 = arith.constant 0 : i32
    %c0_i32_0 = arith.constant 0 : i32
    return %arg0, %c0_i32 : i32, i32
  }
}

module attributes {stable_mosaic.version = 11 : i64} {
  func.func @_enc_layer_kernel(%arg0: i32, %arg1: memref<2xi32, #tpu.memory_space<smem>>, %arg2: memref<1x8x128xf32, #tpu.memory_space<vmem>>, %arg3: memref<8x128xf32, #tpu.memory_space<vmem>>, %arg4: memref<128x128xbf16, #tpu.memory_space<vmem>>, %arg5: memref<1x128xf32, #tpu.memory_space<vmem>>, %arg6: memref<128x128xbf16, #tpu.memory_space<vmem>>, %arg7: memref<1x128xf32, #tpu.memory_space<vmem>>, %arg8: memref<1x128xf32, #tpu.memory_space<vmem>>, %arg9: memref<1x128xf32, #tpu.memory_space<vmem>>, %arg10: memref<128x128xbf16, #tpu.memory_space<vmem>>, %arg11: memref<1x128xf32, #tpu.memory_space<vmem>>, %arg12: memref<128x128xbf16, #tpu.memory_space<vmem>>, %arg13: memref<1x128xf32, #tpu.memory_space<vmem>>, %arg14: memref<1x128xf32, #tpu.memory_space<vmem>>, %arg15: memref<1x128xf32, #tpu.memory_space<vmem>>, %arg16: memref<1x8x128xf32, #tpu.memory_space<vmem>>) attributes {dimension_semantics = [#tpu.dimension_semantics<parallel>], iteration_bounds = array<i64: 2>, scalar_prefetch = 1 : i64, scratch_operands = 0 : i64, tpu.core_type = #tpu.core_type<tc>, window_params = [{transform_indices = @transform_0, window_bounds = array<i64: 1, 8, 128>}, {pipeline_mode = #tpu.pipeline_mode<synchronous>, transform_indices = @transform_1, window_bounds = array<i64: 8, 128>}, {pipeline_mode = #tpu.pipeline_mode<synchronous>, transform_indices = @transform_2, window_bounds = array<i64: 128, 128>}, {pipeline_mode = #tpu.pipeline_mode<synchronous>, transform_indices = @transform_3, window_bounds = array<i64: 1, 128>}, {pipeline_mode = #tpu.pipeline_mode<synchronous>, transform_indices = @transform_4, window_bounds = array<i64: 128, 128>}, {pipeline_mode = #tpu.pipeline_mode<synchronous>, transform_indices = @transform_5, window_bounds = array<i64: 1, 128>}, {pipeline_mode = #tpu.pipeline_mode<synchronous>, transform_indices = @transform_6, window_bounds = array<i64: 1, 128>}, {pipeline_mode = #tpu.pipeline_mode<synchronous>, transform_indices = @transform_7, window_bounds = array<i64: 1, 128>}, {pipeline_mode = #tpu.pipeline_mode<synchronous>, transform_indices = @transform_8, window_bounds = array<i64: 128, 128>}, {pipeline_mode = #tpu.pipeline_mode<synchronous>, transform_indices = @transform_9, window_bounds = array<i64: 1, 128>}, {pipeline_mode = #tpu.pipeline_mode<synchronous>, transform_indices = @transform_10, window_bounds = array<i64: 128, 128>}, {pipeline_mode = #tpu.pipeline_mode<synchronous>, transform_indices = @transform_11, window_bounds = array<i64: 1, 128>}, {pipeline_mode = #tpu.pipeline_mode<synchronous>, transform_indices = @transform_12, window_bounds = array<i64: 1, 128>}, {pipeline_mode = #tpu.pipeline_mode<synchronous>, transform_indices = @transform_13, window_bounds = array<i64: 1, 128>}, {transform_indices = @transform_14, window_bounds = array<i64: 1, 8, 128>}]} {
    %c0 = arith.constant 0 : index
    %c0_0 = arith.constant 0 : index
    %c0_1 = arith.constant 0 : index
    %0 = vector.load %arg2[%c0, %c0_0, %c0_1] : memref<1x8x128xf32, #tpu.memory_space<vmem>>, vector<1x8x128xf32>
    %1 = vector.shape_cast %0 : vector<1x8x128xf32> to vector<8x128xf32>
    %c0_2 = arith.constant 0 : index
    %c0_3 = arith.constant 0 : index
    %2 = vector.load %arg3[%c0_2, %c0_3] : memref<8x128xf32, #tpu.memory_space<vmem>>, vector<8x128xf32>
    %3 = arith.addf %1, %2 : vector<8x128xf32>
    %4 = arith.index_cast %arg0 : i32 to index
    %5 = memref.load %arg1[%4] : memref<2xi32, #tpu.memory_space<smem>>
    %6 = tpu.iota {dimensions = array<i32: 1>} : vector<8x8xi32>
    %7 = vector.broadcast %5 : i32 to vector<8x8xi32>
    %8 = arith.cmpi slt, %6, %7 : vector<8x8xi32>
    %cst = arith.constant 0.000000e+00 : f32
    %cst_4 = arith.constant -1.000000e+09 : f32
    %9 = vector.broadcast %cst : f32 to vector<8x8xf32>
    %10 = vector.broadcast %cst_4 : f32 to vector<8x8xf32>
    %11 = arith.select %8, %9, %10 : vector<8x8xi1>, vector<8x8xf32>
    %12 = arith.truncf %3 : vector<8x128xf32> to vector<8x128xbf16>
    %c0_5 = arith.constant 0 : index
    %c0_6 = arith.constant 0 : index
    %13 = vector.load %arg4[%c0_5, %c0_6] : memref<128x128xbf16, #tpu.memory_space<vmem>>, vector<128x128xbf16>
    %cst_7 = arith.constant dense<0.000000e+00> : vector<8x128xf32>
    %14 = tpu.matmul %12, %13, %cst_7 {dimension_numbers = #tpu.dot_dimension_numbers<[1], [0], [0], [1], [0, 0, 1, 1], [], []>} : vector<8x128xbf16>, vector<128x128xbf16>, vector<8x128xf32> -> vector<8x128xf32>
    %c0_8 = arith.constant 0 : index
    %c0_9 = arith.constant 0 : index
    %15 = vector.load %arg5[%c0_8, %c0_9] : memref<1x128xf32, #tpu.memory_space<vmem>>, vector<1x128xf32>
    %16 = vector.broadcast %15 : vector<1x128xf32> to vector<8x128xf32>
    %17 = arith.addf %14, %16 : vector<8x128xf32>
    %18 = vector.extract_strided_slice %17 {offsets = [0, 0], sizes = [8, 8], strides = [1, 1]} : vector<8x128xf32> to vector<8x8xf32>
    %19 = vector.extract_strided_slice %17 {offsets = [0, 32], sizes = [8, 8], strides = [1, 1]} : vector<8x128xf32> to vector<8x8xf32>
    %20 = vector.extract_strided_slice %17 {offsets = [0, 64], sizes = [8, 8], strides = [1, 1]} : vector<8x128xf32> to vector<8x8xf32>
    %21 = tpu.transpose %19, [1, 0] : vector<8x8xf32> -> vector<8x8xf32>
    %cst_10 = arith.constant dense<0.000000e+00> : vector<8x8xf32>
    %22 = tpu.matmul %18, %21, %cst_10 {dimension_numbers = #tpu.dot_dimension_numbers<[1], [0], [0], [1], [0, 0, 1, 1], [], []>} : vector<8x8xf32>, vector<8x8xf32>, vector<8x8xf32> -> vector<8x8xf32>
    %cst_11 = arith.constant 0.353553385 : f32
    %23 = vector.broadcast %cst_11 : f32 to vector<8x8xf32>
    %24 = arith.mulf %22, %23 : vector<8x8xf32>
    %25 = arith.addf %24, %11 : vector<8x8xf32>
    %cst_12 = arith.constant dense<0xFF800000> : vector<8xf32>
    %26 = vector.multi_reduction <maximumf>, %25, %cst_12 [1] : vector<8x8xf32> to vector<8xf32>
    %27 = vector.shape_cast %26 : vector<8xf32> to vector<8x1xf32>
    %28 = vector.broadcast %27 : vector<8x1xf32> to vector<8x8xf32>
    %29 = arith.subf %25, %28 : vector<8x8xf32>
    %30 = math.exp %29 : vector<8x8xf32>
    %cst_13 = arith.constant dense<0.000000e+00> : vector<8xf32>
    %31 = vector.multi_reduction <add>, %30, %cst_13 [1] : vector<8x8xf32> to vector<8xf32>
    %32 = vector.shape_cast %31 : vector<8xf32> to vector<8x1xf32>
    %33 = vector.broadcast %32 : vector<8x1xf32> to vector<8x8xf32>
    %34 = arith.divf %30, %33 : vector<8x8xf32>
    %35 = arith.truncf %34 : vector<8x8xf32> to vector<8x8xbf16>
    %36 = arith.truncf %20 : vector<8x8xf32> to vector<8x8xbf16>
    %cst_14 = arith.constant dense<0.000000e+00> : vector<8x8xf32>
    %37 = tpu.matmul %35, %36, %cst_14 {dimension_numbers = #tpu.dot_dimension_numbers<[1], [0], [0], [1], [0, 0, 1, 1], [], []>} : vector<8x8xbf16>, vector<8x8xbf16>, vector<8x8xf32> -> vector<8x8xf32>
    %38 = vector.extract_strided_slice %17 {offsets = [0, 8], sizes = [8, 8], strides = [1, 1]} : vector<8x128xf32> to vector<8x8xf32>
    %39 = vector.extract_strided_slice %17 {offsets = [0, 40], sizes = [8, 8], strides = [1, 1]} : vector<8x128xf32> to vector<8x8xf32>
    %40 = vector.extract_strided_slice %17 {offsets = [0, 72], sizes = [8, 8], strides = [1, 1]} : vector<8x128xf32> to vector<8x8xf32>
    %41 = tpu.transpose %39, [1, 0] : vector<8x8xf32> -> vector<8x8xf32>
    %cst_15 = arith.constant dense<0.000000e+00> : vector<8x8xf32>
    %42 = tpu.matmul %38, %41, %cst_15 {dimension_numbers = #tpu.dot_dimension_numbers<[1], [0], [0], [1], [0, 0, 1, 1], [], []>} : vector<8x8xf32>, vector<8x8xf32>, vector<8x8xf32> -> vector<8x8xf32>
    %cst_16 = arith.constant 0.353553385 : f32
    %43 = vector.broadcast %cst_16 : f32 to vector<8x8xf32>
    %44 = arith.mulf %42, %43 : vector<8x8xf32>
    %45 = arith.addf %44, %11 : vector<8x8xf32>
    %cst_17 = arith.constant dense<0xFF800000> : vector<8xf32>
    %46 = vector.multi_reduction <maximumf>, %45, %cst_17 [1] : vector<8x8xf32> to vector<8xf32>
    %47 = vector.shape_cast %46 : vector<8xf32> to vector<8x1xf32>
    %48 = vector.broadcast %47 : vector<8x1xf32> to vector<8x8xf32>
    %49 = arith.subf %45, %48 : vector<8x8xf32>
    %50 = math.exp %49 : vector<8x8xf32>
    %cst_18 = arith.constant dense<0.000000e+00> : vector<8xf32>
    %51 = vector.multi_reduction <add>, %50, %cst_18 [1] : vector<8x8xf32> to vector<8xf32>
    %52 = vector.shape_cast %51 : vector<8xf32> to vector<8x1xf32>
    %53 = vector.broadcast %52 : vector<8x1xf32> to vector<8x8xf32>
    %54 = arith.divf %50, %53 : vector<8x8xf32>
    %55 = arith.truncf %54 : vector<8x8xf32> to vector<8x8xbf16>
    %56 = arith.truncf %40 : vector<8x8xf32> to vector<8x8xbf16>
    %cst_19 = arith.constant dense<0.000000e+00> : vector<8x8xf32>
    %57 = tpu.matmul %55, %56, %cst_19 {dimension_numbers = #tpu.dot_dimension_numbers<[1], [0], [0], [1], [0, 0, 1, 1], [], []>} : vector<8x8xbf16>, vector<8x8xbf16>, vector<8x8xf32> -> vector<8x8xf32>
    %58 = vector.extract_strided_slice %17 {offsets = [0, 16], sizes = [8, 8], strides = [1, 1]} : vector<8x128xf32> to vector<8x8xf32>
    %59 = vector.extract_strided_slice %17 {offsets = [0, 48], sizes = [8, 8], strides = [1, 1]} : vector<8x128xf32> to vector<8x8xf32>
    %60 = vector.extract_strided_slice %17 {offsets = [0, 80], sizes = [8, 8], strides = [1, 1]} : vector<8x128xf32> to vector<8x8xf32>
    %61 = tpu.transpose %59, [1, 0] : vector<8x8xf32> -> vector<8x8xf32>
    %cst_20 = arith.constant dense<0.000000e+00> : vector<8x8xf32>
    %62 = tpu.matmul %58, %61, %cst_20 {dimension_numbers = #tpu.dot_dimension_numbers<[1], [0], [0], [1], [0, 0, 1, 1], [], []>} : vector<8x8xf32>, vector<8x8xf32>, vector<8x8xf32> -> vector<8x8xf32>
    %cst_21 = arith.constant 0.353553385 : f32
    %63 = vector.broadcast %cst_21 : f32 to vector<8x8xf32>
    %64 = arith.mulf %62, %63 : vector<8x8xf32>
    %65 = arith.addf %64, %11 : vector<8x8xf32>
    %cst_22 = arith.constant dense<0xFF800000> : vector<8xf32>
    %66 = vector.multi_reduction <maximumf>, %65, %cst_22 [1] : vector<8x8xf32> to vector<8xf32>
    %67 = vector.shape_cast %66 : vector<8xf32> to vector<8x1xf32>
    %68 = vector.broadcast %67 : vector<8x1xf32> to vector<8x8xf32>
    %69 = arith.subf %65, %68 : vector<8x8xf32>
    %70 = math.exp %69 : vector<8x8xf32>
    %cst_23 = arith.constant dense<0.000000e+00> : vector<8xf32>
    %71 = vector.multi_reduction <add>, %70, %cst_23 [1] : vector<8x8xf32> to vector<8xf32>
    %72 = vector.shape_cast %71 : vector<8xf32> to vector<8x1xf32>
    %73 = vector.broadcast %72 : vector<8x1xf32> to vector<8x8xf32>
    %74 = arith.divf %70, %73 : vector<8x8xf32>
    %75 = arith.truncf %74 : vector<8x8xf32> to vector<8x8xbf16>
    %76 = arith.truncf %60 : vector<8x8xf32> to vector<8x8xbf16>
    %cst_24 = arith.constant dense<0.000000e+00> : vector<8x8xf32>
    %77 = tpu.matmul %75, %76, %cst_24 {dimension_numbers = #tpu.dot_dimension_numbers<[1], [0], [0], [1], [0, 0, 1, 1], [], []>} : vector<8x8xbf16>, vector<8x8xbf16>, vector<8x8xf32> -> vector<8x8xf32>
    %78 = vector.extract_strided_slice %17 {offsets = [0, 24], sizes = [8, 8], strides = [1, 1]} : vector<8x128xf32> to vector<8x8xf32>
    %79 = vector.extract_strided_slice %17 {offsets = [0, 56], sizes = [8, 8], strides = [1, 1]} : vector<8x128xf32> to vector<8x8xf32>
    %80 = vector.extract_strided_slice %17 {offsets = [0, 88], sizes = [8, 8], strides = [1, 1]} : vector<8x128xf32> to vector<8x8xf32>
    %81 = tpu.transpose %79, [1, 0] : vector<8x8xf32> -> vector<8x8xf32>
    %cst_25 = arith.constant dense<0.000000e+00> : vector<8x8xf32>
    %82 = tpu.matmul %78, %81, %cst_25 {dimension_numbers = #tpu.dot_dimension_numbers<[1], [0], [0], [1], [0, 0, 1, 1], [], []>} : vector<8x8xf32>, vector<8x8xf32>, vector<8x8xf32> -> vector<8x8xf32>
    %cst_26 = arith.constant 0.353553385 : f32
    %83 = vector.broadcast %cst_26 : f32 to vector<8x8xf32>
    %84 = arith.mulf %82, %83 : vector<8x8xf32>
    %85 = arith.addf %84, %11 : vector<8x8xf32>
    %cst_27 = arith.constant dense<0xFF800000> : vector<8xf32>
    %86 = vector.multi_reduction <maximumf>, %85, %cst_27 [1] : vector<8x8xf32> to vector<8xf32>
    %87 = vector.shape_cast %86 : vector<8xf32> to vector<8x1xf32>
    %88 = vector.broadcast %87 : vector<8x1xf32> to vector<8x8xf32>
    %89 = arith.subf %85, %88 : vector<8x8xf32>
    %90 = math.exp %89 : vector<8x8xf32>
    %cst_28 = arith.constant dense<0.000000e+00> : vector<8xf32>
    %91 = vector.multi_reduction <add>, %90, %cst_28 [1] : vector<8x8xf32> to vector<8xf32>
    %92 = vector.shape_cast %91 : vector<8xf32> to vector<8x1xf32>
    %93 = vector.broadcast %92 : vector<8x1xf32> to vector<8x8xf32>
    %94 = arith.divf %90, %93 : vector<8x8xf32>
    %95 = arith.truncf %94 : vector<8x8xf32> to vector<8x8xbf16>
    %96 = arith.truncf %80 : vector<8x8xf32> to vector<8x8xbf16>
    %cst_29 = arith.constant dense<0.000000e+00> : vector<8x8xf32>
    %97 = tpu.matmul %95, %96, %cst_29 {dimension_numbers = #tpu.dot_dimension_numbers<[1], [0], [0], [1], [0, 0, 1, 1], [], []>} : vector<8x8xbf16>, vector<8x8xbf16>, vector<8x8xf32> -> vector<8x8xf32>
    %98 = tpu.concatenate %37, %57, %77, %97 in 1 : vector<8x8xf32>, vector<8x8xf32>, vector<8x8xf32>, vector<8x8xf32> -> vector<8x32xf32>
    %c0_30 = arith.constant 0 : index
    %c0_31 = arith.constant 0 : index
    %99 = vector.load %arg6[%c0_30, %c0_31] : memref<128x128xbf16, #tpu.memory_space<vmem>>, vector<128x128xbf16>
    %100 = arith.truncf %98 : vector<8x32xf32> to vector<8x32xbf16>
    %101 = vector.extract_strided_slice %99 {offsets = [0, 0], sizes = [32, 128], strides = [1, 1]} : vector<128x128xbf16> to vector<32x128xbf16>
    %cst_32 = arith.constant dense<0.000000e+00> : vector<8x128xf32>
    %102 = tpu.matmul %100, %101, %cst_32 {dimension_numbers = #tpu.dot_dimension_numbers<[1], [0], [0], [1], [0, 0, 1, 1], [], []>} : vector<8x32xbf16>, vector<32x128xbf16>, vector<8x128xf32> -> vector<8x128xf32>
    %c0_33 = arith.constant 0 : index
    %c0_34 = arith.constant 0 : index
    %103 = vector.load %arg7[%c0_33, %c0_34] : memref<1x128xf32, #tpu.memory_space<vmem>>, vector<1x128xf32>
    %104 = vector.broadcast %103 : vector<1x128xf32> to vector<8x128xf32>
    %105 = arith.addf %102, %104 : vector<8x128xf32>
    %106 = arith.addf %105, %3 : vector<8x128xf32>
    %c0_35 = arith.constant 0 : index
    %c0_36 = arith.constant 0 : index
    %107 = vector.load %arg8[%c0_35, %c0_36] : memref<1x128xf32, #tpu.memory_space<vmem>>, vector<1x128xf32>
    %c0_37 = arith.constant 0 : index
    %c0_38 = arith.constant 0 : index
    %108 = vector.load %arg9[%c0_37, %c0_38] : memref<1x128xf32, #tpu.memory_space<vmem>>, vector<1x128xf32>
    %109 = tpu.iota {dimensions = array<i32: 1>} : vector<8x128xi32>
    %c32_i32 = arith.constant 32 : i32
    %110 = vector.broadcast %c32_i32 : i32 to vector<8x128xi32>
    %111 = arith.cmpi slt, %109, %110 : vector<8x128xi32>
    %cst_39 = arith.constant 0.000000e+00 : f32
    %112 = vector.broadcast %cst_39 : f32 to vector<8x128xf32>
    %113 = arith.select %111, %106, %112 : vector<8x128xi1>, vector<8x128xf32>
    %cst_40 = arith.constant dense<0.000000e+00> : vector<8xf32>
    %114 = vector.multi_reduction <add>, %113, %cst_40 [1] : vector<8x128xf32> to vector<8xf32>
    %115 = vector.shape_cast %114 : vector<8xf32> to vector<8x1xf32>
    %cst_41 = arith.constant 3.125000e-02 : f32
    %116 = vector.broadcast %cst_41 : f32 to vector<8x1xf32>
    %117 = arith.mulf %115, %116 : vector<8x1xf32>
    %118 = vector.broadcast %117 : vector<8x1xf32> to vector<8x128xf32>
    %119 = arith.subf %106, %118 : vector<8x128xf32>
    %cst_42 = arith.constant 0.000000e+00 : f32
    %120 = vector.broadcast %cst_42 : f32 to vector<8x128xf32>
    %121 = arith.select %111, %119, %120 : vector<8x128xi1>, vector<8x128xf32>
    %122 = arith.mulf %121, %121 : vector<8x128xf32>
    %cst_43 = arith.constant dense<0.000000e+00> : vector<8xf32>
    %123 = vector.multi_reduction <add>, %122, %cst_43 [1] : vector<8x128xf32> to vector<8xf32>
    %124 = vector.shape_cast %123 : vector<8xf32> to vector<8x1xf32>
    %cst_44 = arith.constant 3.125000e-02 : f32
    %125 = vector.broadcast %cst_44 : f32 to vector<8x1xf32>
    %126 = arith.mulf %124, %125 : vector<8x1xf32>
    %cst_45 = arith.constant 9.99999974E-6 : f32
    %127 = vector.broadcast %cst_45 : f32 to vector<8x1xf32>
    %128 = arith.addf %126, %127 : vector<8x1xf32>
    %129 = math.rsqrt %128 : vector<8x1xf32>
    %130 = vector.broadcast %129 : vector<8x1xf32> to vector<8x128xf32>
    %131 = arith.mulf %121, %130 : vector<8x128xf32>
    %132 = vector.broadcast %107 : vector<1x128xf32> to vector<8x128xf32>
    %133 = arith.mulf %131, %132 : vector<8x128xf32>
    %134 = vector.broadcast %108 : vector<1x128xf32> to vector<8x128xf32>
    %135 = arith.addf %133, %134 : vector<8x128xf32>
    %136 = arith.truncf %135 : vector<8x128xf32> to vector<8x128xbf16>
    %c0_46 = arith.constant 0 : index
    %c0_47 = arith.constant 0 : index
    %137 = vector.load %arg10[%c0_46, %c0_47] : memref<128x128xbf16, #tpu.memory_space<vmem>>, vector<128x128xbf16>
    %cst_48 = arith.constant dense<0.000000e+00> : vector<8x128xf32>
    %138 = tpu.matmul %136, %137, %cst_48 {dimension_numbers = #tpu.dot_dimension_numbers<[1], [0], [0], [1], [0, 0, 1, 1], [], []>} : vector<8x128xbf16>, vector<128x128xbf16>, vector<8x128xf32> -> vector<8x128xf32>
    %c0_49 = arith.constant 0 : index
    %c0_50 = arith.constant 0 : index
    %139 = vector.load %arg11[%c0_49, %c0_50] : memref<1x128xf32, #tpu.memory_space<vmem>>, vector<1x128xf32>
    %140 = vector.broadcast %139 : vector<1x128xf32> to vector<8x128xf32>
    %141 = arith.addf %138, %140 : vector<8x128xf32>
    %cst_51 = arith.constant 0.000000e+00 : f32
    %142 = vector.broadcast %cst_51 : f32 to vector<8x128xf32>
    %143 = arith.maximumf %141, %142 : vector<8x128xf32>
    %144 = arith.truncf %143 : vector<8x128xf32> to vector<8x128xbf16>
    %c0_52 = arith.constant 0 : index
    %c0_53 = arith.constant 0 : index
    %145 = vector.load %arg12[%c0_52, %c0_53] : memref<128x128xbf16, #tpu.memory_space<vmem>>, vector<128x128xbf16>
    %cst_54 = arith.constant dense<0.000000e+00> : vector<8x128xf32>
    %146 = tpu.matmul %144, %145, %cst_54 {dimension_numbers = #tpu.dot_dimension_numbers<[1], [0], [0], [1], [0, 0, 1, 1], [], []>} : vector<8x128xbf16>, vector<128x128xbf16>, vector<8x128xf32> -> vector<8x128xf32>
    %c0_55 = arith.constant 0 : index
    %c0_56 = arith.constant 0 : index
    %147 = vector.load %arg13[%c0_55, %c0_56] : memref<1x128xf32, #tpu.memory_space<vmem>>, vector<1x128xf32>
    %148 = vector.broadcast %147 : vector<1x128xf32> to vector<8x128xf32>
    %149 = arith.addf %146, %148 : vector<8x128xf32>
    %150 = arith.addf %149, %135 : vector<8x128xf32>
    %c0_57 = arith.constant 0 : index
    %c0_58 = arith.constant 0 : index
    %151 = vector.load %arg14[%c0_57, %c0_58] : memref<1x128xf32, #tpu.memory_space<vmem>>, vector<1x128xf32>
    %c0_59 = arith.constant 0 : index
    %c0_60 = arith.constant 0 : index
    %152 = vector.load %arg15[%c0_59, %c0_60] : memref<1x128xf32, #tpu.memory_space<vmem>>, vector<1x128xf32>
    %153 = tpu.iota {dimensions = array<i32: 1>} : vector<8x128xi32>
    %c32_i32_61 = arith.constant 32 : i32
    %154 = vector.broadcast %c32_i32_61 : i32 to vector<8x128xi32>
    %155 = arith.cmpi slt, %153, %154 : vector<8x128xi32>
    %cst_62 = arith.constant 0.000000e+00 : f32
    %156 = vector.broadcast %cst_62 : f32 to vector<8x128xf32>
    %157 = arith.select %155, %150, %156 : vector<8x128xi1>, vector<8x128xf32>
    %cst_63 = arith.constant dense<0.000000e+00> : vector<8xf32>
    %158 = vector.multi_reduction <add>, %157, %cst_63 [1] : vector<8x128xf32> to vector<8xf32>
    %159 = vector.shape_cast %158 : vector<8xf32> to vector<8x1xf32>
    %cst_64 = arith.constant 3.125000e-02 : f32
    %160 = vector.broadcast %cst_64 : f32 to vector<8x1xf32>
    %161 = arith.mulf %159, %160 : vector<8x1xf32>
    %162 = vector.broadcast %161 : vector<8x1xf32> to vector<8x128xf32>
    %163 = arith.subf %150, %162 : vector<8x128xf32>
    %cst_65 = arith.constant 0.000000e+00 : f32
    %164 = vector.broadcast %cst_65 : f32 to vector<8x128xf32>
    %165 = arith.select %155, %163, %164 : vector<8x128xi1>, vector<8x128xf32>
    %166 = arith.mulf %165, %165 : vector<8x128xf32>
    %cst_66 = arith.constant dense<0.000000e+00> : vector<8xf32>
    %167 = vector.multi_reduction <add>, %166, %cst_66 [1] : vector<8x128xf32> to vector<8xf32>
    %168 = vector.shape_cast %167 : vector<8xf32> to vector<8x1xf32>
    %cst_67 = arith.constant 3.125000e-02 : f32
    %169 = vector.broadcast %cst_67 : f32 to vector<8x1xf32>
    %170 = arith.mulf %168, %169 : vector<8x1xf32>
    %cst_68 = arith.constant 9.99999974E-6 : f32
    %171 = vector.broadcast %cst_68 : f32 to vector<8x1xf32>
    %172 = arith.addf %170, %171 : vector<8x1xf32>
    %173 = math.rsqrt %172 : vector<8x1xf32>
    %174 = vector.broadcast %173 : vector<8x1xf32> to vector<8x128xf32>
    %175 = arith.mulf %165, %174 : vector<8x128xf32>
    %176 = vector.broadcast %151 : vector<1x128xf32> to vector<8x128xf32>
    %177 = arith.mulf %175, %176 : vector<8x128xf32>
    %178 = vector.broadcast %152 : vector<1x128xf32> to vector<8x128xf32>
    %179 = arith.addf %177, %178 : vector<8x128xf32>
    %c0_69 = arith.constant 0 : index
    %c0_70 = arith.constant 0 : index
    %c0_71 = arith.constant 0 : index
    %180 = vector.load %arg16[%c0_69, %c0_70, %c0_71] : memref<1x8x128xf32, #tpu.memory_space<vmem>>, vector<1x8x128xf32>
    %181 = vector.shape_cast %180 : vector<1x8x128xf32> to vector<8x128xf32>
    %182 = vector.shape_cast %179 : vector<8x128xf32> to vector<1x8x128xf32>
    tpu.vector_store %arg16[%c0_69, %c0_70, %c0_71], %182 {strides = array<i32>} : memref<1x8x128xf32, #tpu.memory_space<vmem>>, vector<1x8x128xf32>,
    return
  }
  func.func @transform_0(%arg0: i32, %arg1: memref<2xi32, #tpu.memory_space<smem>>) -> (i32, i32, i32) {
    %c0_i32 = arith.constant 0 : i32
    %c0_i32_0 = arith.constant 0 : i32
    %c0_i32_1 = arith.constant 0 : i32
    return %arg0, %c0_i32, %c0_i32_0 : i32, i32, i32
  }
  func.func @transform_1(%arg0: i32, %arg1: memref<2xi32, #tpu.memory_space<smem>>) -> (i32, i32) {
    %c0_i32 = arith.constant 0 : i32
    %c0_i32_0 = arith.constant 0 : i32
    %c0_i32_1 = arith.constant 0 : i32
    return %c0_i32, %c0_i32_0 : i32, i32
  }
  func.func @transform_2(%arg0: i32, %arg1: memref<2xi32, #tpu.memory_space<smem>>) -> (i32, i32) {
    %c0_i32 = arith.constant 0 : i32
    %c0_i32_0 = arith.constant 0 : i32
    %c0_i32_1 = arith.constant 0 : i32
    return %c0_i32, %c0_i32_0 : i32, i32
  }
  func.func @transform_3(%arg0: i32, %arg1: memref<2xi32, #tpu.memory_space<smem>>) -> (i32, i32) {
    %c0_i32 = arith.constant 0 : i32
    %c0_i32_0 = arith.constant 0 : i32
    %c0_i32_1 = arith.constant 0 : i32
    return %c0_i32, %c0_i32_0 : i32, i32
  }
  func.func @transform_4(%arg0: i32, %arg1: memref<2xi32, #tpu.memory_space<smem>>) -> (i32, i32) {
    %c0_i32 = arith.constant 0 : i32
    %c0_i32_0 = arith.constant 0 : i32
    %c0_i32_1 = arith.constant 0 : i32
    return %c0_i32, %c0_i32_0 : i32, i32
  }
  func.func @transform_5(%arg0: i32, %arg1: memref<2xi32, #tpu.memory_space<smem>>) -> (i32, i32) {
    %c0_i32 = arith.constant 0 : i32
    %c0_i32_0 = arith.constant 0 : i32
    %c0_i32_1 = arith.constant 0 : i32
    return %c0_i32, %c0_i32_0 : i32, i32
  }
  func.func @transform_6(%arg0: i32, %arg1: memref<2xi32, #tpu.memory_space<smem>>) -> (i32, i32) {
    %c0_i32 = arith.constant 0 : i32
    %c0_i32_0 = arith.constant 0 : i32
    %c0_i32_1 = arith.constant 0 : i32
    return %c0_i32, %c0_i32_0 : i32, i32
  }
  func.func @transform_7(%arg0: i32, %arg1: memref<2xi32, #tpu.memory_space<smem>>) -> (i32, i32) {
    %c0_i32 = arith.constant 0 : i32
    %c0_i32_0 = arith.constant 0 : i32
    %c0_i32_1 = arith.constant 0 : i32
    return %c0_i32, %c0_i32_0 : i32, i32
  }
  func.func @transform_8(%arg0: i32, %arg1: memref<2xi32, #tpu.memory_space<smem>>) -> (i32, i32) {
    %c0_i32 = arith.constant 0 : i32
    %c0_i32_0 = arith.constant 0 : i32
    %c0_i32_1 = arith.constant 0 : i32
    return %c0_i32, %c0_i32_0 : i32, i32
  }
  func.func @transform_9(%arg0: i32, %arg1: memref<2xi32, #tpu.memory_space<smem>>) -> (i32, i32) {
    %c0_i32 = arith.constant 0 : i32
    %c0_i32_0 = arith.constant 0 : i32
    %c0_i32_1 = arith.constant 0 : i32
    return %c0_i32, %c0_i32_0 : i32, i32
  }
  func.func @transform_10(%arg0: i32, %arg1: memref<2xi32, #tpu.memory_space<smem>>) -> (i32, i32) {
    %c0_i32 = arith.constant 0 : i32
    %c0_i32_0 = arith.constant 0 : i32
    %c0_i32_1 = arith.constant 0 : i32
    return %c0_i32, %c0_i32_0 : i32, i32
  }
  func.func @transform_11(%arg0: i32, %arg1: memref<2xi32, #tpu.memory_space<smem>>) -> (i32, i32) {
    %c0_i32 = arith.constant 0 : i32
    %c0_i32_0 = arith.constant 0 : i32
    %c0_i32_1 = arith.constant 0 : i32
    return %c0_i32, %c0_i32_0 : i32, i32
  }
  func.func @transform_12(%arg0: i32, %arg1: memref<2xi32, #tpu.memory_space<smem>>) -> (i32, i32) {
    %c0_i32 = arith.constant 0 : i32
    %c0_i32_0 = arith.constant 0 : i32
    %c0_i32_1 = arith.constant 0 : i32
    return %c0_i32, %c0_i32_0 : i32, i32
  }
  func.func @transform_13(%arg0: i32, %arg1: memref<2xi32, #tpu.memory_space<smem>>) -> (i32, i32) {
    %c0_i32 = arith.constant 0 : i32
    %c0_i32_0 = arith.constant 0 : i32
    %c0_i32_1 = arith.constant 0 : i32
    return %c0_i32, %c0_i32_0 : i32, i32
  }
  func.func @transform_14(%arg0: i32, %arg1: memref<2xi32, #tpu.memory_space<smem>>) -> (i32, i32, i32) {
    %c0_i32 = arith.constant 0 : i32
    %c0_i32_0 = arith.constant 0 : i32
    %c0_i32_1 = arith.constant 0 : i32
    return %arg0, %c0_i32, %c0_i32_0 : i32, i32, i32
  }
}

module attributes {stable_mosaic.version = 11 : i64} {
  func.func @_matmul_kernel(%arg0: i32, %arg1: memref<16x128xf32, #tpu.memory_space<vmem>>, %arg2: memref<128x128xbf16, #tpu.memory_space<vmem>>, %arg3: memref<1x128xf32, #tpu.memory_space<vmem>>, %arg4: memref<16x128xf32, #tpu.memory_space<vmem>>) attributes {dimension_semantics = [#tpu.dimension_semantics<parallel>], iteration_bounds = array<i64: 1>, scalar_prefetch = 0 : i64, scratch_operands = 0 : i64, tpu.core_type = #tpu.core_type<tc>, window_params = [{transform_indices = @transform_0, window_bounds = array<i64: 16, 128>}, {pipeline_mode = #tpu.pipeline_mode<synchronous>, transform_indices = @transform_1, window_bounds = array<i64: 128, 128>}, {pipeline_mode = #tpu.pipeline_mode<synchronous>, transform_indices = @transform_2, window_bounds = array<i64: 1, 128>}, {transform_indices = @transform_3, window_bounds = array<i64: 16, 128>}]} {
    %c0 = arith.constant 0 : index
    %c0_0 = arith.constant 0 : index
    %0 = vector.load %arg1[%c0, %c0_0] : memref<16x128xf32, #tpu.memory_space<vmem>>, vector<16x128xf32>
    %1 = arith.truncf %0 : vector<16x128xf32> to vector<16x128xbf16>
    %c0_1 = arith.constant 0 : index
    %c0_2 = arith.constant 0 : index
    %2 = vector.load %arg2[%c0_1, %c0_2] : memref<128x128xbf16, #tpu.memory_space<vmem>>, vector<128x128xbf16>
    %cst = arith.constant dense<0.000000e+00> : vector<16x128xf32>
    %3 = tpu.matmul %1, %2, %cst {dimension_numbers = #tpu.dot_dimension_numbers<[1], [0], [0], [1], [0, 0, 1, 1], [], []>} : vector<16x128xbf16>, vector<128x128xbf16>, vector<16x128xf32> -> vector<16x128xf32>
    %c0_3 = arith.constant 0 : index
    %c0_4 = arith.constant 0 : index
    %4 = vector.load %arg3[%c0_3, %c0_4] : memref<1x128xf32, #tpu.memory_space<vmem>>, vector<1x128xf32>
    %5 = vector.broadcast %4 : vector<1x128xf32> to vector<16x128xf32>
    %6 = arith.addf %3, %5 : vector<16x128xf32>
    %cst_5 = arith.constant 0.000000e+00 : f32
    %7 = vector.broadcast %cst_5 : f32 to vector<16x128xf32>
    %8 = arith.maximumf %6, %7 : vector<16x128xf32>
    %c0_6 = arith.constant 0 : index
    %c0_7 = arith.constant 0 : index
    %9 = vector.load %arg4[%c0_6, %c0_7] : memref<16x128xf32, #tpu.memory_space<vmem>>, vector<16x128xf32>
    tpu.vector_store %arg4[%c0_6, %c0_7], %8 {strides = array<i32>} : memref<16x128xf32, #tpu.memory_space<vmem>>, vector<16x128xf32>,
    return
  }
  func.func @transform_0(%arg0: i32) -> (i32, i32) {
    %c0_i32 = arith.constant 0 : i32
    %c0_i32_0 = arith.constant 0 : i32
    return %arg0, %c0_i32 : i32, i32
  }
  func.func @transform_1(%arg0: i32) -> (i32, i32) {
    %c0_i32 = arith.constant 0 : i32
    %c0_i32_0 = arith.constant 0 : i32
    %c0_i32_1 = arith.constant 0 : i32
    return %c0_i32, %c0_i32_0 : i32, i32
  }
  func.func @transform_2(%arg0: i32) -> (i32, i32) {
    %c0_i32 = arith.constant 0 : i32
    %c0_i32_0 = arith.constant 0 : i32
    %c0_i32_1 = arith.constant 0 : i32
    return %c0_i32, %c0_i32_0 : i32, i32
  }
  func.func @transform_3(%arg0: i32) -> (i32, i32) {
    %c0_i32 = arith.constant 0 : i32
    %c0_i32_0 = arith.constant 0 : i32
    return %arg0, %c0_i32 : i32, i32
  }
}

module attributes {stable_mosaic.version = 11 : i64} {
  func.func @_dec_conv_kernel(%arg0: i32, %arg1: memref<1x8x128xf32, #tpu.memory_space<vmem>>, %arg2: memref<3x128x128xbf16, #tpu.memory_space<vmem>>, %arg3: memref<1x128xf32, #tpu.memory_space<vmem>>, %arg4: memref<1x8x128xf32, #tpu.memory_space<vmem>>) attributes {dimension_semantics = [#tpu.dimension_semantics<parallel>], iteration_bounds = array<i64: 2>, scalar_prefetch = 0 : i64, scratch_operands = 0 : i64, tpu.core_type = #tpu.core_type<tc>, window_params = [{transform_indices = @transform_0, window_bounds = array<i64: 1, 8, 128>}, {pipeline_mode = #tpu.pipeline_mode<synchronous>, transform_indices = @transform_1, window_bounds = array<i64: 3, 128, 128>}, {pipeline_mode = #tpu.pipeline_mode<synchronous>, transform_indices = @transform_2, window_bounds = array<i64: 1, 128>}, {transform_indices = @transform_3, window_bounds = array<i64: 1, 8, 128>}]} {
    %c0 = arith.constant 0 : index
    %c0_0 = arith.constant 0 : index
    %c0_1 = arith.constant 0 : index
    %0 = vector.load %arg1[%c0, %c0_0, %c0_1] : memref<1x8x128xf32, #tpu.memory_space<vmem>>, vector<1x8x128xf32>
    %1 = vector.shape_cast %0 : vector<1x8x128xf32> to vector<8x128xf32>
    %2 = tpu.iota {dimensions = array<i32: 0>} : vector<8x128xi32>
    %c0_i32 = arith.constant 0 : i32
    %3 = vector.broadcast %c0_i32 : i32 to vector<8x128xi32>
    %4 = arith.cmpi eq, %2, %3 : vector<8x128xi32>
    %c1_i32 = arith.constant 1 : i32
    %5 = tpu.dynamic_rotate %1 by %c1_i32 dim 0 : vector<8x128xf32>, i32 -> vector<8x128xf32>
    %cst = arith.constant 0.000000e+00 : f32
    %6 = vector.broadcast %cst : f32 to vector<8x128xf32>
    %7 = arith.select %4, %6, %5 : vector<8x128xi1>, vector<8x128xf32>
    %c7_i32 = arith.constant 7 : i32
    %8 = vector.broadcast %c7_i32 : i32 to vector<8x128xi32>
    %9 = arith.cmpi eq, %2, %8 : vector<8x128xi32>
    %c7_i32_2 = arith.constant 7 : i32
    %10 = tpu.dynamic_rotate %1 by %c7_i32_2 dim 0 : vector<8x128xf32>, i32 -> vector<8x128xf32>
    %cst_3 = arith.constant 0.000000e+00 : f32
    %11 = vector.broadcast %cst_3 : f32 to vector<8x128xf32>
    %12 = arith.select %9, %11, %10 : vector<8x128xi1>, vector<8x128xf32>
    %13 = arith.truncf %7 : vector<8x128xf32> to vector<8x128xbf16>
    %c0_4 = arith.constant 0 : index
    %c0_5 = arith.constant 0 : index
    %c0_6 = arith.constant 0 : index
    %14 = vector.load %arg2[%c0_4, %c0_5, %c0_6] : memref<3x128x128xbf16, #tpu.memory_space<vmem>>, vector<1x128x128xbf16>
    %15 = vector.shape_cast %14 : vector<1x128x128xbf16> to vector<128x128xbf16>
    %cst_7 = arith.constant dense<0.000000e+00> : vector<8x128xf32>
    %16 = tpu.matmul %13, %15, %cst_7 {dimension_numbers = #tpu.dot_dimension_numbers<[1], [0], [0], [1], [0, 0, 1, 1], [], []>} : vector<8x128xbf16>, vector<128x128xbf16>, vector<8x128xf32> -> vector<8x128xf32>
    %17 = arith.truncf %1 : vector<8x128xf32> to vector<8x128xbf16>
    %c1 = arith.constant 1 : index
    %c0_8 = arith.constant 0 : index
    %c0_9 = arith.constant 0 : index
    %18 = vector.load %arg2[%c1, %c0_8, %c0_9] : memref<3x128x128xbf16, #tpu.memory_space<vmem>>, vector<1x128x128xbf16>
    %19 = vector.shape_cast %18 : vector<1x128x128xbf16> to vector<128x128xbf16>
    %cst_10 = arith.constant dense<0.000000e+00> : vector<8x128xf32>
    %20 = tpu.matmul %17, %19, %cst_10 {dimension_numbers = #tpu.dot_dimension_numbers<[1], [0], [0], [1], [0, 0, 1, 1], [], []>} : vector<8x128xbf16>, vector<128x128xbf16>, vector<8x128xf32> -> vector<8x128xf32>
    %21 = arith.addf %16, %20 : vector<8x128xf32>
    %22 = arith.truncf %12 : vector<8x128xf32> to vector<8x128xbf16>
    %c2 = arith.constant 2 : index
    %c0_11 = arith.constant 0 : index
    %c0_12 = arith.constant 0 : index
    %23 = vector.load %arg2[%c2, %c0_11, %c0_12] : memref<3x128x128xbf16, #tpu.memory_space<vmem>>, vector<1x128x128xbf16>
    %24 = vector.shape_cast %23 : vector<1x128x128xbf16> to vector<128x128xbf16>
    %cst_13 = arith.constant dense<0.000000e+00> : vector<8x128xf32>
    %25 = tpu.matmul %22, %24, %cst_13 {dimension_numbers = #tpu.dot_dimension_numbers<[1], [0], [0], [1], [0, 0, 1, 1], [], []>} : vector<8x128xbf16>, vector<128x128xbf16>, vector<8x128xf32> -> vector<8x128xf32>
    %26 = arith.addf %21, %25 : vector<8x128xf32>
    %c0_14 = arith.constant 0 : index
    %c0_15 = arith.constant 0 : index
    %27 = vector.load %arg3[%c0_14, %c0_15] : memref<1x128xf32, #tpu.memory_space<vmem>>, vector<1x128xf32>
    %28 = vector.broadcast %27 : vector<1x128xf32> to vector<8x128xf32>
    %29 = arith.addf %26, %28 : vector<8x128xf32>
    %cst_16 = arith.constant 0.000000e+00 : f32
    %30 = vector.broadcast %cst_16 : f32 to vector<8x128xf32>
    %31 = arith.maximumf %29, %30 : vector<8x128xf32>
    %32 = arith.addf %1, %31 : vector<8x128xf32>
    %c0_17 = arith.constant 0 : index
    %c0_18 = arith.constant 0 : index
    %c0_19 = arith.constant 0 : index
    %33 = vector.load %arg4[%c0_17, %c0_18, %c0_19] : memref<1x8x128xf32, #tpu.memory_space<vmem>>, vector<1x8x128xf32>
    %34 = vector.shape_cast %33 : vector<1x8x128xf32> to vector<8x128xf32>
    %35 = vector.shape_cast %32 : vector<8x128xf32> to vector<1x8x128xf32>
    tpu.vector_store %arg4[%c0_17, %c0_18, %c0_19], %35 {strides = array<i32>} : memref<1x8x128xf32, #tpu.memory_space<vmem>>, vector<1x8x128xf32>,
    return
  }
  func.func @transform_0(%arg0: i32) -> (i32, i32, i32) {
    %c0_i32 = arith.constant 0 : i32
    %c0_i32_0 = arith.constant 0 : i32
    %c0_i32_1 = arith.constant 0 : i32
    return %arg0, %c0_i32, %c0_i32_0 : i32, i32, i32
  }
  func.func @transform_1(%arg0: i32) -> (i32, i32, i32) {
    %c0_i32 = arith.constant 0 : i32
    %c0_i32_0 = arith.constant 0 : i32
    %c0_i32_1 = arith.constant 0 : i32
    %c0_i32_2 = arith.constant 0 : i32
    return %c0_i32, %c0_i32_0, %c0_i32_1 : i32, i32, i32
  }
  func.func @transform_2(%arg0: i32) -> (i32, i32) {
    %c0_i32 = arith.constant 0 : i32
    %c0_i32_0 = arith.constant 0 : i32
    %c0_i32_1 = arith.constant 0 : i32
    return %c0_i32, %c0_i32_0 : i32, i32
  }
  func.func @transform_3(%arg0: i32) -> (i32, i32, i32) {
    %c0_i32 = arith.constant 0 : i32
    %c0_i32_0 = arith.constant 0 : i32
    %c0_i32_1 = arith.constant 0 : i32
    return %arg0, %c0_i32, %c0_i32_0 : i32, i32, i32
  }
}

module attributes {stable_mosaic.version = 11 : i64} {
  func.func @_matmul_kernel(%arg0: i32, %arg1: memref<16x128xf32, #tpu.memory_space<vmem>>, %arg2: memref<128x128xbf16, #tpu.memory_space<vmem>>, %arg3: memref<1x128xf32, #tpu.memory_space<vmem>>, %arg4: memref<16x128xf32, #tpu.memory_space<vmem>>) attributes {dimension_semantics = [#tpu.dimension_semantics<parallel>], iteration_bounds = array<i64: 1>, scalar_prefetch = 0 : i64, scratch_operands = 0 : i64, tpu.core_type = #tpu.core_type<tc>, window_params = [{transform_indices = @transform_0, window_bounds = array<i64: 16, 128>}, {pipeline_mode = #tpu.pipeline_mode<synchronous>, transform_indices = @transform_1, window_bounds = array<i64: 128, 128>}, {pipeline_mode = #tpu.pipeline_mode<synchronous>, transform_indices = @transform_2, window_bounds = array<i64: 1, 128>}, {transform_indices = @transform_3, window_bounds = array<i64: 16, 128>}]} {
    %c0 = arith.constant 0 : index
    %c0_0 = arith.constant 0 : index
    %0 = vector.load %arg1[%c0, %c0_0] : memref<16x128xf32, #tpu.memory_space<vmem>>, vector<16x128xf32>
    %1 = arith.truncf %0 : vector<16x128xf32> to vector<16x128xbf16>
    %c0_1 = arith.constant 0 : index
    %c0_2 = arith.constant 0 : index
    %2 = vector.load %arg2[%c0_1, %c0_2] : memref<128x128xbf16, #tpu.memory_space<vmem>>, vector<128x128xbf16>
    %cst = arith.constant dense<0.000000e+00> : vector<16x128xf32>
    %3 = tpu.matmul %1, %2, %cst {dimension_numbers = #tpu.dot_dimension_numbers<[1], [0], [0], [1], [0, 0, 1, 1], [], []>} : vector<16x128xbf16>, vector<128x128xbf16>, vector<16x128xf32> -> vector<16x128xf32>
    %c0_3 = arith.constant 0 : index
    %c0_4 = arith.constant 0 : index
    %4 = vector.load %arg3[%c0_3, %c0_4] : memref<1x128xf32, #tpu.memory_space<vmem>>, vector<1x128xf32>
    %5 = vector.broadcast %4 : vector<1x128xf32> to vector<16x128xf32>
    %6 = arith.addf %3, %5 : vector<16x128xf32>
    %c0_5 = arith.constant 0 : index
    %c0_6 = arith.constant 0 : index
    %7 = vector.load %arg4[%c0_5, %c0_6] : memref<16x128xf32, #tpu.memory_space<vmem>>, vector<16x128xf32>
    tpu.vector_store %arg4[%c0_5, %c0_6], %6 {strides = array<i32>} : memref<16x128xf32, #tpu.memory_space<vmem>>, vector<16x128xf32>,
    return
  }
  func.func @transform_0(%arg0: i32) -> (i32, i32) {
    %c0_i32 = arith.constant 0 : i32
    %c0_i32_0 = arith.constant 0 : i32
    return %arg0, %c0_i32 : i32, i32
  }
  func.func @transform_1(%arg0: i32) -> (i32, i32) {
    %c0_i32 = arith.constant 0 : i32
    %c0_i32_0 = arith.constant 0 : i32
    %c0_i32_1 = arith.constant 0 : i32
    return %c0_i32, %c0_i32_0 : i32, i32
  }
  func.func @transform_2(%arg0: i32) -> (i32, i32) {
    %c0_i32 = arith.constant 0 : i32
    %c0_i32_0 = arith.constant 0 : i32
    %c0_i32_1 = arith.constant 0 : i32
    return %c0_i32, %c0_i32_0 : i32, i32
  }
  func.func @transform_3(%arg0: i32) -> (i32, i32) {
    %c0_i32 = arith.constant 0 : i32
    %c0_i32_0 = arith.constant 0 : i32
    return %arg0, %c0_i32 : i32, i32
  }
}

</mosaic_0001>

<bundles_post_ra>
// kernel: _lambda_.7
= control target key start
LH: loop header
LB: loop body
LE: loop exit
PB: predicated region body
PF: predicated region fallthrough
CT: control target
= control target key end

     0   :  { %vm406_vm0 = vcmask 130048   ;;  %vm813_vm1 = vcmask 1041409   ;;  %vm815_vm2 = vcmask 1042434   ;;  %vm817_vm3 = vcmask 1043459   ;;  %s2234_s0 = inlined_call_operand.vmem [shape: f32[16,64,16], index: 0, kind: input, shape index: {}]   ;;  %s2235_s1 = inlined_call_operand.vmem [shape: f32[1,1,16], index: 1, kind: input, shape index: {}]   ;;  %s2236_s3 = inlined_call_operand.vmem [shape: f32[1,128], index: 3, kind: input, shape index: {}]   ;;  %s2237_s2 = inlined_call_operand.vmem [shape: bf16[16,128], index: 2, kind: input, shape index: {}]   ;;  %s2238_s4 = inlined_call_operand.vmem [shape: f32[16,128], index: 4, kind: output, shape index: {}]  }
   0x1   :  { %v18_v0 = vld [vmem:[%s2234_s0] sm:$0xff]  ;;  %v19_v1 = vld [vmem:[%s2234_s0 + $0x8] sm:$0xff]  ;;  %v20_v2 = vld [vmem:[%s2234_s0 + $0x10] sm:$0xff]  ;;  %vm819_vm4 = vcmask 1044484   ;;  %vm821_vm5 = vcmask 1045509   ;;  %vm823_vm6 = vcmask 1046534  }
   0x2   :  { %v21_v3 = vld [vmem:[%s2234_s0 + $0x18] sm:$0xff]  ;;  %v22_v4 = vld [vmem:[%s2234_s0 + $0x20] sm:$0xff]  ;;  %v23_v5 = vld [vmem:[%s2234_s0 + $0x28] sm:$0xff]  ;;  %vm825_vm7 = vcmask 1047559  }
   0x3   :  { %v24_v6 = vld [vmem:[%s2234_s0 + $0x30] sm:$0xff]  ;;  %v25_v7 = vld [vmem:[%s2234_s0 + $0x38] sm:$0xff]  ;;  %v26_v8 = vld [vmem:[%s2234_s0 + $0x40] sm:$0xff] }
   0x4   :  { %v27_v9 = vld [vmem:[%s2234_s0 + $0x48] sm:$0xff]  ;;  %v930_v10 = vld [vmem:[%s2235_s1] ss:$0 sm:$0xff]  ;;  %v28_v11 = vld [vmem:[%s2234_s0 + $0x50] sm:$0xff] }
   0x5   :  { %v29_v12 = vld [vmem:[%s2234_s0 + $0x58] sm:$0xff]  ;;  %v30_v13 = vld [vmem:[%s2234_s0 + $0x60] sm:$0xff]  ;;  %v31_v14 = vld [vmem:[%s2234_s0 + $0x68] sm:$0xff]  ;;  %v969_v23 = vadd.f32 %v930_v10, %v18_v0  ;;  %v972_v24 = vadd.f32 %v930_v10, %v19_v1  ;;  %v987_v29 = vadd.f32 %v930_v10, %v20_v2  ;;  %v990_v30 = vadd.f32 %v930_v10, %v21_v3 }
   0x6   :  { %v32_v15 = vld [vmem:[%s2234_s0 + $0x70] sm:$0xff]  ;;  %v33_v16 = vld [vmem:[%s2234_s0 + $0x78] sm:$0xff]  ;;  %v34_v17 = vld [vmem:[%s2234_s0 + $0x80] sm:$0xff]  ;;  %v993_v31 = vadd.f32 %v930_v10, %v22_v4  ;;  %v996_v32 = vadd.f32 %v930_v10, %v23_v5  ;;  %v1011_v37 = vadd.f32 %v930_v10, %v24_v6  ;;  %v1014_v38 = vadd.f32 %v930_v10, %v25_v7 }
   0x7   :  { %v35_v18 = vld [vmem:[%s2234_s0 + $0x88] sm:$0xff]  ;;  %v36_v19 = vld [vmem:[%s2234_s0 + $0x90] sm:$0xff]  ;;  %v37_v20 = vld [vmem:[%s2234_s0 + $0x98] sm:$0xff]  ;;  %v1017_v39 = vadd.f32 %v930_v10, %v26_v8  ;;  %v1020_v40 = vadd.f32 %v930_v10, %v27_v9  ;;  %v1035_v45 = vadd.f32 %v930_v10, %v28_v11  ;;  %v1038_v46 = vadd.f32 %v930_v10, %v29_v12 }
   0x8   :  { %v38_v21 = vld [vmem:[%s2234_s0 + $0xa0] sm:$0xff]  ;;  %v39_v22 = vld [vmem:[%s2234_s0 + $0xa8] sm:$0xff]  ;;  %v40_v25 = vld [vmem:[%s2234_s0 + $0xb0] sm:$0xff]  ;;  %v1041_v47 = vadd.f32 %v930_v10, %v30_v13  ;;  %v1044_v48 = vadd.f32 %v930_v10, %v31_v14  ;;  %v1059_v53 = vadd.f32 %v930_v10, %v32_v15  ;;  %v1062_v54 = vadd.f32 %v930_v10, %v33_v16 }
   0x9   :  { %v41_v26 = vld [vmem:[%s2234_s0 + $0xb8] sm:$0xff]  ;;  %v42_v27 = vld [vmem:[%s2234_s0 + $0xc0] sm:$0xff]  ;;  %v43_v28 = vld [vmem:[%s2234_s0 + $0xc8] sm:$0xff]  ;;  %v1065_v55 = vadd.f32 %v930_v10, %v34_v17  ;;  %v1068_v56 = vadd.f32 %v930_v10, %v35_v18  ;;  %v1083_v61 = vadd.f32 %v930_v10, %v36_v19  ;;  %v1086_v62 = vadd.f32 %v930_v10, %v37_v20 }
   0xa   :  { %v44_v33 = vld [vmem:[%s2234_s0 + $0xd0] sm:$0xff]  ;;  %v45_v34 = vld [vmem:[%s2234_s0 + $0xd8] sm:$0xff]  ;;  %v46_v35 = vld [vmem:[%s2234_s0 + $0xe0] sm:$0xff]  ;;  %v1089_v63 = vadd.f32 %v930_v10, %v38_v21  ;;  %v1092_v0 = vadd.f32 %v930_v10, %v39_v22  ;;  %v1107_v5 = vadd.f32 %v930_v10, %v40_v25  ;;  %v1110_v6 = vadd.f32 %v930_v10, %v41_v26 }
   0xb   :  { %v47_v36 = vld [vmem:[%s2234_s0 + $0xe8] sm:$0xff]  ;;  %v48_v41 = vld [vmem:[%s2234_s0 + $0xf0] sm:$0xff]  ;;  %v49_v42 = vld [vmem:[%s2234_s0 + $0xf8] sm:$0xff]  ;;  %v1113_v7 = vadd.f32 %v930_v10, %v42_v27  ;;  %v1116_v8 = vadd.f32 %v930_v10, %v43_v28  ;;  %v1131_v14 = vadd.f32 %v930_v10, %v44_v33  ;;  %v1134_v15 = vadd.f32 %v930_v10, %v45_v34 }
   0xc   :  { %v50_v43 = vld [vmem:[%s2234_s0 + $0x100] sm:$0xff]  ;;  %v51_v44 = vld [vmem:[%s2234_s0 + $0x108] sm:$0xff]  ;;  %v52_v49 = vld [vmem:[%s2234_s0 + $0x110] sm:$0xff]  ;;  %2333 = vst [vmem:[#allocation2_spill] sm:$0xff] %v1092_v0  ;;  %v1137_v16 = vadd.f32 %v930_v10, %v46_v35  ;;  %v1140_v17 = vadd.f32 %v930_v10, %v47_v36  ;;  %v1155_v22 = vadd.f32 %v930_v10, %v48_v41  ;;  %v1158_v25 = vadd.f32 %v930_v10, %v49_v42 }
   0xd   :  { %v53_v50 = vld [vmem:[%s2234_s0 + $0x118] sm:$0xff]  ;;  %v54_v51 = vld [vmem:[%s2234_s0 + $0x120] sm:$0xff]  ;;  %v55_v52 = vld [vmem:[%s2234_s0 + $0x128] sm:$0xff]  ;;  %2334 = vst [vmem:[#allocation3_spill] sm:$0xff] %v1107_v5  ;;  %v1161_v26 = vadd.f32 %v930_v10, %v50_v43  ;;  %v1164_v27 = vadd.f32 %v930_v10, %v51_v44  ;;  %v1179_v36 = vadd.f32 %v930_v10, %v52_v49 }
   0xe   :  { %v56_v57 = vld [vmem:[%s2234_s0 + $0x130] sm:$0xff]  ;;  %v57_v58 = vld [vmem:[%s2234_s0 + $0x138] sm:$0xff]  ;;  %v58_v59 = vld [vmem:[%s2234_s0 + $0x140] sm:$0xff]  ;;  %2335 = vst [vmem:[#allocation4_spill] sm:$0xff] %v1110_v6  ;;  %v1182_v41 = vadd.f32 %v930_v10, %v53_v50  ;;  %v1185_v42 = vadd.f32 %v930_v10, %v54_v51  ;;  %v1188_v43 = vadd.f32 %v930_v10, %v55_v52 }
   0xf   :  { %v59_v60 = vld [vmem:[%s2234_s0 + $0x148] sm:$0xff]  ;;  %v60_v1 = vld [vmem:[%s2234_s0 + $0x150] sm:$0xff]  ;;  %v61_v2 = vld [vmem:[%s2234_s0 + $0x158] sm:$0xff]  ;;  %2336 = vst [vmem:[#allocation5_spill] sm:$0xff] %v1131_v14  ;;  %v1203_v51 = vadd.f32 %v930_v10, %v56_v57  ;;  %v1206_v52 = vadd.f32 %v930_v10, %v57_v58 }
  0x10   :  { %v62_v3 = vld [vmem:[%s2234_s0 + $0x160] sm:$0xff]  ;;  %v63_v4 = vld [vmem:[%s2234_s0 + $0x168] sm:$0xff]  ;;  %v64_v9 = vld [vmem:[%s2234_s0 + $0x170] sm:$0xff]  ;;  %2337 = vst [vmem:[#allocation6_spill] sm:$0xff] %v1134_v15 }
  0x11   :  { %v65_v11 = vld [vmem:[%s2234_s0 + $0x178] sm:$0xff]  ;;  %v66_v12 = vld [vmem:[%s2234_s0 + $0x180] sm:$0xff]  ;;  %v67_v13 = vld [vmem:[%s2234_s0 + $0x188] sm:$0xff]  ;;  %2338 = vst [vmem:[#allocation7_spill] sm:$0xff] %v1137_v16 }
  0x12   :  { %2339 = vst [vmem:[#allocation8_spill] sm:$0xff] %v1140_v17  ;;  %v68_v18 = vld [vmem:[%s2234_s0 + $0x190] sm:$0xff]  ;;  %v69_v19 = vld [vmem:[%s2234_s0 + $0x198] sm:$0xff]  ;;  %v70_v20 = vld [vmem:[%s2234_s0 + $0x1a0] sm:$0xff] }
  0x13   :  { %v71_v21 = vld [vmem:[%s2234_s0 + $0x1a8] sm:$0xff]  ;;  %2340 = vst [vmem:[#allocation9_spill] sm:$0xff] %v1155_v22  ;;  %v72_v28 = vld [vmem:[%s2234_s0 + $0x1b0] sm:$0xff]  ;;  %v73_v33 = vld [vmem:[%s2234_s0 + $0x1b8] sm:$0xff] }
  0x14   :  { %2341 = vst [vmem:[#allocation10_spill] sm:$0xff] %v1158_v25  ;;  %v74_v34 = vld [vmem:[%s2234_s0 + $0x1c0] sm:$0xff]  ;;  %v75_v35 = vld [vmem:[%s2234_s0 + $0x1c8] sm:$0xff]  ;;  %v76_v44 = vld [vmem:[%s2234_s0 + $0x1d0] sm:$0xff] }
  0x15   :  { %2342 = vst [vmem:[#allocation11_spill] sm:$0xff] %v1161_v26  ;;  %v78_v49 = vld [vmem:[%s2234_s0 + $0x1e0] sm:$0xff]  ;;  %v79_v50 = vld [vmem:[%s2234_s0 + $0x1e8] sm:$0xff] }
  0x16   :  { %2343 = vst [vmem:[#allocation12_spill] sm:$0xff] %v1164_v27  ;;  %v77_v27 = vld [vmem:[%s2234_s0 + $0x1d8] sm:$0xff]  ;;  %v82_v57 = vld [vmem:[%s2234_s0 + $0x200] sm:$0xff]  ;;  %v83_v58 = vld [vmem:[%s2234_s0 + $0x208] sm:$0xff] }
  0x17   :  { %2344 = vst [vmem:[#allocation13_spill] sm:$0xff] %v1179_v36  ;;  %v81_v36 = vld [vmem:[%s2234_s0 + $0x1f8] sm:$0xff] }
  0x18   :  { %2345 = vst [vmem:[#allocation14_spill] sm:$0xff] %v1182_v41  ;;  %v80_v41 = vld [vmem:[%s2234_s0 + $0x1f0] sm:$0xff] }
  0x19   :  { %2346 = vst [vmem:[#allocation15_spill] sm:$0xff] %v1185_v42  ;;  %v1212_v42 = vadd.f32 %v930_v10, %v59_v60  ;;  %v1230_v60 = vadd.f32 %v930_v10, %v61_v2  ;;  %v87_v2 = vld [vmem:[%s2234_s0 + $0x228] sm:$0xff] }
  0x1a   :  { %2347 = vst [vmem:[#allocation16_spill] sm:$0xff] %v1188_v43  ;;  %v1209_v43 = vadd.f32 %v930_v10, %v58_v59  ;;  %v1227_v59 = vadd.f32 %v930_v10, %v60_v1  ;;  %v86_v1 = vld [vmem:[%s2234_s0 + $0x220] sm:$0xff] }
  0x1b   :  { %2348 = vst [vmem:[#allocation17_spill] sm:$0xff] %v1203_v51  ;;  %v85_v51 = vld [vmem:[%s2234_s0 + $0x218] sm:$0xff] }
  0x1c   :  { %2349 = vst [vmem:[#allocation18_spill] sm:$0xff] %v1206_v52  ;;  %v84_v52 = vld [vmem:[%s2234_s0 + $0x210] sm:$0xff] }
  0x1d   :  { %2350 = vst [vmem:[#allocation19_spill] sm:$0xff] %v1209_v43  ;;  %v1236_v43 = vadd.f32 %v930_v10, %v63_v4  ;;  %v1254_v4 = vadd.f32 %v930_v10, %v65_v11  ;;  %v91_v11 = vld [vmem:[%s2234_s0 + $0x248] sm:$0xff] }
  0x1e   :  { %2351 = vst [vmem:[#allocation20_spill] sm:$0xff] %v1212_v42  ;;  %v1233_v42 = vadd.f32 %v930_v10, %v62_v3  ;;  %v1251_v3 = vadd.f32 %v930_v10, %v64_v9  ;;  %v90_v9 = vld [vmem:[%s2234_s0 + $0x240] sm:$0xff] }
  0x1f   :  { %2352 = vst [vmem:[#allocation21_spill] sm:$0xff] %v1227_v59  ;;  %v89_v59 = vld [vmem:[%s2234_s0 + $0x238] sm:$0xff] }
  0x20   :  { %2353 = vst [vmem:[#allocation22_spill] sm:$0xff] %v1230_v60  ;;  %v88_v60 = vld [vmem:[%s2234_s0 + $0x230] sm:$0xff] }
  0x21   :  { %2354 = vst [vmem:[#allocation23_spill] sm:$0xff] %v1233_v42  ;;  %v1260_v42 = vadd.f32 %v930_v10, %v67_v13  ;;  %v1278_v13 = vadd.f32 %v930_v10, %v69_v19  ;;  %v95_v19 = vld [vmem:[%s2234_s0 + $0x268] sm:$0xff] }
  0x22   :  { %2355 = vst [vmem:[#allocation24_spill] sm:$0xff] %v1236_v43  ;;  %v1257_v43 = vadd.f32 %v930_v10, %v66_v12  ;;  %v1275_v12 = vadd.f32 %v930_v10, %v68_v18  ;;  %v94_v18 = vld [vmem:[%s2234_s0 + $0x260] sm:$0xff] }
  0x23   :  { %2356 = vst [vmem:[#allocation25_spill] sm:$0xff] %v1251_v3  ;;  %v93_v3 = vld [vmem:[%s2234_s0 + $0x258] sm:$0xff] }
  0x24   :  { %2357 = vst [vmem:[#allocation26_spill] sm:$0xff] %v1254_v4  ;;  %v92_v4 = vld [vmem:[%s2234_s0 + $0x250] sm:$0xff] }
  0x25   :  { %2358 = vst [vmem:[#allocation27_spill] sm:$0xff] %v1257_v43  ;;  %v1284_v43 = vadd.f32 %v930_v10, %v71_v21  ;;  %v1302_v21 = vadd.f32 %v930_v10, %v73_v33  ;;  %v99_v33 = vld [vmem:[%s2234_s0 + $0x288] sm:$0xff] }
  0x26   :  { %2359 = vst [vmem:[#allocation28_spill] sm:$0xff] %v1260_v42  ;;  %v1281_v42 = vadd.f32 %v930_v10, %v70_v20  ;;  %v1299_v20 = vadd.f32 %v930_v10, %v72_v28  ;;  %v98_v28 = vld [vmem:[%s2234_s0 + $0x280] sm:$0xff] }
  0x27   :  { %2360 = vst [vmem:[#allocation29_spill] sm:$0xff] %v1275_v12  ;;  %v97_v12 = vld [vmem:[%s2234_s0 + $0x278] sm:$0xff] }
  0x28   :  { %2361 = vst [vmem:[#allocation30_spill] sm:$0xff] %v1278_v13  ;;  %v96_v13 = vld [vmem:[%s2234_s0 + $0x270] sm:$0xff] }
  0x29   :  { %2362 = vst [vmem:[#allocation31_spill] sm:$0xff] %v1281_v42  ;;  %v1308_v42 = vadd.f32 %v930_v10, %v75_v35  ;;  %v1326_v35 = vadd.f32 %v930_v10, %v77_v27  ;;  %v103_v27 = vld [vmem:[%s2234_s0 + $0x2a8] sm:$0xff] }
  0x2a   :  { %2363 = vst [vmem:[#allocation32_spill] sm:$0xff] %v1284_v43  ;;  %v1305_v43 = vadd.f32 %v930_v10, %v74_v34  ;;  %v1323_v34 = vadd.f32 %v930_v10, %v76_v44  ;;  %v102_v44 = vld [vmem:[%s2234_s0 + $0x2a0] sm:$0xff] }
  0x2b   :  { %2364 = vst [vmem:[#allocation33_spill] sm:$0xff] %v1299_v20  ;;  %v101_v20 = vld [vmem:[%s2234_s0 + $0x298] sm:$0xff] }
  0x2c   :  { %2365 = vst [vmem:[#allocation34_spill] sm:$0xff] %v1302_v21  ;;  %v100_v21 = vld [vmem:[%s2234_s0 + $0x290] sm:$0xff] }
  0x2d   :  { %2366 = vst [vmem:[#allocation35_spill] sm:$0xff] %v1305_v43  ;;  %v1332_v43 = vadd.f32 %v930_v10, %v79_v50  ;;  %v1350_v50 = vadd.f32 %v930_v10, %v81_v36  ;;  %v107_v36 = vld [vmem:[%s2234_s0 + $0x2c8] sm:$0xff] }
  0x2e   :  { %2367 = vst [vmem:[#allocation36_spill] sm:$0xff] %v1308_v42  ;;  %v1329_v42 = vadd.f32 %v930_v10, %v78_v49  ;;  %v1347_v49 = vadd.f32 %v930_v10, %v80_v41  ;;  %v106_v41 = vld [vmem:[%s2234_s0 + $0x2c0] sm:$0xff] }
  0x2f   :  { %2368 = vst [vmem:[#allocation37_spill] sm:$0xff] %v1323_v34  ;;  %v105_v34 = vld [vmem:[%s2234_s0 + $0x2b8] sm:$0xff] }
  0x30   :  { %2369 = vst [vmem:[#allocation38_spill] sm:$0xff] %v1326_v35  ;;  %v104_v35 = vld [vmem:[%s2234_s0 + $0x2b0] sm:$0xff] }
  0x31   :  { %2370 = vst [vmem:[#allocation39_spill] sm:$0xff] %v1329_v42  ;;  %v1356_v42 = vadd.f32 %v930_v10, %v83_v58  ;;  %v1374_v58 = vadd.f32 %v930_v10, %v85_v51  ;;  %v111_v51 = vld [vmem:[%s2234_s0 + $0x2e8] sm:$0xff] }
  0x32   :  { %2371 = vst [vmem:[#allocation40_spill] sm:$0xff] %v1332_v43  ;;  %v1353_v43 = vadd.f32 %v930_v10, %v82_v57  ;;  %v1371_v57 = vadd.f32 %v930_v10, %v84_v52  ;;  %v110_v52 = vld [vmem:[%s2234_s0 + $0x2e0] sm:$0xff] }
  0x33   :  { %2372 = vst [vmem:[#allocation41_spill] sm:$0xff] %v1347_v49  ;;  %v109_v49 = vld [vmem:[%s2234_s0 + $0x2d8] sm:$0xff] }
  0x34   :  { %2373 = vst [vmem:[#allocation42_spill] sm:$0xff] %v1350_v50  ;;  %v108_v50 = vld [vmem:[%s2234_s0 + $0x2d0] sm:$0xff] }
  0x35   :  { %2374 = vst [vmem:[#allocation43_spill] sm:$0xff] %v1353_v43  ;;  %v1380_v43 = vadd.f32 %v930_v10, %v87_v2  ;;  %v1398_v2 = vadd.f32 %v930_v10, %v89_v59  ;;  %v115_v59 = vld [vmem:[%s2234_s0 + $0x308] sm:$0xff] }
  0x36   :  { %2375 = vst [vmem:[#allocation44_spill] sm:$0xff] %v1356_v42  ;;  %v1377_v42 = vadd.f32 %v930_v10, %v86_v1  ;;  %v1395_v1 = vadd.f32 %v930_v10, %v88_v60  ;;  %v114_v60 = vld [vmem:[%s2234_s0 + $0x300] sm:$0xff] }
  0x37   :  { %2376 = vst [vmem:[#allocation45_spill] sm:$0xff] %v1371_v57  ;;  %v113_v57 = vld [vmem:[%s2234_s0 + $0x2f8] sm:$0xff] }
  0x38   :  { %2377 = vst [vmem:[#allocation46_spill] sm:$0xff] %v1374_v58  ;;  %v112_v58 = vld [vmem:[%s2234_s0 + $0x2f0] sm:$0xff] }
  0x39   :  { %2378 = vst [vmem:[#allocation47_spill] sm:$0xff] %v1377_v42  ;;  %v1404_v42 = vadd.f32 %v930_v10, %v91_v11  ;;  %v1422_v11 = vadd.f32 %v930_v10, %v93_v3  ;;  %v119_v3 = vld [vmem:[%s2234_s0 + $0x328] sm:$0xff] }
  0x3a   :  { %2379 = vst [vmem:[#allocation48_spill] sm:$0xff] %v1380_v43  ;;  %v1401_v43 = vadd.f32 %v930_v10, %v90_v9  ;;  %v1419_v9 = vadd.f32 %v930_v10, %v92_v4  ;;  %v118_v4 = vld [vmem:[%s2234_s0 + $0x320] sm:$0xff] }
  0x3b   :  { %2380 = vst [vmem:[#allocation49_spill] sm:$0xff] %v1395_v1  ;;  %v117_v1 = vld [vmem:[%s2234_s0 + $0x318] sm:$0xff] }
  0x3c   :  { %2381 = vst [vmem:[#allocation50_spill] sm:$0xff] %v1398_v2  ;;  %v116_v2 = vld [vmem:[%s2234_s0 + $0x310] sm:$0xff] }
  0x3d   :  { %2382 = vst [vmem:[#allocation51_spill] sm:$0xff] %v1401_v43  ;;  %v1428_v43 = vadd.f32 %v930_v10, %v95_v19  ;;  %v1446_v19 = vadd.f32 %v930_v10, %v97_v12  ;;  %v1464_v12 = vadd.f32 %v930_v10, %v100_v21  ;;  %v125_v21 = vld [vmem:[%s2234_s0 + $0x358] sm:$0xff] }
  0x3e   :  { %2383 = vst [vmem:[#allocation52_spill] sm:$0xff] %v1404_v42  ;;  %v1425_v42 = vadd.f32 %v930_v10, %v94_v18  ;;  %v1443_v18 = vadd.f32 %v930_v10, %v96_v13  ;;  %v122_v13 = vld [vmem:[%s2234_s0 + $0x340] sm:$0xff] }
  0x3f   :  { %2384 = vst [vmem:[#allocation53_spill] sm:$0xff] %v1419_v9  ;;  %v121_v9 = vld [vmem:[%s2234_s0 + $0x338] sm:$0xff]  ;;  %v2461_v6 = vld [vmem:[#allocation46_spill] sm:$0xff] }
  0x40   :  { %2385 = vst [vmem:[#allocation54_spill] sm:$0xff] %v1422_v11  ;;  %v120_v11 = vld [vmem:[%s2234_s0 + $0x330] sm:$0xff] }
  0x41   :  { %2386 = vst [vmem:[#allocation55_spill] sm:$0xff] %v1425_v42  ;;  %v1452_v42 = vadd.f32 %v930_v10, %v99_v33  ;;  %v1470_v33 = vadd.f32 %v930_v10, %v102_v44  ;;  %v1488_v44 = vadd.f32 %v930_v10, %v105_v34  ;;  %v1506_v34 = vadd.f32 %v930_v10, %v108_v50  ;;  %v131_v50 = vld [vmem:[%s2234_s0 + $0x388] sm:$0xff] }
  0x42   :  { %2387 = vst [vmem:[#allocation56_spill] sm:$0xff] %v1428_v43  ;;  %v1449_v43 = vadd.f32 %v930_v10, %v98_v28  ;;  %v1467_v28 = vadd.f32 %v930_v10, %v101_v20  ;;  %v1485_v20 = vadd.f32 %v930_v10, %v104_v35  ;;  %v128_v35 = vld [vmem:[%s2234_s0 + $0x370] sm:$0xff] }
  0x43   :  { %2388 = vst [vmem:[#allocation57_spill] sm:$0xff] %v1443_v18 }
  0x44   :  { %2389 = vst [vmem:[#allocation58_spill] sm:$0xff] %v1446_v19  ;;  %v124_v19 = vld [vmem:[%s2234_s0 + $0x350] sm:$0xff]  ;;  %v2466_v16 = vld [vmem:[#allocation51_spill] sm:$0xff] }
  0x45   :  { %2390 = vst [vmem:[#allocation59_spill] sm:$0xff] %v1449_v43  ;;  %v123_v43 = vld [vmem:[%s2234_s0 + $0x348] sm:$0xff] }
  0x46   :  { %2391 = vst [vmem:[#allocation60_spill] sm:$0xff] %v1452_v42  ;;  %v1473_v42 = vadd.f32 %v930_v10, %v103_v27  ;;  %v1491_v27 = vadd.f32 %v930_v10, %v106_v41  ;;  %v1509_v41 = vadd.f32 %v930_v10, %v109_v49  ;;  %v1527_v49 = vadd.f32 %v930_v10, %v112_v58  ;;  %v134_v58 = vld [vmem:[%s2234_s0 + $0x3a0] sm:$0xff] }
  0x47   :  { %2392 = vst [vmem:[#allocation61_spill] sm:$0xff] %v1464_v12  ;;  %v2469_v25 = vld [vmem:[#allocation54_spill] sm:$0xff] }
  0x48   :  { %2393 = vst [vmem:[#allocation62_spill] sm:$0xff] %v1467_v28  ;;  %v127_v28 = vld [vmem:[%s2234_s0 + $0x368] sm:$0xff] }
  0x49   :  { %2394 = vst [vmem:[#allocation63_spill] sm:$0xff] %v1470_v33  ;;  %v126_v33 = vld [vmem:[%s2234_s0 + $0x360] sm:$0xff] }
  0x4a   :  { %2395 = vst [vmem:[#allocation64_spill] sm:$0xff] %v1473_v42  ;;  %v1494_v42 = vadd.f32 %v930_v10, %v107_v36  ;;  %v1512_v36 = vadd.f32 %v930_v10, %v110_v52  ;;  %v1530_v52 = vadd.f32 %v930_v10, %v113_v57  ;;  %v1548_v57 = vadd.f32 %v930_v10, %v116_v2  ;;  %v137_v2 = vld [vmem:[%s2234_s0 + $0x3b8] sm:$0xff] }
  0x4b   :  { %2396 = vst [vmem:[#allocation65_spill] sm:$0xff] %v1485_v20 }
  0x4c   :  { %2397 = vst [vmem:[#allocation66_spill] sm:$0xff] %v1488_v44  ;;  %v130_v44 = vld [vmem:[%s2234_s0 + $0x380] sm:$0xff]  ;;  %v2473_v0 = vld [vmem:[#allocation59_spill] sm:$0xff] }
  0x4d   :  { %2398 = vst [vmem:[#allocation67_spill] sm:$0xff] %v1491_v27  ;;  %v129_v27 = vld [vmem:[%s2234_s0 + $0x378] sm:$0xff] }
  0x4e   :  { %2399 = vst [vmem:[#allocation68_spill] sm:$0xff] %v1494_v42  ;;  %v1515_v42 = vadd.f32 %v930_v10, %v111_v51  ;;  %v1533_v51 = vadd.f32 %v930_v10, %v114_v60  ;;  %v1551_v60 = vadd.f32 %v930_v10, %v117_v1  ;;  %v1569_v1 = vadd.f32 %v930_v10, %v120_v11  ;;  %v140_v11 = vld [vmem:[%s2234_s0 + $0x3d0] sm:$0xff] }
  0x4f   :  { %2400 = vst [vmem:[#allocation69_spill] sm:$0xff] %v1506_v34  ;;  %v2475_v15 = vld [vmem:[#allocation62_spill] sm:$0xff] }
  0x50   :  { %2401 = vst [vmem:[#allocation70_spill] sm:$0xff] %v1509_v41  ;;  %v133_v41 = vld [vmem:[%s2234_s0 + $0x398] sm:$0xff] }
  0x51   :  { %2402 = vst [vmem:[#allocation71_spill] sm:$0xff] %v1512_v36  ;;  %v132_v36 = vld [vmem:[%s2234_s0 + $0x390] sm:$0xff] }
  0x52   :  { %2403 = vst [vmem:[#allocation72_spill] sm:$0xff] %v1515_v42  ;;  %v1536_v42 = vadd.f32 %v930_v10, %v115_v59  ;;  %v1554_v59 = vadd.f32 %v930_v10, %v118_v4  ;;  %v1572_v4 = vadd.f32 %v930_v10, %v121_v9  ;;  %v1590_v9 = vadd.f32 %v930_v10, %v124_v19  ;;  %v143_v19 = vld [vmem:[%s2234_s0 + $0x3e8] sm:$0xff] }
  0x53   :  { %2404 = vst [vmem:[#allocation73_spill] sm:$0xff] %v1527_v49 }
  0x54   :  { %2405 = vst [vmem:[#allocation74_spill] sm:$0xff] %v1530_v52  ;;  %v136_v52 = vld [vmem:[%s2234_s0 + $0x3b0] sm:$0xff] }
  0x55   :  { %2406 = vst [vmem:[#allocation75_spill] sm:$0xff] %v1533_v51  ;;  %v135_v51 = vld [vmem:[%s2234_s0 + $0x3a8] sm:$0xff] }
  0x56   :  { %2407 = vst [vmem:[#allocation76_spill] sm:$0xff] %v1536_v42  ;;  %v1557_v42 = vadd.f32 %v930_v10, %v119_v3  ;;  %v1575_v3 = vadd.f32 %v930_v10, %v122_v13  ;;  %v1593_v13 = vadd.f32 %v930_v10, %v125_v21  ;;  %v1611_v21 = vadd.f32 %v930_v10, %v128_v35 }
  0x57   :  { %2408 = vst [vmem:[#allocation77_spill] sm:$0xff] %v1548_v57  ;;  %v1629_v35 = vadd.f32 %v930_v10, %v132_v36  ;;  %v2481_v5 = vld [vmem:[#allocation70_spill] sm:$0xff] }
  0x58   :  { %2409 = vst [vmem:[#allocation78_spill] sm:$0xff] %v1551_v60  ;;  %v139_v60 = vld [vmem:[%s2234_s0 + $0x3c8] sm:$0xff] }
  0x59   :  { %2410 = vst [vmem:[#allocation79_spill] sm:$0xff] %v1554_v59  ;;  %v138_v59 = vld [vmem:[%s2234_s0 + $0x3c0] sm:$0xff]  ;;  %v1650_v36 = vadd.f32 %v930_v10, %v139_v60  ;;  %v2479_v60 = vld [vmem:[#allocation67_spill] sm:$0xff] }
  0x5a   :  { %2411 = vst [vmem:[#allocation80_spill] sm:$0xff] %v1557_v42  ;;  %v1578_v42 = vadd.f32 %v930_v10, %v123_v43  ;;  %v1596_v43 = vadd.f32 %v930_v10, %v126_v33  ;;  %v1614_v33 = vadd.f32 %v930_v10, %v129_v27  ;;  %v1632_v27 = vadd.f32 %v930_v10, %v133_v41 }
  0x5b   :  { %2412 = vst [vmem:[#allocation81_spill] sm:$0xff] %v1569_v1  ;;  %v1653_v41 = vadd.f32 %v930_v10, %v140_v11 }
  0x5c   :  { %2413 = vst [vmem:[#allocation82_spill] sm:$0xff] %v1572_v4  ;;  %v142_v4 = vld [vmem:[%s2234_s0 + $0x3e0] sm:$0xff]  ;;  %v2485_v22 = vld [vmem:[#allocation75_spill] sm:$0xff] }
  0x5d   :  { %2414 = vst [vmem:[#allocation83_spill] sm:$0xff] %v1575_v3  ;;  %v141_v3 = vld [vmem:[%s2234_s0 + $0x3d8] sm:$0xff]  ;;  %v2499_v18 = vmov %v1653_v41 }
  0x5e   :  { %2415 = vst [vmem:[#allocation84_spill] sm:$0xff] %v1578_v42  ;;  %v1599_v42 = vadd.f32 %v930_v10, %v127_v28  ;;  %v1617_v28 = vadd.f32 %v930_v10, %v130_v44  ;;  %v1635_v44 = vadd.f32 %v930_v10, %v134_v58  ;;  %v1656_v58 = vadd.f32 %v930_v10, %v141_v3 }
  0x5f   :  { %2416 = vst [vmem:[#allocation85_spill] sm:$0xff] %v1593_v13  ;;  %v145_v13 = vld [vmem:[%s2234_s0 + $0x3f8] sm:$0xff]  ;;  %v2487_v26 = vld [vmem:[#allocation78_spill] sm:$0xff] }
  0x60   :  { %2417 = vst [vmem:[#allocation86_spill] sm:$0xff] %v1596_v43  ;;  %v144_v43 = vld [vmem:[%s2234_s0 + $0x3f0] sm:$0xff] }
  0x61   :  { %2418 = vst [vmem:[#allocation87_spill] sm:$0xff] %v1599_v42  ;;  %v1620_v42 = vadd.f32 %v930_v10, %v131_v50  ;;  %v1638_v50 = vadd.f32 %v930_v10, %v135_v51  ;;  %v1659_v51 = vadd.f32 %v930_v10, %v142_v4 }
  0x62   :  { %2419 = vst [vmem:[#allocation88_spill] sm:$0xff] %v1611_v21  ;;  %v2505_v21 = vmax.f32 %v990_v30, 0.0  ;;  %v2510_v30 = vmax.f32 %v996_v32, 0.0  ;;  %v2515_v32 = vmax.f32 %v1065_v55, 0.0 }
  0x63   :  { %2420 = vst [vmem:[#allocation89_spill] sm:$0xff] %v1614_v33  ;;  %v1647_v33 = vadd.f32 %v930_v10, %v138_v59  ;;  %v1668_v59 = vadd.f32 %v930_v10, %v145_v13  ;;  %v2490_v14 = vld [vmem:[#allocation82_spill] sm:$0xff]  ;;  %v2503_v13 = vmax.f32 %v987_v29, 0.0  ;;  %v2508_v29 = vmax.f32 %v1020_v40, 0.0 }
  0x64   :  { %2421 = vst [vmem:[#allocation90_spill] sm:$0xff] %v1617_v28  ;;  %v1644_v28 = vadd.f32 %v930_v10, %v137_v2  ;;  %v1665_v2 = vadd.f32 %v930_v10, %v144_v43  ;;  %v2491_v12 = vld [vmem:[#allocation83_spill] sm:$0xff] }
  0x65   :  { %2422 = vst [vmem:[#allocation91_spill] sm:$0xff] %v1620_v42  ;;  %v1641_v42 = vadd.f32 %v930_v10, %v136_v52  ;;  %v1662_v52 = vadd.f32 %v930_v10, %v143_v19  ;;  %v2492_v49 = vld [vmem:[#allocation84_spill] sm:$0xff]  ;;  %v2501_v19 = vmax.f32 %v969_v23, 0.0  ;;  %v410_v11 = vsel %vm406_vm0, %v2503_v13, 0.0 }
  0x66   :  { %2423 = vst [vmem:[#allocation92_spill] sm:$0xff] %v1644_v28  ;;  %v2493_v17 = vld [vmem:[#allocation85_spill] sm:$0xff]  ;;  %v405_v3 = vmax.f32 %v1668_v59, 0.0  ;;  %v2506_v23 = vmax.f32 %v993_v31, 0.0  ;;  %v429_v13 = vsel %vm406_vm0, %v2508_v29, 0.0  ;;  %v2509_v28 = vmax.f32 %v1035_v45, 0.0 }
  0x67   :  { %2424 = vst [vmem:[#allocation93_spill] sm:$0xff] %v1653_v41  ;;  %v2494_v20 = vld [vmem:[#allocation86_spill] sm:$0xff]  ;;  %v407_v43 = vsel %vm406_vm0, %v2501_v19, 0.0  ;;  %v2511_v31 = vmax.f32 %v1011_v37, 0.0  ;;  %v2513_v29 = vmax.f32 %v1038_v46, 0.0 }
  0x68   :  { %2425 = vst [vmem:[#allocation94_spill] sm:$0xff] %v1659_v51  ;;  %v2495_v57 = vld [vmem:[#allocation87_spill] sm:$0xff]  ;;  %v412_v51 = vsel %vm406_vm0, %v2505_v21, 0.0  ;;  %v414_v19 = vsel %vm406_vm0, %v2506_v23, 0.0  ;;  %v416_v21 = vsel %vm406_vm0, %v2510_v30, 0.0 }
  0x69   :  { %2426 = vst [vmem:[#allocation95_spill] sm:$0xff] %v1665_v2  ;;  %v2502_v2 = vmax.f32 %v972_v24, 0.0  ;;  %v2507_v24 = vmax.f32 %v1017_v39, 0.0  ;;  %v418_v23 = vsel %vm406_vm0, %v2511_v31, 0.0  ;;  %v433_v45 = vsel %vm406_vm0, %v2513_v29, 0.0 }
  0x6a   :  { %v2518_v31 = vmax.f32 %v1044_v48, 0.0  ;;  %v2520_v29 = vmax.f32 %v1062_v54, 0.0  ;;  %v2524_v54 = vmax.f32 %v1116_v8, 0.0 }
  0x6b   :  { %v2497_v34 = vld [vmem:[#allocation90_spill] sm:$0xff]  ;;  %v408_v10 = vsel %vm406_vm0, %v2502_v2, 0.0  ;;  %v428_v2 = vsel %vm406_vm0, %v2507_v24, 0.0  ;;  %v2512_v24 = vmax.f32 %v1014_v38, 0.0 }
  0x6c   :  { %v2498_v1 = vld [vmem:[#allocation91_spill] sm:$0xff]  ;;  %v409_v4 = vadd.f32 %v408_v10, %v407_v43  ;;  %v431_v43 = vsel %vm406_vm0, %v2509_v28, 0.0  ;;  %v430_v39 = vadd.f32 %v429_v13, %v428_v2  ;;  %v2514_v28 = vmax.f32 %v1041_v47, 0.0 }
  0x6d   :  { %v420_v40 = vsel %vm406_vm0, %v2512_v24, 0.0  ;;  %v2516_v2 = vmax.f32 %v1068_v56, 0.0  ;;  %v2517_v13 = vmax.f32 %v1083_v61, 0.0  ;;  %v437_v47 = vsel %vm406_vm0, %v2518_v31, 0.0 }
  0x6e   :  { %v411_v10 = vadd.f32 %v410_v11, %v409_v4  ;;  %v435_v11 = vsel %vm406_vm0, %v2514_v28, 0.0  ;;  %v449_v4 = vsel %vm406_vm0, %v2515_v32, 0.0  ;;  %v432_v30 = vadd.f32 %v431_v43, %v430_v39 }
  0x6f   :  { %v450_v38 = vsel %vm406_vm0, %v2516_v2, 0.0  ;;  %v452_v46 = vsel %vm406_vm0, %v2517_v13, 0.0  ;;  %v2519_v24 = vmax.f32 %v1059_v53, 0.0  ;;  %v2521_v39 = vmax.f32 %v1086_v62, 0.0 }
  0x70   :  { %v2504_v41 = vld [vmem:[#allocation95_spill] sm:$0xff]  ;;  %v413_v37 = vadd.f32 %v412_v51, %v411_v10  ;;  %v441_v51 = vsel %vm406_vm0, %v2520_v29, 0.0  ;;  %v451_v43 = vadd.f32 %v450_v38, %v449_v4  ;;  %v434_v10 = vadd.f32 %v433_v45, %v432_v30  ;;  %v2525_v4 = vld [vmem:[#allocation5_spill] sm:$0xff]  ;;  %v2527_v30 = vld [vmem:[#allocation2_spill] sm:$0xff] }
  0x71   :  { %v439_v55 = vsel %vm406_vm0, %v2519_v24, 0.0  ;;  %v454_v61 = vsel %vm406_vm0, %v2521_v39, 0.0  ;;  %v2522_v28 = vmax.f32 %v1089_v63, 0.0  ;;  %v2523_v53 = vmax.f32 %v1113_v7, 0.0  ;;  %v2529_v24 = vld [vmem:[#allocation3_spill] sm:$0xff] }
  0x72   :  { %v415_v56 = vadd.f32 %v414_v19, %v413_v37  ;;  %v453_v32 = vadd.f32 %v452_v46, %v451_v43  ;;  %v471_v13 = vsel %vm406_vm0, %v2524_v54, 0.0  ;;  %v2526_v19 = vmax.f32 %v2525_v4, 0.0  ;;  %v2531_v43 = vld [vmem:[#allocation4_spill] sm:$0xff] }
  0x73   :  { %v456_v48 = vsel %vm406_vm0, %v2522_v28, 0.0  ;;  %v470_v2 = vsel %vm406_vm0, %v2523_v53, 0.0  ;;  %v436_v37 = vadd.f32 %v435_v11, %v434_v10  ;;  %v2528_v38 = vmax.f32 %v2527_v30, 0.0  ;;  %v2533_v28 = vld [vmem:[#allocation6_spill] sm:$0xff]  ;;  %v2535_v10 = vld [vmem:[#allocation7_spill] sm:$0xff]  ;;  %v2539_v30 = vld [vmem:[#allocation12_spill] sm:$0xff] }
  0x74   :  { %v473_v45 = vsel %vm406_vm0, %v2526_v19, 0.0  ;;  %v417_v62 = vadd.f32 %v416_v21, %v415_v56  ;;  %v472_v31 = vadd.f32 %v471_v13, %v470_v2  ;;  %v455_v46 = vadd.f32 %v454_v61, %v453_v32  ;;  %v2537_v32 = vld [vmem:[#allocation11_spill] sm:$0xff] }
  0x75   :  { %v458_v63 = vsel %vm406_vm0, %v2528_v38, 0.0  ;;  %v2530_v7 = vmax.f32 %v2529_v24, 0.0  ;;  %v2532_v8 = vmax.f32 %v2531_v43, 0.0  ;;  %v2534_v53 = vmax.f32 %v2533_v28, 0.0 }
  0x76   :  { %v419_v21 = vadd.f32 %v418_v23, %v417_v62  ;;  %v438_v11 = vadd.f32 %v437_v47, %v436_v37  ;;  %v474_v56 = vadd.f32 %v473_v45, %v472_v31  ;;  %v2536_v4 = vmax.f32 %v2535_v10, 0.0  ;;  %v2543_v31 = vld [vmem:[#allocation8_spill] sm:$0xff] }
  0x77   :  { %v460_v29 = vsel %vm406_vm0, %v2530_v7, 0.0  ;;  %v462_v39 = vsel %vm406_vm0, %v2532_v8, 0.0  ;;  %v475_v54 = vsel %vm406_vm0, %v2534_v53, 0.0  ;;  %v457_v61 = vadd.f32 %v456_v48, %v455_v46  ;;  %v2541_v7 = vld [vmem:[#allocation13_spill] sm:$0xff] }
  0x78   :  { %v477_v2 = vsel %vm406_vm0, %v2536_v4, 0.0  ;;  %v2538_v13 = vmax.f32 %v2537_v32, 0.0  ;;  %v2540_v38 = vmax.f32 %v2539_v30, 0.0  ;;  %v2542_v43 = vmax.f32 %v2541_v7, 0.0  ;;  %v2545_v46 = vld [vmem:[#allocation9_spill] sm:$0xff]  ;;  %v2547_v4 = vld [vmem:[#allocation14_spill] sm:$0xff] }
  0x79   :  { %v421_v23 = vadd.f32 %v420_v40, %v419_v21  ;;  %v440_v47 = vadd.f32 %v439_v55, %v438_v11  ;;  %v476_v45 = vadd.f32 %v475_v54, %v474_v56  ;;  %v459_v37 = vadd.f32 %v458_v63, %v457_v61  ;;  %v2549_v54 = vld [vmem:[#allocation10_spill] sm:$0xff]  ;;  %v2551_v11 = vld [vmem:[#allocation15_spill] sm:$0xff] }
  0x7a   :  { %v491_v19 = vsel %vm406_vm0, %v2538_v13, 0.0  ;;  %v492_v24 = vsel %vm406_vm0, %v2540_v38, 0.0  ;;  %v494_v8 = vsel %vm406_vm0, %v2542_v43, 0.0  ;;  %v2544_v28 = vmax.f32 %v2543_v31, 0.0 }
  0x7b   :  { %v493_v62 = vadd.f32 %v492_v24, %v491_v19  ;;  %v2546_v53 = vmax.f32 %v2545_v46, 0.0  ;;  %v2548_v32 = vmax.f32 %v2547_v4, 0.0  ;;  %v422_v30 = vrot.slane %v421_v23, 4  ;;  %v2553_v19 = vld [vmem:[#allocation19_spill] sm:$0xff] }
  0x7c   :  { %v479_v48 = vsel %vm406_vm0, %v2544_v28, 0.0  ;;  %v442_v38 = vadd.f32 %v441_v51, %v440_v47  ;;  %v478_v7 = vadd.f32 %v477_v2, %v476_v45  ;;  %v461_v55 = vadd.f32 %v460_v29, %v459_v37  ;;  %v2555_v2 = vld [vmem:[#allocation16_spill] sm:$0xff]  ;;  %v2559_v37 = vld [vmem:[#allocation21_spill] sm:$0xff] }
  0x7d   :  { %v481_v10 = vsel %vm406_vm0, %v2546_v53, 0.0  ;;  %v496_v13 = vsel %vm406_vm0, %v2548_v32, 0.0  ;;  %v495_v40 = vadd.f32 %v494_v8, %v493_v62  ;;  %v2550_v21 = vmax.f32 %v2549_v54, 0.0  ;;  %v2557_v47 = vld [vmem:[#allocation20_spill] sm:$0xff] }
  0x7e   :  { %v2552_v56 = vmax.f32 %v2551_v11, 0.0  ;;  %v2554_v24 = vmax.f32 %v2553_v19, 0.0  ;;  %v423_v31 = vadd.f32 %v422_v30, %v421_v23  ;;  %v443_v28 = vrot.slane %v442_v38, 4 }
  0x7f   :  { %v483_v63 = vsel %vm406_vm0, %v2550_v21, 0.0  ;;  %v480_v46 = vadd.f32 %v479_v48, %v478_v7  ;;  %v497_v53 = vadd.f32 %v496_v13, %v495_v40  ;;  %v463_v51 = vadd.f32 %v462_v39, %v461_v55  ;;  %v2561_v48 = vld [vmem:[#allocation17_spill] sm:$0xff]  ;;  %v2563_v40 = vld [vmem:[#allocation22_spill] sm:$0xff] }
  0x80   :  { %v498_v61 = vsel %vm406_vm0, %v2552_v56, 0.0  ;;  %v512_v43 = vsel %vm406_vm0, %v2554_v24, 0.0  ;;  %v2556_v8 = vmax.f32 %v2555_v2, 0.0  ;;  %v2558_v45 = vmax.f32 %v2557_v47, 0.0 }
  0x81   :  { %v2560_v4 = vmax.f32 %v2559_v37, 0.0  ;;  %v424_v54 = vrot.slane %v423_v31, 2  ;;  %v444_v21 = vadd.f32 %v443_v28, %v442_v38  ;;  %v482_v11 = vadd.f32 %v481_v10, %v480_v46 }
  0x82   :  { %v500_v29 = vsel %vm406_vm0, %v2556_v8, 0.0  ;;  %v513_v62 = vsel %vm406_vm0, %v2558_v45, 0.0  ;;  %v499_v23 = vadd.f32 %v498_v61, %v497_v53  ;;  %v464_v30 = vrot.slane %v463_v51, 4  ;;  %v2565_v45 = vld [vmem:[#allocation18_spill] sm:$0xff]  ;;  %v2567_v61 = vld [vmem:[#allocation23_spill] sm:$0xff] }
  0x83   :  { %v515_v32 = vsel %vm406_vm0, %v2560_v4, 0.0  ;;  %v2562_v13 = vmax.f32 %v2561_v48, 0.0  ;;  %v514_v7 = vadd.f32 %v513_v62, %v512_v43  ;;  %v2564_v55 = vmax.f32 %v2563_v40, 0.0 }
  0x84   :  { %v425_v19 = vadd.f32 %v424_v54, %v423_v31  ;;  %v445_v24 = vrot.slane %v444_v21, 2  ;;  %v484_v2 = vadd.f32 %v483_v63, %v482_v11  ;;  %v501_v8 = vadd.f32 %v500_v29, %v499_v23  ;;  %v2569_v31 = vld [vmem:[#allocation27_spill] sm:$0xff] }
  0x85   :  { %v502_v39 = vsel %vm406_vm0, %v2562_v13, 0.0  ;;  %v517_v56 = vsel %vm406_vm0, %v2564_v55, 0.0  ;;  %v465_v47 = vadd.f32 %v464_v30, %v463_v51  ;;  %v2566_v37 = vmax.f32 %v2565_v45, 0.0  ;;  %v2571_v51 = vld [vmem:[#allocation28_spill] sm:$0xff] }
  0x86   :  { %v516_v38 = vadd.f32 %v515_v32, %v514_v7  ;;  %v2568_v28 = vmax.f32 %v2567_v61, 0.0  ;;  %v426_v53 = vrot.slane %v425_v19, 1  ;;  %v446_v43 = vadd.f32 %v445_v24, %v444_v21  ;;  %v2573_v7 = vld [vmem:[#allocation24_spill] sm:$0xff]  ;;  %v2577_v61 = vld [vmem:[#allocation25_spill] sm:$0xff] }
  0x87   :  { %v504_v10 = vsel %vm406_vm0, %v2566_v37, 0.0  ;;  %v485_v62 = vrot.slane %v484_v2, 4  ;;  %v503_v4 = vadd.f32 %v502_v39, %v501_v8  ;;  %v466_v48 = vrot.slane %v465_v47, 2  ;;  %v2575_v8 = vld [vmem:[#allocation29_spill] sm:$0xff] }
  0x88   :  { %v519_v46 = vsel %vm406_vm0, %v2568_v28, 0.0  ;;  %v518_v13 = vadd.f32 %v517_v56, %v516_v38  ;;  %v2570_v54 = vmax.f32 %v2569_v31, 0.0  ;;  %v2572_v29 = vmax.f32 %v2571_v51, 0.0 }
  0x89   :  { %v447_v23 = vrot.slane %v446_v43, 1  ;;  %v486_v32 = vadd.f32 %v485_v62, %v484_v2  ;;  %v505_v30 = vadd.f32 %v504_v10, %v503_v4  ;;  %v2574_v40 = vmax.f32 %v2573_v7, 0.0 }
  0x8a   :  { %v533_v63 = vsel %vm406_vm0, %v2570_v54, 0.0  ;;  %v534_v11 = vsel %vm406_vm0, %v2572_v29, 0.0  ;;  %v467_v21 = vadd.f32 %v466_v48, %v465_v47  ;;  %v520_v24 = vadd.f32 %v519_v46, %v518_v13  ;;  %v2579_v54 = vld [vmem:[#allocation30_spill] sm:$0xff] }
  0x8b   :  { %v521_v55 = vsel %vm406_vm0, %v2574_v40, 0.0  ;;  %v535_v39 = vadd.f32 %v534_v11, %v533_v63  ;;  %v2576_v56 = vmax.f32 %v2575_v8, 0.0  ;;  %v487_v37 = vrot.slane %v486_v32, 2  ;;  %v2581_v47 = vld [vmem:[#allocation26_spill] sm:$0xff]  ;;  %v2583_v11 = vld [vmem:[#allocation31_spill] sm:$0xff] }
  0x8c   :  { %v506_v38 = vrot.slane %v505_v30, 4  ;;  %v2578_v28 = vmax.f32 %v2577_v61, 0.0  ;;  %v2580_v2 = vmax.f32 %v2579_v54, 0.0  ;;  %v1951_v62 = vadd.f32 %v426_v53, %v425_v19  ;;  %v2587_v54 = vld [vmem:[#allocation35_spill] sm:$0xff] }
  0x8d   :  { %v536_v45 = vsel %vm406_vm0, %v2576_v56, 0.0  ;;  %v522_v4 = vadd.f32 %v521_v55, %v520_v24  ;;  %v2582_v46 = vmax.f32 %v2581_v47, 0.0  ;;  %v468_v63 = vrot.slane %v467_v21, 1 }
  0x8e   :  { %v523_v31 = vsel %vm406_vm0, %v2578_v28, 0.0  ;;  %v538_v10 = vsel %vm406_vm0, %v2580_v2, 0.0  ;;  %v537_v13 = vadd.f32 %v536_v45, %v535_v39  ;;  %v488_v51 = vadd.f32 %v487_v37, %v486_v32  ;;  %v2585_v28 = vld [vmem:[#allocation32_spill] sm:$0xff] }
  0x8f   :  { %v525_v48 = vsel %vm406_vm0, %v2582_v46, 0.0  ;;  %v507_v29 = vadd.f32 %v506_v38, %v505_v30  ;;  %v2584_v7 = vmax.f32 %v2583_v11, 0.0  ;;  %v1959_v8 = vadd.f32 %v447_v23, %v446_v43  ;;  %v2589_v32 = vld [vmem:[#allocation36_spill] sm:$0xff]  ;;  %v2591_v23 = vld [vmem:[#allocation37_spill] sm:$0xff] }
  0x90   :  { %v524_v56 = vadd.f32 %v523_v31, %v522_v4  ;;  %v539_v61 = vadd.f32 %v538_v10, %v537_v13  ;;  %v2586_v19 = vmax.f32 %v2585_v28, 0.0  ;;  %v489_v55 = vrot.slane %v488_v51, 1  ;;  %v2593_v46 = vld [vmem:[#allocation33_spill] sm:$0xff] }
  0x91   :  { %v540_v40 = vsel %vm406_vm0, %v2584_v7, 0.0  ;;  %v508_v24 = vrot.slane %v507_v29, 2  ;;  %v2588_v2 = vmax.f32 %v2587_v54, 0.0  ;;  %v2590_v30 = vmax.f32 %v2589_v32, 0.0  ;;  %v2595_v7 = vld [vmem:[#allocation38_spill] sm:$0xff]  ;;  %v2601_v32 = vld [vmem:[#allocation43_spill] sm:$0xff] }
  0x92   :  { %v542_v53 = vsel %vm406_vm0, %v2586_v19, 0.0  ;;  %v526_v37 = vadd.f32 %v525_v48, %v524_v56  ;;  %v541_v38 = vadd.f32 %v540_v40, %v539_v61  ;;  %v2592_v31 = vmax.f32 %v2591_v23, 0.0  ;;  %v2597_v48 = vld [vmem:[#allocation34_spill] sm:$0xff] }
  0x93   :  { %v554_v39 = vsel %vm406_vm0, %v2588_v2, 0.0  ;;  %v555_v45 = vsel %vm406_vm0, %v2590_v30, 0.0  ;;  %v1973_v4 = vadd.f32 %v468_v63, %v467_v21  ;;  %v509_v47 = vadd.f32 %v508_v24, %v507_v29  ;;  %v2599_v63 = vld [vmem:[#allocation39_spill] sm:$0xff] }
  0x94   :  { %v556_v43 = vadd.f32 %v555_v45, %v554_v39  ;;  %v557_v10 = vsel %vm406_vm0, %v2592_v31, 0.0  ;;  %v2594_v13 = vmax.f32 %v2593_v46, 0.0  ;;  %v2596_v28 = vmax.f32 %v2595_v7, 0.0  ;;  %v2605_v7 = vld [vmem:[#allocation40_spill] sm:$0xff] }
  0x95   :  { %v527_v54 = vrot.slane %v526_v37, 4  ;;  %v543_v2 = vadd.f32 %v542_v53, %v541_v38  ;;  %v2598_v40 = vmax.f32 %v2597_v48, 0.0  ;;  %v1984_v39 = vadd.f32 %v489_v55, %v488_v51  ;;  %v2603_v53 = vld [vmem:[#allocation44_spill] sm:$0xff]  ;;  %v2607_v55 = vld [vmem:[#allocation41_spill] sm:$0xff] }
  0x96   :  { %v544_v11 = vsel %vm406_vm0, %v2594_v13, 0.0  ;;  %v559_v19 = vsel %vm406_vm0, %v2596_v28, 0.0  ;;  %v558_v61 = vadd.f32 %v557_v10, %v556_v43  ;;  %v510_v21 = vrot.slane %v509_v47, 1 }
  0x97   :  { %v546_v56 = vsel %vm406_vm0, %v2598_v40, 0.0  ;;  %v2600_v29 = vmax.f32 %v2599_v63, 0.0  ;;  %v2602_v30 = vmax.f32 %v2601_v32, 0.0  ;;  %v528_v23 = vadd.f32 %v527_v54, %v526_v37  ;;  %v2609_v40 = vld [vmem:[#allocation45_spill] sm:$0xff]  ;;  %v2612_v32 = vld [vmem:[#allocation42_spill] sm:$0xff] }
  0x98   :  { %v545_v31 = vadd.f32 %v544_v11, %v543_v2  ;;  %v560_v46 = vadd.f32 %v559_v19, %v558_v61  ;;  %v2604_v38 = vmax.f32 %v2603_v53, 0.0  ;;  %v2606_v43 = vmax.f32 %v2605_v7, 0.0  ;;  %v2614_v7 = vld [vmem:[#allocation47_spill] sm:$0xff] }
  0x99   :  { %v561_v24 = vsel %vm406_vm0, %v2600_v29, 0.0  ;;  %v575_v45 = vsel %vm406_vm0, %v2602_v30, 0.0  ;;  %v2608_v10 = vmax.f32 %v2607_v55, 0.0  ;;  %v2610_v63 = vmax.f32 %v2609_v40, 0.0 }
  0x9a   :  { %v576_v13 = vsel %vm406_vm0, %v2604_v38, 0.0  ;;  %v563_v51 = vsel %vm406_vm0, %v2606_v43, 0.0  ;;  %v529_v37 = vrot.slane %v528_v23, 2  ;;  %v547_v11 = vadd.f32 %v546_v56, %v545_v31  ;;  %v2617_v31 = vld [vmem:[#allocation48_spill] sm:$0xff] }
  0x9b   :  { %v565_v28 = vsel %vm406_vm0, %v2608_v10, 0.0  ;;  %v577_v48 = vadd.f32 %v576_v13, %v575_v45  ;;  %v578_v29 = vsel %vm406_vm0, %v2610_v63, 0.0  ;;  %v562_v19 = vadd.f32 %v561_v24, %v560_v46  ;;  %v2619_v46 = vld [vmem:[#allocation52_spill] sm:$0xff]  ;;  %v2621_v63 = vld [vmem:[#allocation53_spill] sm:$0xff] }
  0x9c   :  { %v2611_v54 = vmax.f32 %v2461_v6, 0.0  ;;  %v2007_v61 = vadd.f32 %v510_v21, %v509_v47  ;;  %v2613_v30 = vmax.f32 %v2612_v32, 0.0  ;;  %v2615_v45 = vmax.f32 %v2614_v7, 0.0 }
  0x9d   :  { %v579_v38 = vadd.f32 %v578_v29, %v577_v48  ;;  %v530_v43 = vadd.f32 %v529_v37, %v528_v23  ;;  %v548_v55 = vrot.slane %v547_v11, 4  ;;  %v564_v10 = vadd.f32 %v563_v51, %v562_v19  ;;  %v2623_v51 = vld [vmem:[#allocation49_spill] sm:$0xff] }
  0x9e   :  { %v580_v2 = vsel %vm406_vm0, %v2611_v54, 0.0  ;;  %v567_v53 = vsel %vm406_vm0, %v2613_v30, 0.0  ;;  %v582_v13 = vsel %vm406_vm0, %v2615_v45, 0.0  ;;  %v2616_v56 = vmax.f32 %v2466_v16, 0.0 }
  0x9f   :  { %v581_v24 = vadd.f32 %v580_v2, %v579_v38  ;;  %v2618_v47 = vmax.f32 %v2617_v31, 0.0  ;;  %v2620_v40 = vmax.f32 %v2619_v46, 0.0  ;;  %v2622_v29 = vmax.f32 %v2621_v63, 0.0  ;;  %v2625_v38 = vld [vmem:[#allocation50_spill] sm:$0xff]  ;;  %v2630_v63 = vld [vmem:[#allocation56_spill] sm:$0xff] }
  0xa0   :  { %v596_v6 = vsel %vm406_vm0, %v2616_v56, 0.0  ;;  %v549_v23 = vadd.f32 %v548_v55, %v547_v11  ;;  %v566_v37 = vadd.f32 %v565_v28, %v564_v10  ;;  %v2624_v19 = vmax.f32 %v2623_v51, 0.0  ;;  %v2628_v11 = vld [vmem:[#allocation55_spill] sm:$0xff] }
  0xa1   :  { %v584_v21 = vsel %vm406_vm0, %v2618_v47, 0.0  ;;  %v597_v48 = vsel %vm406_vm0, %v2620_v40, 0.0  ;;  %v599_v54 = vsel %vm406_vm0, %v2622_v29, 0.0  ;;  %v531_v2 = vrot.slane %v530_v43, 1  ;;  %v2633_v29 = vld [vmem:[#allocation60_spill] sm:$0xff] }
  0xa2   :  { %v586_v16 = vsel %vm406_vm0, %v2624_v19, 0.0  ;;  %v598_v32 = vadd.f32 %v597_v48, %v596_v6  ;;  %v583_v30 = vadd.f32 %v582_v13, %v581_v24  ;;  %v2626_v7 = vmax.f32 %v2625_v38, 0.0  ;;  %v2635_v38 = vld [vmem:[#allocation57_spill] sm:$0xff] }
  0xa3   :  { %v2627_v56 = vmax.f32 %v2469_v25, 0.0  ;;  %v550_v47 = vrot.slane %v549_v23, 2  ;;  %v568_v46 = vadd.f32 %v567_v53, %v566_v37  ;;  %v2629_v28 = vmax.f32 %v2628_v11, 0.0 }
  0xa4   :  { %v588_v45 = vsel %vm406_vm0, %v2626_v7, 0.0  ;;  %v600_v40 = vadd.f32 %v599_v54, %v598_v32  ;;  %v585_v10 = vadd.f32 %v584_v21, %v583_v30  ;;  %v2631_v6 = vmax.f32 %v2630_v63, 0.0  ;;  %v2637_v30 = vld [vmem:[#allocation61_spill] sm:$0xff] }
  0xa5   :  { %v601_v31 = vsel %vm406_vm0, %v2627_v56, 0.0  ;;  %v603_v55 = vsel %vm406_vm0, %v2629_v28, 0.0  ;;  %v2632_v24 = vmax.f32 %v2473_v0, 0.0  ;;  %v2634_v25 = vmax.f32 %v2633_v29, 0.0 }
  0xa6   :  { %v605_v13 = vsel %vm406_vm0, %v2631_v6, 0.0  ;;  %v551_v19 = vadd.f32 %v550_v47, %v549_v23  ;;  %v569_v53 = vrot.slane %v568_v46, 4  ;;  %v602_v54 = vadd.f32 %v601_v31, %v600_v40 }
  0xa7   :  { %v617_v48 = vsel %vm406_vm0, %v2632_v24, 0.0  ;;  %v618_v51 = vsel %vm406_vm0, %v2634_v25, 0.0  ;;  %v587_v32 = vadd.f32 %v586_v16, %v585_v10  ;;  %v2636_v7 = vmax.f32 %v2635_v38, 0.0  ;;  %v2640_v16 = vld [vmem:[#allocation58_spill] sm:$0xff] }
  0xa8   :  { %v619_v37 = vadd.f32 %v618_v51, %v617_v48  ;;  %v2638_v56 = vmax.f32 %v2637_v30, 0.0  ;;  %v2639_v0 = vmax.f32 %v2475_v15, 0.0  ;;  %v2057_v63 = vadd.f32 %v531_v2, %v530_v43  ;;  %v2642_v48 = vld [vmem:[#allocation63_spill] sm:$0xff] }
  0xa9   :  { %v607_v21 = vsel %vm406_vm0, %v2636_v7, 0.0  ;;  %v570_v6 = vadd.f32 %v569_v53, %v568_v46  ;;  %v604_v23 = vadd.f32 %v603_v55, %v602_v54  ;;  %v552_v31 = vrot.slane %v551_v19, 1  ;;  %v2644_v7 = vld [vmem:[#allocation64_spill] sm:$0xff] }
  0xaa   :  { %v620_v11 = vsel %vm406_vm0, %v2638_v56, 0.0  ;;  %v622_v28 = vsel %vm406_vm0, %v2639_v0, 0.0  ;;  %v589_v40 = vadd.f32 %v588_v45, %v587_v32  ;;  %v2641_v10 = vmax.f32 %v2640_v16, 0.0  ;;  %v2647_v55 = vld [vmem:[#allocation68_spill] sm:$0xff] }
  0xab   :  { %v621_v47 = vadd.f32 %v620_v11, %v619_v37  ;;  %v2643_v29 = vmax.f32 %v2642_v48, 0.0  ;;  %v571_v51 = vrot.slane %v570_v6, 2  ;;  %v606_v38 = vadd.f32 %v605_v13, %v604_v23  ;;  %v2649_v37 = vld [vmem:[#allocation69_spill] sm:$0xff] }
  0xac   :  { %v609_v24 = vsel %vm406_vm0, %v2641_v10, 0.0  ;;  %v2645_v30 = vmax.f32 %v2644_v7, 0.0  ;;  %v590_v2 = vrot.slane %v589_v40, 4  ;;  %v2646_v46 = vmax.f32 %v2479_v60, 0.0  ;;  %v2653_v60 = vld [vmem:[#allocation66_spill] sm:$0xff] }
  0xad   :  { %v624_v25 = vsel %vm406_vm0, %v2643_v29, 0.0  ;;  %v623_v15 = vadd.f32 %v622_v28, %v621_v47  ;;  %v2648_v53 = vmax.f32 %v2647_v55, 0.0  ;;  %v2650_v32 = vmax.f32 %v2649_v37, 0.0  ;;  %v2651_v47 = vld [vmem:[#allocation65_spill] sm:$0xff]  ;;  %v2659_v37 = vld [vmem:[#allocation72_spill] sm:$0xff] }
  0xae   :  { %v626_v43 = vsel %vm406_vm0, %v2645_v30, 0.0  ;;  %v638_v45 = vsel %vm406_vm0, %v2646_v46, 0.0  ;;  %v572_v11 = vadd.f32 %v571_v51, %v570_v6  ;;  %v608_v13 = vadd.f32 %v607_v21, %v606_v38 }
  0xaf   :  { %v639_v54 = vsel %vm406_vm0, %v2648_v53, 0.0  ;;  %v641_v56 = vsel %vm406_vm0, %v2650_v32, 0.0  ;;  %v625_v0 = vadd.f32 %v624_v25, %v623_v15  ;;  %v591_v23 = vadd.f32 %v590_v2, %v589_v40  ;;  %v2656_v40 = vld [vmem:[#allocation71_spill] sm:$0xff] }
  0xb0   :  { %v640_v28 = vadd.f32 %v639_v54, %v638_v45  ;;  %v2652_v16 = vmax.f32 %v2651_v47, 0.0  ;;  %v2654_v48 = vmax.f32 %v2653_v60, 0.0  ;;  %v2655_v7 = vmax.f32 %v2481_v5, 0.0  ;;  %v2665_v47 = vld [vmem:[#allocation77_spill] sm:$0xff] }
  0xb1   :  { %v2086_v46 = vadd.f32 %v552_v31, %v551_v19  ;;  %v610_v55 = vadd.f32 %v609_v24, %v608_v13  ;;  %v627_v6 = vadd.f32 %v626_v43, %v625_v0  ;;  %v573_v25 = vrot.slane %v572_v11, 1  ;;  %v2661_v24 = vld [vmem:[#allocation73_spill] sm:$0xff]  ;;  %v2663_v13 = vld [vmem:[#allocation76_spill] sm:$0xff] }
  0xb2   :  { %v628_v10 = vsel %vm406_vm0, %v2652_v16, 0.0  ;;  %v630_v29 = vsel %vm406_vm0, %v2654_v48, 0.0  ;;  %v643_v30 = vsel %vm406_vm0, %v2655_v7, 0.0  ;;  %v642_v21 = vadd.f32 %v641_v56, %v640_v28 }
  0xb3   :  { %v592_v51 = vrot.slane %v591_v23, 2  ;;  %v2657_v38 = vmax.f32 %v2656_v40, 0.0  ;;  %v2658_v2 = vmax.f32 %v2485_v22, 0.0  ;;  %v611_v53 = vrot.slane %v610_v55, 4 }
  0xb4   :  { %v629_v54 = vadd.f32 %v628_v10, %v627_v6  ;;  %v644_v5 = vadd.f32 %v643_v30, %v642_v21  ;;  %v2660_v32 = vmax.f32 %v2659_v37, 0.0  ;;  %v2662_v43 = vmax.f32 %v2661_v24, 0.0 }
  0xb5   :  { %v645_v15 = vsel %vm406_vm0, %v2657_v38, 0.0  ;;  %v659_v45 = vsel %vm406_vm0, %v2658_v2, 0.0  ;;  %v593_v31 = vadd.f32 %v592_v51, %v591_v23  ;;  %v2664_v0 = vmax.f32 %v2663_v13, 0.0  ;;  %v2667_v23 = vld [vmem:[#allocation74_spill] sm:$0xff] }
  0xb6   :  { %v647_v19 = vsel %vm406_vm0, %v2660_v32, 0.0  ;;  %v649_v56 = vsel %vm406_vm0, %v2662_v43, 0.0  ;;  %v2666_v22 = vmax.f32 %v2665_v47, 0.0  ;;  %v612_v60 = vadd.f32 %v611_v53, %v610_v55  ;;  %v2670_v43 = vld [vmem:[#allocation79_spill] sm:$0xff]  ;;  %v2676_v47 = vld [vmem:[#allocation81_spill] sm:$0xff] }
  0xb7   :  { %v660_v28 = vsel %vm406_vm0, %v2664_v0, 0.0  ;;  %v631_v10 = vadd.f32 %v630_v29, %v629_v54  ;;  %v646_v48 = vadd.f32 %v645_v15, %v644_v5  ;;  %v2106_v30 = vadd.f32 %v573_v25, %v572_v11  ;;  %v2672_v15 = vld [vmem:[#allocation80_spill] sm:$0xff] }
  0xb8   :  { %v662_v16 = vsel %vm406_vm0, %v2666_v22, 0.0  ;;  %v661_v7 = vadd.f32 %v660_v28, %v659_v45  ;;  %v594_v6 = vrot.slane %v593_v31, 1  ;;  %v2668_v21 = vmax.f32 %v2667_v23, 0.0 }
  0xb9   :  { %v2669_v40 = vmax.f32 %v2487_v26, 0.0  ;;  %v613_v2 = vrot.slane %v612_v60, 2  ;;  %v632_v37 = vrot.slane %v631_v10, 4  ;;  %v648_v32 = vadd.f32 %v647_v19, %v646_v48 }
  0xba   :  { %v651_v51 = vsel %vm406_vm0, %v2668_v21, 0.0  ;;  %v663_v24 = vadd.f32 %v662_v16, %v661_v7  ;;  %v2671_v55 = vmax.f32 %v2670_v43, 0.0  ;;  %v2673_v11 = vmax.f32 %v2672_v15, 0.0 }
  0xbb   :  { %v664_v38 = vsel %vm406_vm0, %v2669_v40, 0.0  ;;  %v2674_v45 = vmax.f32 %v2491_v12, 0.0  ;;  %v2675_v26 = vmax.f32 %v2492_v49, 0.0  ;;  %v614_v5 = vadd.f32 %v613_v2, %v612_v60 }
  0xbc   :  { %v666_v29 = vsel %vm406_vm0, %v2671_v55, 0.0  ;;  %v668_v25 = vsel %vm406_vm0, %v2673_v11, 0.0  ;;  %v633_v13 = vadd.f32 %v632_v37, %v631_v10  ;;  %v650_v19 = vadd.f32 %v649_v56, %v648_v32 }
  0xbd   :  { %v680_v53 = vsel %vm406_vm0, %v2674_v45, 0.0  ;;  %v681_v54 = vsel %vm406_vm0, %v2675_v26, 0.0  ;;  %v665_v0 = vadd.f32 %v664_v38, %v663_v24  ;;  %v2126_v28 = vadd.f32 %v594_v6, %v593_v31 }
  0xbe   :  { %v2677_v22 = vmax.f32 %v2676_v47, 0.0  ;;  %v682_v48 = vadd.f32 %v681_v54, %v680_v53  ;;  %v2678_v7 = vmax.f32 %v1590_v9, 0.0  ;;  %v634_v23 = vrot.slane %v633_v13, 2 }
  0xbf   :  { %v652_v21 = vadd.f32 %v651_v51, %v650_v19  ;;  %v667_v49 = vadd.f32 %v666_v29, %v665_v0  ;;  %v2679_v40 = vmax.f32 %v2493_v17, 0.0  ;;  %v615_v56 = vrot.slane %v614_v5, 1 }
  0xc0   :  { %v670_v16 = vsel %vm406_vm0, %v2677_v22, 0.0  ;;  %v683_v12 = vsel %vm406_vm0, %v2678_v7, 0.0  ;;  %v2680_v31 = vmax.f32 %v2490_v14, 0.0  ;;  %v2681_v38 = vmax.f32 %v2494_v20, 0.0 }
  0xc1   :  { %v685_v60 = vsel %vm406_vm0, %v2679_v40, 0.0  ;;  %v684_v6 = vadd.f32 %v683_v12, %v682_v48  ;;  %v635_v9 = vadd.f32 %v634_v23, %v633_v13  ;;  %v653_v37 = vrot.slane %v652_v21, 4 }
  0xc2   :  { %v672_v10 = vsel %vm406_vm0, %v2680_v31, 0.0  ;;  %v687_v2 = vsel %vm406_vm0, %v2681_v38, 0.0  ;;  %v669_v32 = vadd.f32 %v668_v25, %v667_v49  ;;  %v2682_v51 = vmax.f32 %v2495_v57, 0.0  ;;  %v2686_v25 = vld [vmem:[#allocation88_spill] sm:$0xff] }
  0xc3   :  { %v686_v17 = vadd.f32 %v685_v60, %v684_v6  ;;  %v2683_v43 = vmax.f32 %v2497_v34, 0.0  ;;  %v2684_v14 = vmax.f32 %v2498_v1, 0.0  ;;  %v2685_v20 = vmax.f32 %v1629_v35, 0.0  ;;  %v2688_v34 = vld [vmem:[#allocation89_spill] sm:$0xff]  ;;  %v869_v35 = vld [vmem:[%s2237_s2] sm:$0xff] }
  0xc4   :  { %v689_v24 = vsel %vm406_vm0, %v2682_v51, 0.0  ;;  %v654_v11 = vadd.f32 %v653_v37, %v652_v21  ;;  %v671_v45 = vadd.f32 %v670_v16, %v669_v32  ;;  %v2687_v53 = vmax.f32 %v2686_v25, 0.0  ;;  %851 = vmatpush.bf16.msra.mxu0 %v869_v35 }
  0xc5   :  { %v701_v55 = vsel %vm406_vm0, %v2683_v43, 0.0  ;;  %v702_v29 = vsel %vm406_vm0, %v2684_v14, 0.0  ;;  %v704_v15 = vsel %vm406_vm0, %v2685_v20, 0.0  ;;  %v636_v54 = vrot.slane %v635_v9, 1  ;;  %v2698_v14 = vld [vmem:[#allocation92_spill] sm:$0xff] }
  0xc6   :  { %v691_v57 = vsel %vm406_vm0, %v2687_v53, 0.0  ;;  %v703_v26 = vadd.f32 %v702_v29, %v701_v55  ;;  %v688_v13 = vadd.f32 %v687_v2, %v686_v17  ;;  %v2689_v19 = vmax.f32 %v2688_v34, 0.0 }
  0xc7   :  { %v2690_v1 = vmax.f32 %v1632_v27, 0.0  ;;  %v616_v22 = vadd.f32 %v615_v56, %v614_v5  ;;  %v655_v16 = vrot.slane %v654_v11, 2  ;;  %v673_v48 = vadd.f32 %v672_v10, %v671_v45 }
  0xc8   :  { %v693_v0 = vsel %vm406_vm0, %v2689_v19, 0.0  ;;  %v705_v7 = vadd.f32 %v704_v15, %v703_v26  ;;  %v690_v12 = vadd.f32 %v689_v24, %v688_v13  ;;  %v2691_v23 = vmax.f32 %v1635_v44, 0.0 }
  0xc9   :  { %v706_v47 = vsel %vm406_vm0, %v2690_v1, 0.0  ;;  %v2692_v49 = vmax.f32 %v1638_v50, 0.0  ;;  %v2693_v27 = vmax.f32 %v1647_v33, 0.0  ;;  %v656_v31 = vadd.f32 %v655_v16, %v654_v11  ;;  %v2700_v11 = vld [vmem:[#allocation94_spill] sm:$0xff] }
  0xca   :  { %v708_v21 = vsel %vm406_vm0, %v2691_v23, 0.0  ;;  %v674_v6 = vrot.slane %v673_v48, 4  ;;  %v707_v5 = vadd.f32 %v706_v47, %v705_v7  ;;  %v2694_v56 = vmax.f32 %v1650_v36, 0.0 }
  0xcb   :  { %v710_v40 = vsel %vm406_vm0, %v2692_v49, 0.0  ;;  %v722_v60 = vsel %vm406_vm0, %v2693_v27, 0.0  ;;  %v637_v38 = vadd.f32 %v636_v54, %v635_v9  ;;  %v692_v44 = vadd.f32 %v691_v57, %v690_v12 }
  0xcc   :  { %v723_v10 = vsel %vm406_vm0, %v2694_v56, 0.0  ;;  %v2695_v37 = vmax.f32 %v2499_v18, 0.0  ;;  %v657_v32 = vrot.slane %v656_v31, 1  ;;  %v675_v51 = vadd.f32 %v674_v6, %v673_v48 }
  0xcd   :  { %v724_v2 = vadd.f32 %v723_v10, %v722_v60  ;;  %v709_v33 = vadd.f32 %v708_v21, %v707_v5  ;;  %v2696_v24 = vmax.f32 %v1656_v58, 0.0  ;;  %v694_v43 = vadd.f32 %v693_v0, %v692_v44 }
  0xce   :  { %v725_v50 = vsel %vm406_vm0, %v2695_v37, 0.0  ;;  %v2697_v55 = vmax.f32 %v1641_v42, 0.0  ;;  %v2699_v9 = vmax.f32 %v2698_v14, 0.0  ;;  %v676_v18 = vrot.slane %v675_v51, 2 }
  0xcf   :  { %v727_v17 = vsel %vm406_vm0, %v2696_v24, 0.0  ;;  %v726_v20 = vadd.f32 %v725_v50, %v724_v2  ;;  %v711_v15 = vadd.f32 %v710_v40, %v709_v33  ;;  %v2701_v45 = vmax.f32 %v2700_v11, 0.0 }
  0xd0   :  { %v712_v36 = vsel %vm406_vm0, %v2697_v55, 0.0  ;;  %v714_v29 = vsel %vm406_vm0, %v2699_v9, 0.0  ;;  %v2702_v58 = vmax.f32 %v1662_v52, 0.0  ;;  %v658_v57 = vadd.f32 %v657_v32, %v656_v31 }
  0xd1   :  { %v729_v25 = vsel %vm406_vm0, %v2701_v45, 0.0  ;;  %v695_v26 = vrot.slane %v694_v43, 4  ;;  %v728_v42 = vadd.f32 %v727_v17, %v726_v20  ;;  %v2703_v54 = vmax.f32 %v2504_v41, 0.0 }
  0xd2   :  { %v731_v53 = vsel %vm406_vm0, %v2702_v58, 0.0  ;;  %v677_v34 = vadd.f32 %v676_v18, %v675_v51  ;;  %v713_v19 = vadd.f32 %v712_v36, %v711_v15  ;;  %v735_v0 = vsel %vm406_vm0, %v405_v3, 0.0 }
  0xd3   :  { %v733_v13 = vsel %vm406_vm0, %v2703_v54, 0.0  ;;  %v743_v1 = vmul.f32 0.015625, %v1951_v62  ;;  %v696_v47 = vadd.f32 %v695_v26, %v694_v43  ;;  %v730_v35 = vadd.f32 %v729_v25, %v728_v42 }
  0xd4   :  { %v744_v52 = vmul.f32 0.015625, %v1959_v8  ;;  %v745_v16 = vmul.f32 0.015625, %v1973_v4  ;;  %v678_v48 = vrot.slane %v677_v34, 1  ;;  %v715_v7 = vadd.f32 %v714_v29, %v713_v19 }
  0xd5   :  { %v746_v41 = vmul.f32 0.015625, %v1984_v39  ;;  %v747_v12 = vmul.f32 0.015625, %v2007_v61  ;;  %v697_v23 = vrot.slane %v696_v47, 2  ;;  %v732_v21 = vadd.f32 %v731_v53, %v730_v35 }
  0xd6   :  { %v748_v59 = vmul.f32 0.015625, %v2057_v63  ;;  %v749_v3 = vmul.f32 0.015625, %v2086_v46  ;;  %v679_v49 = vadd.f32 %v678_v48, %v677_v34  ;;  %v716_v62 = vrot.slane %v715_v7, 4 }
  0xd7   :  { %v2211_v40 = vmul.f32 0.015625, %v2106_v30  ;;  %v751_v8 = vmul.f32 0.015625, %v2126_v28  ;;  %v698_v4 = vadd.f32 %v697_v23, %v696_v47  ;;  %v734_v27 = vadd.f32 %v733_v13, %v732_v21 }
  0xd8   :  { %v752_v60 = vmul.f32 0.015625, %v616_v22  ;;  %v753_v31 = vmul.f32 0.015625, %v637_v38  ;;  %v717_v39 = vadd.f32 %v716_v62, %v715_v7  ;;  %v754_v6 = vmul.f32 0.015625, %v658_v57 }
  0xd9   :  { %v759_v61 = vpack.c.bf16 %v743_v1, %v743_v1  ;;  %v760_v5 = vpack.c.bf16 %v744_v52, %v744_v52  ;;  %v699_v56 = vrot.slane %v698_v4, 1  ;;  %v736_v10 = vadd.f32 %v735_v0, %v734_v27 }
  0xda   :  { %v755_v63 = vmul.f32 0.015625, %v679_v49  ;;  %v761_v44 = vpack.c.bf16 %v745_v16, %v745_v16  ;;  %v718_v46 = vrot.slane %v717_v39, 2  ;;  %v762_v2 = vpack.c.bf16 %v746_v41, %v746_v41 }
  0xdb   :  { %v763_v37 = vpack.c.bf16 %v747_v12, %v747_v12  ;;  %v764_v50 = vpack.c.bf16 %v748_v59, %v748_v59  ;;  %v700_v30 = vadd.f32 %v699_v56, %v698_v4  ;;  %v737_v32 = vrot.slane %v736_v10, 4 }
  0xdc   :  { %v765_v51 = vpack.c.bf16 %v749_v3, %v749_v3  ;;  %v766_v28 = vpack.c.bf16 %v2211_v40, %v2211_v40  ;;  %v719_v22 = vadd.f32 %v718_v46, %v717_v39  ;;  %v767_v38 = vpack.c.bf16 %v751_v8, %v751_v8 }
  0xdd   :  { %v768_v33 = vpack.c.bf16 %v752_v60, %v752_v60  ;;  %v769_v24 = vpack.c.bf16 %v753_v31, %v753_v31  ;;  %v738_v17 = vadd.f32 %v737_v32, %v736_v10  ;;  %v756_v43 = vmul.f32 0.015625, %v700_v30 }
  0xde   :  { %v770_v55 = vpack.c.bf16 %v754_v6, %v754_v6  ;;  %v771_v36 = vpack.c.bf16 %v755_v63, %v755_v63  ;;  %v720_v14 = vrot.slane %v719_v22, 1  ;;  %v797_v9 = vunpack.c.l.b16 %v759_v61  ;;  %v871_v61 = vld [vmem:[%s2236_s3] ss:$0 sm:$0xff] }
  0xdf   :  { %v798_v29 = vunpack.c.l.b16 %v760_v5  ;;  %v799_v20 = vunpack.c.l.b16 %v761_v44  ;;  %v739_v18 = vrot.slane %v738_v17, 2  ;;  %v800_v15 = vunpack.c.l.b16 %v762_v2 }
  0xe0   :  { %v801_v11 = vunpack.c.l.b16 %v763_v37  ;;  %v802_v45 = vunpack.c.l.b16 %v764_v50  ;;  %v721_v25 = vadd.f32 %v720_v14, %v719_v22  ;;  %v772_v58 = vpack.c.bf16 %v756_v43, %v756_v43 }
  0xe1   :  { %v803_v53 = vunpack.c.l.b16 %v765_v51  ;;  %v805_v57 = vunpack.c.l.b16 %v767_v38  ;;  %v740_v26 = vadd.f32 %v739_v18, %v738_v17  ;;  %v806_v42 = vunpack.c.l.b16 %v768_v33 }
  0xe2   :  { %v807_v54 = vunpack.c.l.b16 %v769_v24  ;;  %v808_v13 = vunpack.c.l.b16 %v770_v55  ;;  %v757_v34 = vmul.f32 0.015625, %v721_v25  ;;  %v809_v0 = vunpack.c.l.b16 %v771_v36 }
  0xe3   :  { %v741_v19 = vrot.slane %v740_v26, 1  ;;  %v814_v1 = vsel %vm813_vm1, %v798_v29, %v797_v9  ;;  %v810_v35 = vunpack.c.l.b16 %v772_v58  ;;  %v827_v7 = vsel %vm813_vm1, %v806_v42, %v805_v57 }
  0xe4   :  { %v773_v47 = vpack.c.bf16 %v757_v34, %v757_v34  ;;  %v816_v52 = vsel %vm815_vm2, %v799_v20, %v814_v1  ;;  %v828_v23 = vsel %vm815_vm2, %v807_v54, %v827_v7  ;;  %v804_v59 = vunpack.c.l.b16 %v766_v28 }
  0xe5   :  { %v742_v16 = vadd.f32 %v741_v19, %v740_v26  ;;  %v818_v48 = vsel %vm817_vm3, %v800_v15, %v816_v52  ;;  %v829_v49 = vsel %vm817_vm3, %v808_v13, %v828_v23 }
  0xe6   :  { %v811_v41 = vunpack.c.l.b16 %v773_v47  ;;  %v820_v12 = vsel %vm819_vm4, %v801_v11, %v818_v48  ;;  %v830_v40 = vsel %vm819_vm4, %v809_v0, %v829_v49 }
  0xe7   :  { %v758_v21 = vmul.f32 0.015625, %v742_v16  ;;  %v822_v3 = vsel %vm821_vm5, %v802_v45, %v820_v12  ;;  %v831_v4 = vsel %vm821_vm5, %v810_v35, %v830_v40 }
  0xe8   :  { %v824_v62 = vsel %vm823_vm6, %v803_v53, %v822_v3  ;;  %v832_v27 = vsel %vm823_vm6, %v811_v41, %v831_v4 }
  0xe9   :  { %v774_v8 = vpack.c.bf16 %v758_v21, %v758_v21  ;;  %v826_v31 = vsel %vm825_vm7, %v804_v59, %v824_v62 }
  0xeb   :  { %v812_v60 = vunpack.c.l.b16 %v774_v8 }
  0xed   :  { %v833_v39 = vsel %vm825_vm7, %v812_v60, %v832_v27 }
  0xee   :  { %v834_v6 = vpack.c.b16 %v833_v39, %v826_v31 }
  0xf0   :  { %868 = vmatmul.msk.bf16.vlgmr.msra.gmra.mxu0 %vm406_vm0, %v834_v6 }
 0x16d   :  { %v853_v5 = vpop.f32.mrf.mxu0 }
 0x16e   :  { %v854_v56 = vadd.f32 %v871_v61, %v853_v5 }
 0x170   :  { %858 = vst [vmem:[%s2238_s4] sm:$0xff] %v854_v56 }
 0x175   :  { %v855_v10 = vpop.f32.mrf.mxu0 }
 0x176   :  { %v856_v63 = vadd.f32 %v871_v61, %v855_v10 }
 0x178   :  { %859 = vst [vmem:[%s2238_s4 + $0x8] sm:$0xff] %v856_v63 }

// kernel: _lambda_.9
= control target key start
LH: loop header
LB: loop body
LE: loop exit
PB: predicated region body
PF: predicated region fallthrough
CT: control target
= control target key end

     0   :  { %vm165_vm0 = vcmask 261120   ;;  %v172_v49 = vlaneseq  ;;  %s448_s1 = inlined_call_operand.vmem [shape: bf16[128,128], index: 1, kind: input, shape index: {}]   ;;  %s449_s4 = inlined_call_operand.vmem [shape: f32[128,32], index: 4, kind: input, shape index: {}]   ;;  %s450_s2 = inlined_call_operand.vmem [shape: f32[1,128], index: 2, kind: input, shape index: {}]   ;;  %s451_s0 = inlined_call_operand.vmem [shape: f32[16,128], index: 0, kind: input, shape index: {}]   ;;  %s452_s5 = inlined_call_operand.vmem [shape: f32[1,32], index: 5, kind: input, shape index: {}]   ;;  %s453_s3 = inlined_call_operand.vmem [shape: f32[32,128], index: 3, kind: input, shape index: {}]   ;;  %s454_s6 = inlined_call_operand.vmem [shape: f32[16,128], index: 6, kind: output, shape index: {}]  }
   0x1   :  { %v300_v0 = vld [vmem:[%s448_s1 + $0x38] sm:$0xff]  ;;  %v299_v1 = vld [vmem:[%s448_s1 + $0x30] sm:$0xff]  ;;  %v127_v4 = vld [vmem:[%s449_s4 + $0x68] sm:$0xff] }
   0x2   :  { %94 = vmatpush.bf16.msra.mxu0 %v300_v0  ;;  %v129_v2 = vld [vmem:[%s449_s4 + $0x78] sm:$0xff]  ;;  %v128_v3 = vld [vmem:[%s449_s4 + $0x70] sm:$0xff]  ;;  %v298_v5 = vld [vmem:[%s448_s1 + $0x28] sm:$0xff]  ;;  %v173_v50 = vand.u32 127, %v172_v49 }
   0x3   :  { %130 = vmatpush.msra.mxu1 %v129_v2  ;;  %v126_v6 = vld [vmem:[%s449_s4 + $0x60] sm:$0xff]  ;;  %v125_v7 = vld [vmem:[%s449_s4 + $0x58] sm:$0xff]  ;;  %v124_v9 = vld [vmem:[%s449_s4 + $0x50] sm:$0xff] }
   0x4   :  { %v297_v8 = vld [vmem:[%s448_s1 + $0x20] sm:$0xff]  ;;  %v123_v10 = vld [vmem:[%s449_s4 + $0x48] sm:$0xff]  ;;  %v296_v11 = vld [vmem:[%s448_s1 + $0x18] sm:$0xff]  ;;  %vm218_vm7 = vcmp.eq.s32.totalorder %v173_v50, 16 }
   0x5   :  { %131 = vmatpush.msra.mxu1 %v128_v3  ;;  %v122_v12 = vld [vmem:[%s449_s4 + $0x40] sm:$0xff]  ;;  %v121_v13 = vld [vmem:[%s449_s4 + $0x38] sm:$0xff]  ;;  %v295_v14 = vld [vmem:[%s448_s1 + $0x10] sm:$0xff] }
   0x6   :  { %95 = vmatpush.bf16.msra.mxu0 %v299_v1  ;;  %v120_v15 = vld [vmem:[%s449_s4 + $0x30] sm:$0xff]  ;;  %v119_v16 = vld [vmem:[%s449_s4 + $0x28] sm:$0xff]  ;;  %v118_v18 = vld [vmem:[%s449_s4 + $0x20] sm:$0xff] }
   0x7   :  { %132 = vmatpush.msra.mxu1 %v127_v4  ;;  %v294_v17 = vld [vmem:[%s448_s1 + $0x8] sm:$0xff]  ;;  %v117_v19 = vld [vmem:[%s449_s4 + $0x18] sm:$0xff]  ;;  %v293_v20 = vld [vmem:[%s448_s1] sm:$0xff] }
   0x8   :  { %v23_v21 = vld [vmem:[%s451_s0] sm:$0xff]  ;;  %v24_v22 = vld [vmem:[%s451_s0 + $0x8] sm:$0xff]  ;;  %v116_v23 = vld [vmem:[%s449_s4 + $0x10] sm:$0xff] }
   0x9   :  { %133 = vmatpush.msra.mxu1 %v126_v6  ;;  %v25_v24 = vpack.c.bf16 %v24_v22, %v23_v21  ;;  %v115_v25 = vld [vmem:[%s449_s4 + $0x8] sm:$0xff]  ;;  %v114_v26 = vld [vmem:[%s449_s4] sm:$0xff]  ;;  %v217_v61 = vld [vmem:[%s453_s3 + $0x18] sm:$0xff] }
   0xa   :  { %96 = vmatpush.bf16.msra.mxu0 %v298_v5  ;;  %v302_v27 = vld [vmem:[%s450_s2] ss:$0 sm:$0xff]  ;;  %240 = vmatpush.msra.mxu2 %v217_v61  ;;  %v216_v6 = vld [vmem:[%s453_s3 + $0x10] sm:$0xff] }
   0xb   :  { %134 = vmatpush.msra.mxu1 %v125_v7  ;;  %v303_v37 = vld [vmem:[%s452_s5] ss:$0 sm:$0xff]  ;;  %v215_v7 = vld [vmem:[%s453_s3 + $0x8] sm:$0xff] }
   0xc   :  { %241 = vmatpush.msra.mxu2 %v216_v6 }
   0xd   :  { %135 = vmatpush.msra.mxu1 %v124_v9 }
   0xe   :  { %97 = vmatpush.bf16.msra.mxu0 %v297_v8  ;;  %v214_v8 = vld [vmem:[%s453_s3] sm:$0xff]  ;;  %242 = vmatpush.msra.mxu2 %v215_v7 }
   0xf   :  { %136 = vmatpush.msra.mxu1 %v123_v10 }
  0x10   :  { %243 = vmatpush.msra.mxu2 %v214_v8 }
  0x11   :  { %137 = vmatpush.msra.mxu1 %v122_v12 }
  0x12   :  { %98 = vmatpush.bf16.msra.mxu0 %v296_v11 }
  0x13   :  { %138 = vmatpush.msra.mxu1 %v121_v13 }
  0x15   :  { %139 = vmatpush.msra.mxu1 %v120_v15  ;;  %v304_v15 = vmov 0.0  }
  0x16   :  { %99 = vmatpush.bf16.msra.mxu0 %v295_v14  ;;  %v219_v22 = vsel %vm218_vm7, 1.0, %v304_v15 }
  0x17   :  { %140 = vmatpush.msra.mxu1 %v119_v16 }
  0x19   :  { %141 = vmatpush.msra.mxu1 %v118_v18 }
  0x1a   :  { %100 = vmatpush.bf16.msra.mxu0 %v294_v17 }
  0x1b   :  { %142 = vmatpush.msra.mxu1 %v117_v19 }
  0x1d   :  { %143 = vmatpush.msra.mxu1 %v116_v23 }
  0x1e   :  { %101 = vmatpush.bf16.msra.mxu0 %v293_v20 }
  0x1f   :  { %144 = vmatpush.msra.mxu1 %v115_v25 }
  0x21   :  { %102 = vmatmul.bf16.vlgmr.msra.gmra.mxu0 %v25_v24  ;;  %145 = vmatpush.msra.mxu1 %v114_v26 }
  0x9e   :  { %v103_v28 = vpop.f32.mrf.mxu0 }
  0x9f   :  { %v104_v29 = vadd.f32 %v302_v27, %v103_v28 }
  0xa1   :  { %146 = vmatmul.f32.vlgmr.msra.gmra.mxu1 %v104_v29  ;;  %v108_v30 = vmul.f32 %v104_v29, %v104_v29 }
  0xa3   :  { %110 = vadd.xlane.f32.xlu0 %v108_v30 }
  0xa6   :  { %v105_v31 = vpop.f32.mrf.mxu0 }
  0xa7   :  { %v106_v32 = vadd.f32 %v302_v27, %v105_v31 }
  0xa9   :  { %149 = vmatmul.f32.gmra.mxu1 %v106_v32  ;;  %v109_v33 = vmul.f32 %v106_v32, %v106_v32 }
  0xab   :  { %112 = vadd.xlane.f32.xlu0 %v109_v33 }
 0x116   :  { %v111_v34 = vpop.xlane.xlu0 %110 }
 0x11e   :  { %v147_v35 = vpop.f32.mrf.mxu1  ;;  %v113_v44 = vpop.xlane.xlu0 %112 }
 0x11f   :  { %v153_v36 = vmul.f32 2.0, %v147_v35 }
 0x121   :  { %v155_v38 = vsub.f32 %v111_v34, %v153_v36 }
 0x123   :  { %v161_v39 = vadd.f32 %v303_v37, %v155_v38 }
 0x125   :  { %v163_v40 = vmax.f32 %v161_v39, 0.0 }
 0x126   :  { %v150_v41 = vpop.f32.mrf.mxu1 }
 0x127   :  { %v154_v42 = vmul.f32 2.0, %v150_v41  ;;  %v166_v43 = vsel %vm165_vm0, %v163_v40, inf }
 0x128   :  { %167 = vmin.xlane.f32.xlu1 %v166_v43 }
 0x129   :  { %v156_v45 = vsub.f32 %v113_v44, %v154_v42 }
 0x12b   :  { %v162_v46 = vadd.f32 %v303_v37, %v156_v45 }
 0x12d   :  { %v164_v47 = vmax.f32 %v162_v46, 0.0 }
 0x12f   :  { %v169_v48 = vsel %vm165_vm0, %v164_v47, inf }
 0x130   :  { %170 = vmin.xlane.f32.xlu1 %v169_v48 }
 0x19b   :  { %v168_v51 = vpop.xlane.xlu1 %167 }
 0x19c   :  { %vm174_vm1 = vcmp.le.f32.partialorder %v163_v40, %v168_v51  ;;  %v220_v23 = vmul.f32 %v219_v22, %v168_v51 }
 0x19d   :  { %v176_v52 = vsel %vm174_vm1, %v173_v50, 32 }
 0x19e   :  { %v178_v53 = vsel %vm165_vm0, %v176_v52, 2147483647 }
 0x19f   :  { %v180_v54 = vshra.s32 %v178_v53, 16  ;;  %v179_v62 = vand.u32 65535, %v178_v53 }
 0x1a1   :  { %v182_v55 = vcvt.s32.f32 %v180_v54  ;;  %v181_v0 = vcvt.s32.f32 %v179_v62 }
 0x1a3   :  { %183 = vmin.xlane.f32.xlu2 %v182_v55  ;;  %v171_v56 = vpop.xlane.xlu1 %170 }
 0x1a4   :  { %vm175_vm2 = vcmp.le.f32.partialorder %v164_v47, %v171_v56  ;;  %v221_v26 = vmul.f32 %v219_v22, %v171_v56 }
 0x1a5   :  { %v177_v57 = vsel %vm175_vm2, %v173_v50, 32 }
 0x1a6   :  { %v193_v58 = vsel %vm165_vm0, %v177_v57, 2147483647 }
 0x1a7   :  { %v195_v59 = vshra.s32 %v193_v58, 16  ;;  %v194_v2 = vand.u32 65535, %v193_v58 }
 0x1a9   :  { %v197_v60 = vcvt.s32.f32 %v195_v59  ;;  %v196_v4 = vcvt.s32.f32 %v194_v2 }
 0x1ab   :  { %198 = vmin.xlane.f32.xlu2 %v197_v60 }
 0x216   :  { %v184_v63 = vpop.xlane.xlu2 %183 }
 0x217   :  { %vm185_vm3 = vcmp.eq.f32.partialorder %v182_v55, %v184_v63  ;;  %v190_v9 = vcvt.f32.s32 %v184_v63 }
 0x218   :  { %v186_v1 = vsel %vm185_vm3, %v181_v0, inf }
 0x219   :  { %187 = vmin.xlane.f32.xlu0 %v186_v1  ;;  %v191_v11 = vshll.u32 %v190_v9, 16 }
 0x21e   :  { %v199_v3 = vpop.xlane.xlu2 %198 }
 0x21f   :  { %vm200_vm4 = vcmp.eq.f32.partialorder %v197_v60, %v199_v3  ;;  %v205_v14 = vcvt.f32.s32 %v199_v3 }
 0x220   :  { %v201_v5 = vsel %vm200_vm4, %v196_v4, inf }
 0x221   :  { %202 = vmin.xlane.f32.xlu1 %v201_v5  ;;  %v206_v18 = vshll.u32 %v205_v14, 16 }
 0x28c   :  { %v188_v10 = vpop.xlane.xlu0 %187 }
 0x28d   :  { %v189_v12 = vcvt.f32.s32 %v188_v10 }
 0x28f   :  { %v192_v13 = vadd.s32 %v191_v11, %v189_v12 }
 0x291   :  { %vm208_vm5 = vcmp.eq.s32.totalorder %v173_v50, %v192_v13 }
 0x292   :  { %v289_v16 = vsel %vm208_vm5, 1.0, %v304_v15 }
 0x293   :  { %291 = vmatmul.msk.f32.vlgmr.msra.gmra.mxu2 %vm165_vm0, %v289_v16 }
 0x294   :  { %v203_v17 = vpop.xlane.xlu1 %202 }
 0x295   :  { %v204_v19 = vcvt.f32.s32 %v203_v17 }
 0x297   :  { %v207_v20 = vadd.s32 %v206_v18, %v204_v19 }
 0x299   :  { %vm209_vm6 = vcmp.eq.s32.totalorder %v173_v50, %v207_v20 }
 0x29a   :  { %v290_v21 = vsel %vm209_vm6, 1.0, %v304_v15 }
 0x29b   :  { %292 = vmatmul.msk.f32.gmra.mxu2 %vm165_vm0, %v290_v21 }
 0x316   :  { %v245_v24 = vpop.f32.mrf.mxu2 }
 0x317   :  { %v246_v25 = vadd.f32 %v245_v24, %v220_v23 }
 0x319   :  { %251 = vst [vmem:[%s454_s6] sm:$0xff] %v246_v25 }
 0x31e   :  { %v248_v27 = vpop.f32.mrf.mxu2 }
 0x31f   :  { %v249_v28 = vadd.f32 %v248_v27, %v221_v26 }
 0x321   :  { %252 = vst [vmem:[%s454_s6 + $0x8] sm:$0xff] %v249_v28 }

// kernel: _lambda_.10
= control target key start
LH: loop header
LB: loop body
LE: loop exit
PB: predicated region body
PF: predicated region fallthrough
CT: control target
= control target key end

     0   :  { %s207_s1 = inlined_call_operand.vmem [shape: bf16[128,128], index: 1, kind: input, shape index: {}]   ;;  %s208_s2 = inlined_call_operand.vmem [shape: f32[1,128], index: 2, kind: input, shape index: {}]   ;;  %s209_s0 = inlined_call_operand.vmem [shape: f32[16,128], index: 0, kind: input, shape index: {}]   ;;  %s210_s3 = inlined_call_operand.vmem [shape: f32[16,128], index: 3, kind: output, shape index: {}]  }
   0x1   :  { %v146_v0 = vld [vmem:[%s207_s1 + $0x38] sm:$0xff]  ;;  %v145_v1 = vld [vmem:[%s207_s1 + $0x30] sm:$0xff]  ;;  %v144_v2 = vld [vmem:[%s207_s1 + $0x28] sm:$0xff] }
   0x2   :  { %85 = vmatpush.bf16.msra.mxu0 %v146_v0  ;;  %v143_v3 = vld [vmem:[%s207_s1 + $0x20] sm:$0xff]  ;;  %v142_v4 = vld [vmem:[%s207_s1 + $0x18] sm:$0xff]  ;;  %v141_v5 = vld [vmem:[%s207_s1 + $0x10] sm:$0xff] }
   0x3   :  { %v140_v6 = vld [vmem:[%s207_s1 + $0x8] sm:$0xff]  ;;  %v139_v7 = vld [vmem:[%s207_s1] sm:$0xff] }
   0x4   :  { %v14_v8 = vld [vmem:[%s209_s0] sm:$0xff]  ;;  %v15_v9 = vld [vmem:[%s209_s0 + $0x8] sm:$0xff] }
   0x5   :  { %v16_v10 = vpack.c.bf16 %v15_v9, %v14_v8  ;;  %v147_v11 = vld [vmem:[%s208_s2] ss:$0 sm:$0xff] }
   0x6   :  { %86 = vmatpush.bf16.msra.mxu0 %v145_v1 }
   0xa   :  { %87 = vmatpush.bf16.msra.mxu0 %v144_v2 }
   0xe   :  { %88 = vmatpush.bf16.msra.mxu0 %v143_v3 }
  0x12   :  { %89 = vmatpush.bf16.msra.mxu0 %v142_v4 }
  0x16   :  { %90 = vmatpush.bf16.msra.mxu0 %v141_v5 }
  0x1a   :  { %91 = vmatpush.bf16.msra.mxu0 %v140_v6 }
  0x1e   :  { %92 = vmatpush.bf16.msra.mxu0 %v139_v7 }
  0x21   :  { %93 = vmatmul.bf16.vlgmr.msra.gmra.mxu0 %v16_v10 }
  0x9e   :  { %v94_v12 = vpop.f32.mrf.mxu0 }
  0x9f   :  { %v95_v13 = vadd.f32 %v147_v11, %v94_v12 }
  0xa1   :  { %v99_v14 = vmax.f32 %v95_v13, 0.0 }
  0xa3   :  { %101 = vst [vmem:[%s210_s3] sm:$0xff] %v99_v14 }
  0xa6   :  { %v96_v15 = vpop.f32.mrf.mxu0 }
  0xa7   :  { %v97_v16 = vadd.f32 %v147_v11, %v96_v15 }
  0xa9   :  { %v100_v17 = vmax.f32 %v97_v16, 0.0 }
  0xab   :  { %102 = vst [vmem:[%s210_s3 + $0x8] sm:$0xff] %v100_v17 }

// kernel: _lambda_.8
= control target key start
LH: loop header
LB: loop body
LE: loop exit
PB: predicated region body
PF: predicated region fallthrough
CT: control target
= control target key end

     0   :  { %s1438_s21 = smov [#allocation3]   ;;  %s1719_s0 = inlined_call_operand.vmem [shape: s32[2], index: 0, kind: input, shape index: {}]   ;;  %s1720_s1 = inlined_call_operand.vmem [shape: f32[2,8,128], index: 1, kind: input, shape index: {}]   ;;  %s1721_s2 = inlined_call_operand.vmem [shape: f32[8,128], index: 2, kind: input, shape index: {}]   ;;  %s1722_s3 = inlined_call_operand.vmem [shape: bf16[128,128], index: 3, kind: input, shape index: {}]   ;;  %s1723_s4 = inlined_call_operand.vmem [shape: f32[1,128], index: 4, kind: input, shape index: {}]   ;;  %s1724_s5 = inlined_call_operand.vmem [shape: bf16[128,128], index: 5, kind: input, shape index: {}]   ;;  %s1725_s6 = inlined_call_operand.vmem [shape: f32[1,128], index: 6, kind: input, shape index: {}]   ;;  %s1726_s7 = inlined_call_operand.vmem [shape: f32[1,128], index: 7, kind: input, shape index: {}]   ;;  %s1727_s8 = inlined_call_operand.vmem [shape: f32[1,128], index: 8, kind: input, shape index: {}]   ;;  %s1728_s9 = inlined_call_operand.vmem [shape: bf16[128,128], index: 9, kind: input, shape index: {}]   ;;  %s1729_s10 = inlined_call_operand.vmem [shape: f32[1,128], index: 10, kind: input, shape index: {}]   ;;  %s1730_s11 = inlined_call_operand.vmem [shape: bf16[128,128], index: 11, kind: input, shape index: {}]   ;;  %s1731_s12 = inlined_call_operand.vmem [shape: f32[1,128], index: 12, kind: input, shape index: {}]   ;;  %s1732_s13 = inlined_call_operand.vmem [shape: f32[1,128], index: 13, kind: input, shape index: {}]   ;;  %s1733_s14 = inlined_call_operand.vmem [shape: f32[1,128], index: 14, kind: input, shape index: {}]   ;;  %s1734_s15 = inlined_call_operand.vmem [shape: f32[2,8,128], index: 15, kind: output, shape index: {}]  }
   0x1   :  { %s21_s20 = sshll.u32 %s1719_s0, 4  ;;  %s22_s20 = int_to_ptr.vmem [resolvable:$true] %s21_s20 }
   0x2   :  { %24 = dma.vmem_to_smem %s22_s20, 16, %s1438_s21, [#allocation2] }
   0x3   :  { %1432 = dma.done.wait [#allocation2], 16 }
   0x4   :  { %1433 = vsyncadd [#allocation2], 4294967280 }
   0x5   :  { %27 = sfence }
   0x6   :  { %s1537_s22 = smov 0  }
   0x7 LB: > { %s1543_s23 = sadd.s32 4294967295, %s1436_s22   ;;  %p1216_p0 = scmp.ge.s32.totalorder %s1436_s22, 1  ;;  %s1436_s22 = sphi %s1537_s22, %s33_s22  }
   0x8   : > { %p420_p1 = scmp.lt.s32.totalorder %s1436_s22, 3 }
   0xa   : > { %p421_p2 = pnand %p1216_p0, %p420_p1 }
   0xb   : > { %p464_p3 = scmp.lt.s32.totalorder (!%p421_p2), %s1543_s23, 1  ;;  %s1439_s21 = smov (!%p421_p2), 88  }
   0xc   : > { %424 = sbr.rel (%p421_p2) target bundleno = 2314 (0x90a), region = 76  ;;  %s1440_s0 = smov (!%p421_p2), 56  }
   0xd   : > { %s1441_s24 = smov (!%p421_p2), 120   ;;  %s1443_s26 = smov (!%p421_p2), 112  }
   0xe   : > { %s1444_s27 = smov (!%p421_p2), 104   ;;  %s1445_s28 = smov (!%p421_p2), 96  }
   0xf   : > { %s476_s29 = sld [smem:[#allocation3 + %s1543_s23]] (!%p421_p2)  ;;  %s1448_s30 = smov (!%p421_p2), 64  }
  0x10   : > { %s1449_s17 = smov (!%p421_p2), 48   ;;  %s1450_s18 = smov (!%p421_p2), 8  }
  0x11   : > { %v1345_v0 = vld [vmem:[%s1722_s3 + $0x38] sm:$0xff]  ;;  %v1344_v1 = vld [vmem:[%s1722_s3 + $0x30] sm:$0xff]  ;;  %v1343_v2 = vld [vmem:[%s1722_s3 + $0x28] sm:$0xff]  ;;  %s1561_s16 = scalar_select %p464_p3, %s1543_s23, 1  ;;  %vm567_vm0 = vcmask 64512   ;;  %vm626_vm1 = vcmask 1043456   ;;  %v477_v24 = vlaneseq }
  0x12   : > { %551 = vmatpush.bf16.msra.mxu0 %v1345_v0  ;;  %v1342_v3 = vld [vmem:[%s1722_s3 + $0x20] sm:$0xff]  ;;  %v1341_v4 = vld [vmem:[%s1722_s3 + $0x18] sm:$0xff]  ;;  %v1340_v5 = vld [vmem:[%s1722_s3 + $0x10] sm:$0xff]  ;;  %v1446_v28 = vmov -1e+09   ;;  %s1447_s23 = smov 72  }
  0x13   : > { %s1217_s19 = sshll.u32 %s1561_s16, 3  ;;  %v1339_v6 = vld [vmem:[%s1722_s3 + $0x8] sm:$0xff]  ;;  %v474_v8 = vld [vmem:[%s1721_s2] sm:$0xff]  ;;  %v1601_v25 = vand.u32 127, %v477_v24  ;;  %s1451_s20 = smov 40  }
  0x14   : > { %s467_s25 = scalar_lea.vmem %s1720_s1, %s1217_s19  ;;  %v1338_v10 = vld [vmem:[%s1722_s3] sm:$0xff] }
  0x15   : > { %v473_v7 = vld [vmem:[%s467_s25] sm:$0xff]  ;;  %s1442_s25 = smov 80   ;;  %v479_v26 = vstv %s476_s29 }
  0x16   : > { %552 = vmatpush.bf16.msra.mxu0 %v1344_v1  ;;  %v1581_v9 = vadd.f32 %v474_v8, %v473_v7  ;;  %v1388_v12 = vld [vmem:[%s1723_s4] ss:$0 sm:$0xff]  ;;  %vm480_vm2 = vcmp.lt.s32.totalorder %v1601_v25, %v479_v26 }
  0x17   : > { %v481_v29 = vsel %vm480_vm2, 0.0, %v1446_v28 }
  0x18   : > { %v482_v11 = vpack.c.bf16 %v1581_v9, %v1581_v9 }
  0x1a   : > { %553 = vmatpush.bf16.msra.mxu0 %v1343_v2 }
  0x1e   : > { %554 = vmatpush.bf16.msra.mxu0 %v1342_v3 }
  0x22   : > { %555 = vmatpush.bf16.msra.mxu0 %v1341_v4 }
  0x26   : > { %556 = vmatpush.bf16.msra.mxu0 %v1340_v5 }
  0x2a   : > { %557 = vmatpush.bf16.msra.mxu0 %v1339_v6 }
  0x2e   : > { %558 = vmatpush.bf16.msra.mxu0 %v1338_v10 }
  0x31   : > { %559 = vmatmul.bf16.vlgmr.msra.gmra.mxu0 %v482_v11 }
  0xae   : > { %v560_v13 = vpop.f32.mrf.mxu0 }
  0xaf   : > { %v561_v14 = vadd.f32 %v1388_v12, %v560_v13 }
  0xb1   : > { %645 = vrot.lane.b32.xlu0 %v561_v14, %s1439_s21  ;;  %v1591_v15 = vpack.c.bf16 %v561_v14, %v561_v14  ;;  %s1452_s21 = smov 16  }
  0xb3   : > { %698 = vrot.lane.b32.xlu2 %v1591_v15, %s1440_s0  ;;  %s1453_s0 = smov 24  }
  0xb6   : > { %v562_v16 = vpop.f32.mrf.mxu0 }
  0xb9   : > { %643 = vrot.lane.b32.xlu0 %v561_v14, %s1441_s24  ;;  %s471_s24 = scalar_lea.vmem %s1734_s15, %s1217_s19 }
  0xbb   : > { %721 = vrot.lane.b32.xlu2 %v561_v14, %s1442_s25 }
  0xc1   : > { %719 = vrot.lane.b32.xlu0 %v561_v14, %s1443_s26 }
  0xc3   : > { %795 = vrot.lane.b32.xlu2 %v561_v14, %s1444_s27 }
  0xc9   : > { %565 = vrot.lane.b32.xlu0 %v561_v14, %s1445_s28 }
 0x10d   : > { %v699_v17 = vpop.permute.xlu2 %698 }
 0x10e   : > { %v704_v19 = vsel %vm626_vm1, %v699_v17, 0 }
 0x115   : > { %v722_v21 = vpop.permute.xlu2 %721 }
 0x11d   : > { %v796_v56 = vpop.permute.xlu2 %795 }
 0x123   : > { %v646_v18 = vpop.permute.xlu0 %645 }
 0x124   : > { %1254 = vmatpush.xpose.msk.msra.mxu3 %vm567_vm0, %v646_v18 }
 0x128   : > { %713 = vmatpush.bf16.msrb.mxu3 %v704_v19 }
 0x12b   : > { %v644_v20 = vpop.permute.xlu0 %643 }
 0x12c   : > { %1255 = vmatmul.msk.f32.vlgmr.msra.gmra.mxu3 %vm567_vm0, %v644_v20 }
 0x12d   : > { %1257 = vmatpush.xpose.msk.msra.mxu3 %vm567_vm0, %v722_v21 }
 0x133   : > { %v720_v22 = vpop.permute.xlu0 %719 }
 0x13b   : > { %v566_v23 = vpop.permute.xlu0 %565 }
 0x13c   : > { %1251 = vmatpush.xpose.msk.msra.mxu1 %vm567_vm0, %v566_v23 }
 0x13f   : > { %1252 = vmatmul.msk.f32.vlgmr.msra.gmra.mxu1 %vm567_vm0, %v561_v14 }
 0x1af   : > { %v668_v27 = vpop.f32.mrf.mxu3 }
 0x1b0   : > { %v671_v30 = vmul.f32 0.35355338, %v668_v27 }
 0x1b2   : > { %v672_v31 = vadd.f32 %v671_v30, %v481_v29 }
 0x1b4   : > { %v673_v32 = vsel %vm567_vm0, %v672_v31, -inf }
 0x1b5   : > { %674 = vmax.xlane.f32.xlu1 %v673_v32 }
 0x1bc   : > { %v589_v38 = vpop.f32.mrf.mxu1 }
 0x1bd   : > { %v592_v39 = vmul.f32 0.35355338, %v589_v38 }
 0x1bf   : > { %v593_v40 = vadd.f32 %v592_v39, %v481_v29 }
 0x1c1   : > { %v594_v41 = vsel %vm567_vm0, %v593_v40, -inf }
 0x228   : > { %v675_v33 = vpop.xlane.xlu1 %674 }
 0x229   : > { %v676_v34 = vsub.f32 %v672_v31, %v675_v33 }
 0x22b   : > { %v677_v35 = vmul.f32 1.442695, %v676_v34 }
 0x22d   : > { %1396 = vpow2.f32 %v677_v35 }
 0x233   : > { %v1397_v36 = vpop.eup %1396 }
 0x234   : > { %v679_v37 = vsel %vm567_vm0, %v1397_v36, 0.0 }
 0x235   : > { %680 = vadd.xlane.f32.xlu1 %v679_v37 }
 0x24e   : > { %797 = vrot.lane.b32.xlu1 %v561_v14, %s1447_s23 }
 0x278   : > { %595 = vmax.xlane.f32.xlu1 %v594_v41 }
 0x2a8   : > { %v681_v42 = vpop.xlane.xlu1 %680 }
 0x2a9   : > { %1398 = vrcp.f32 %v681_v42  ;;  %v693_v46 = vand.u32 2147483648, %v681_v42  ;;  %v691_v48 = vand.u32 2147483647, %v681_v42  ;;  %vm687_vm4 = vweird.f32 %v681_v42 }
 0x2ab   : > { %v694_v50 = vor.u32 1.1754944e-38, %v693_v46  ;;  %vm692_vm6 = vcmp.eq.f32.partialorder %v691_v48, 8.507059e+37 }
 0x2af   : > { %v1399_v43 = vpop.eup %1398 }
 0x2b0   : > { %v683_v44 = vmul.f32 %v1399_v43, %v681_v42  ;;  %vm688_vm3 = vweird.f32 %v1399_v43 }
 0x2b1   : > { %vm689_vm5 = vmor %vm687_vm4, %vm688_vm3 }
 0x2b2   : > { %v684_v45 = vsub.f32 1.0, %v683_v44 }
 0x2b4   : > { %v685_v47 = vmul.f32 %v1399_v43, %v684_v45 }
 0x2b6   : > { %v686_v49 = vadd.f32 %v1399_v43, %v685_v47 }
 0x2b8   : > { %v690_v51 = vsel %vm689_vm5, %v1399_v43, %v686_v49  ;;  %vm886_vm5 = vcmask 195584  }
 0x2b9   : > { %v695_v52 = vsel %vm692_vm6, %v694_v50, %v690_v51  ;;  %vm909_vm6 = vcmask 261120  }
 0x2ba   : > { %v696_v53 = vmul.f32 %v1397_v36, %v695_v52 }
 0x2bc   : > { %v697_v54 = vpack.c.bf16 %v696_v53, %v696_v53 }
 0x2be   : > { %1256 = vmatmul.msk.bf16.vlgmr.msrb.gmra.mxu3 %vm567_vm0, %v697_v54 }
 0x2c0   : > { %v798_v55 = vpop.permute.xlu1 %797 }
 0x2c1   : > { %1260 = vmatpush.xpose.msk.msrb.mxu3 %vm567_vm0, %v798_v55 }
 0x2ce   : > { %1258 = vmatmul.msk.f32.vlgmr.msra.gmra.mxu3 %vm567_vm0, %v720_v22 }
 0x2d6   : > { %1261 = vmatmul.msk.f32.vlgmr.msrb.gmra.mxu3 %vm567_vm0, %v796_v56 }
 0x2eb   : > { %v596_v57 = vpop.xlane.xlu1 %595 }
 0x2ec   : > { %v597_v58 = vsub.f32 %v593_v40, %v596_v57 }
 0x2ee   : > { %v598_v59 = vmul.f32 1.442695, %v597_v58 }
 0x2f0   : > { %1400 = vpow2.f32 %v598_v59 }
 0x2f6   : > { %v1401_v60 = vpop.eup %1400 }
 0x2f7   : > { %v600_v61 = vsel %vm567_vm0, %v1401_v60, 0.0 }
 0x2f8   : > { %601 = vadd.xlane.f32.xlu1 %v600_v61 }
 0x311   : > { %621 = vrot.lane.b32.xlu1 %v1591_v15, %s1448_s30 }
 0x341   : > { %v715_v62 = vpop.f32.mrf.mxu3 }
 0x349   : > { %v717_v63 = vpop.f32.mrf.mxu3 }
 0x351   : > { %v744_v0 = vpop.f32.mrf.mxu3 }
 0x352   : > { %v747_v1 = vmul.f32 0.35355338, %v744_v0 }
 0x354   : > { %v748_v2 = vadd.f32 %v747_v1, %v481_v29 }
 0x356   : > { %v749_v3 = vsel %vm567_vm0, %v748_v2, -inf }
 0x357   : > { %750 = vmax.xlane.f32.xlu2 %v749_v3 }
 0x359   : > { %v820_v4 = vpop.f32.mrf.mxu3 }
 0x35a   : > { %v823_v5 = vmul.f32 0.35355338, %v820_v4 }
 0x35c   : > { %v824_v6 = vadd.f32 %v823_v5, %v481_v29 }
 0x35e   : > { %v825_v7 = vsel %vm567_vm0, %v824_v6, -inf }
 0x35f   : > { %826 = vmax.xlane.f32.xlu0 %v825_v7  ;;  %v1347_v7 = vld [vmem:[%s1724_s5 + $0x8] sm:$0xff] }
 0x360   : > { %919 = vmatpush.bf16.msra.mxu3 %v1347_v7 }
 0x36b   : > { %v602_v8 = vpop.xlane.xlu1 %601 }
 0x36c   : > { %1402 = vrcp.f32 %v602_v8  ;;  %v614_v16 = vand.u32 2147483648, %v602_v8  ;;  %vm608_vm8 = vweird.f32 %v602_v8  ;;  %v612_v17 = vand.u32 2147483647, %v602_v8 }
 0x36e   : > { %v615_v19 = vor.u32 1.1754944e-38, %v614_v16  ;;  %vm613_vm10 = vcmp.eq.f32.partialorder %v612_v17, 8.507059e+37 }
 0x372   : > { %v1403_v10 = vpop.eup %1402 }
 0x373   : > { %v604_v11 = vmul.f32 %v1403_v10, %v602_v8  ;;  %774 = vrot.lane.b32.xlu0 %v1591_v15, %s1449_s17  ;;  %vm609_vm7 = vweird.f32 %v1403_v10  ;;  %v1346_v8 = vld [vmem:[%s1724_s5] sm:$0xff] }
 0x374   : > { %vm610_vm9 = vmor %vm608_vm8, %vm609_vm7  ;;  %920 = vmatpush.bf16.msra.mxu3 %v1346_v8  ;;  %vm929_vm7 = vcmp.lt.s32.totalorder %v1601_v25, 32  ;;  %v1394_v25 = vld [vmem:[%s1732_s13] ss:$0 sm:$0xff] }
 0x375   : > { %v605_v12 = vsub.f32 1.0, %v604_v11 }
 0x377   : > { %v606_v13 = vmul.f32 %v1403_v10, %v605_v12 }
 0x379   : > { %v607_v14 = vadd.f32 %v1403_v10, %v606_v13 }
 0x37b   : > { %872 = vrot.lane.b32.xlu0 %v715_v62, %s1450_s18  ;;  %v611_v18 = vsel %vm610_vm9, %v1403_v10, %v607_v14 }
 0x37c   : > { %v616_v20 = vsel %vm613_vm10, %v615_v19, %v611_v18  ;;  %v1389_v18 = vld [vmem:[%s1725_s6] ss:$0 sm:$0xff] }
 0x37d   : > { %v617_v21 = vmul.f32 %v1401_v60, %v616_v20 }
 0x37f   : > { %v618_v24 = vpack.c.bf16 %v617_v21, %v617_v21 }
 0x383   : > { %v622_v22 = vpop.permute.xlu1 %621 }
 0x384   : > { %v628_v23 = vsel %vm626_vm1, %v622_v22, 0 }
 0x385   : > { %637 = vmatpush.bf16.msrb.mxu0 %v628_v23 }
 0x388   : > { %1253 = vmatmul.msk.bf16.vlgmr.msrb.gmra.mxu0 %vm567_vm0, %v618_v24  ;;  %v1355_v24 = vld [vmem:[%s1728_s9 + $0x38] sm:$0xff] }
 0x3ca   : > { %v751_v26 = vpop.xlane.xlu2 %750 }
 0x3cb   : > { %v752_v27 = vsub.f32 %v748_v2, %v751_v26 }
 0x3cd   : > { %v753_v28 = vmul.f32 1.442695, %v752_v27 }
 0x3cf   : > { %1404 = vpow2.f32 %v753_v28 }
 0x3d2   : > { %v827_v29 = vpop.xlane.xlu0 %826 }
 0x3d3   : > { %v828_v30 = vsub.f32 %v824_v6, %v827_v29 }
 0x3d5   : > { %v1405_v31 = vpop.eup %1404  ;;  %v829_v32 = vmul.f32 1.442695, %v828_v30 }
 0x3d6   : > { %v755_v33 = vsel %vm567_vm0, %v1405_v31, 0.0 }
 0x3d7   : > { %1406 = vpow2.f32 %v829_v32  ;;  %756 = vadd.xlane.f32.xlu2 %v755_v33  ;;  %v1352_v32 = vld [vmem:[%s1728_s9 + $0x20] sm:$0xff]  ;;  %v1351_v33 = vld [vmem:[%s1728_s9 + $0x18] sm:$0xff] }
 0x3dd   : > { %v1407_v34 = vpop.eup %1406 }
 0x3de   : > { %v831_v35 = vsel %vm567_vm0, %v1407_v34, 0.0 }
 0x3df   : > { %832 = vadd.xlane.f32.xlu2 %v831_v35  ;;  %v1349_v35 = vld [vmem:[%s1728_s9 + $0x8] sm:$0xff] }
 0x3e5   : > { %v775_v36 = vpop.permute.xlu0 %774 }
 0x3e6   : > { %v780_v37 = vsel %vm626_vm1, %v775_v36, 0  ;;  %v1348_v36 = vld [vmem:[%s1728_s9] sm:$0xff] }
 0x3e7   : > { %789 = vmatpush.bf16.msra.mxu2 %v780_v37  ;;  %v1363_v37 = vld [vmem:[%s1730_s11 + $0x38] sm:$0xff] }
 0x3eb   : > { %1029 = vmatpush.bf16.msrb.mxu2 %v1355_v24 }
 0x3ed   : > { %v873_v10 = vpop.permute.xlu0 %872 }
 0x3f7   : > { %850 = vrot.lane.b32.xlu2 %v1591_v15, %s1451_s20 }
 0x405   : > { %v639_v38 = vpop.f32.mrf.mxu0 }
 0x406   : > { %v883_v11 = vsel %vm567_vm0, %v639_v38, %v873_v10 }
 0x40d   : > { %v641_v39 = vpop.f32.mrf.mxu0 }
 0x44a   : > { %v757_v40 = vpop.xlane.xlu2 %756 }
 0x44b   : > { %1408 = vrcp.f32 %v757_v40  ;;  %v769_v45 = vand.u32 2147483648, %v757_v40  ;;  %v767_v47 = vand.u32 2147483647, %v757_v40  ;;  %vm763_vm12 = vweird.f32 %v757_v40 }
 0x44d   : > { %v770_v50 = vor.u32 1.1754944e-38, %v769_v45  ;;  %vm768_vm14 = vcmp.eq.f32.partialorder %v767_v47, 8.507059e+37 }
 0x451   : > { %v1409_v41 = vpop.eup %1408 }
 0x452   : > { %v759_v42 = vmul.f32 %v1409_v41, %v757_v40  ;;  %v833_v43 = vpop.xlane.xlu2 %832  ;;  %vm764_vm11 = vweird.f32 %v1409_v41  ;;  %v1362_v40 = vld [vmem:[%s1730_s11 + $0x30] sm:$0xff] }
 0x453   : > { %1410 = vrcp.f32 %v833_v43  ;;  %vm765_vm13 = vmor %vm763_vm12, %vm764_vm11  ;;  %v845_v57 = vand.u32 2147483648, %v833_v43  ;;  %v843_v59 = vand.u32 2147483647, %v833_v43  ;;  %vm839_vm2 = vweird.f32 %v833_v43 }
 0x454   : > { %v760_v44 = vsub.f32 1.0, %v759_v42  ;;  %v1361_v42 = vld [vmem:[%s1730_s11 + $0x28] sm:$0xff] }
 0x455   : > { %v846_v62 = vor.u32 1.1754944e-38, %v845_v57  ;;  %vm844_vm4 = vcmp.eq.f32.partialorder %v843_v59, 8.507059e+37  ;;  %v1356_v59 = vld [vmem:[%s1730_s11] sm:$0xff] }
 0x456   : > { %v761_v46 = vmul.f32 %v1409_v41, %v760_v44 }
 0x458   : > { %v762_v48 = vadd.f32 %v1409_v41, %v761_v46  ;;  %v1359_v46 = vld [vmem:[%s1730_s11 + $0x18] sm:$0xff] }
 0x459   : > { %v1411_v49 = vpop.eup %1410 }
 0x45a   : > { %v835_v51 = vmul.f32 %v1411_v49, %v833_v43  ;;  %v851_v15 = vpop.permute.xlu2 %850  ;;  %v766_v52 = vsel %vm765_vm13, %v1409_v41, %v762_v48  ;;  %vm840_vm15 = vweird.f32 %v1411_v49  ;;  %v1360_v43 = vld [vmem:[%s1730_s11 + $0x20] sm:$0xff] }
 0x45b   : > { %v856_v53 = vsel %vm626_vm1, %v851_v15, 0  ;;  %v771_v54 = vsel %vm768_vm14, %v770_v50, %v766_v52  ;;  %vm841_vm3 = vmor %vm839_vm2, %vm840_vm15  ;;  %vm884_vm1 = vcmask 130048   ;;  %v1390_v15 = vld [vmem:[%s1726_s7] ss:$0 sm:$0xff] }
 0x45c   : > { %v836_v55 = vsub.f32 1.0, %v835_v51  ;;  %865 = vmatpush.bf16.msrb.mxu1 %v856_v53  ;;  %v772_v56 = vmul.f32 %v1405_v31, %v771_v54  ;;  %v1353_v31 = vld [vmem:[%s1728_s9 + $0x28] sm:$0xff]  ;;  %v1391_v54 = vld [vmem:[%s1727_s8] ss:$0 sm:$0xff] }
 0x45e   : > { %v837_v58 = vmul.f32 %v1411_v49, %v836_v55  ;;  %v773_v60 = vpack.c.bf16 %v772_v56, %v772_v56 }
 0x460   : > { %v838_v61 = vadd.f32 %v1411_v49, %v837_v58  ;;  %1259 = vmatmul.msk.bf16.vlgmr.msra.gmra.mxu2 %vm567_vm0, %v773_v60  ;;  %1112 = vmatpush.bf16.msra.mxu1 %v1363_v37  ;;  %v1357_v58 = vld [vmem:[%s1730_s11 + $0x8] sm:$0xff]  ;;  %v1392_v60 = vld [vmem:[%s1729_s10] ss:$0 sm:$0xff] }
 0x462   : > { %v842_v63 = vsel %vm841_vm3, %v1411_v49, %v838_v61  ;;  %v1358_v49 = vld [vmem:[%s1730_s11 + $0x10] sm:$0xff] }
 0x463   : > { %v847_v0 = vsel %vm844_vm4, %v846_v62, %v842_v63 }
 0x464   : > { %v848_v1 = vmul.f32 %v1407_v34, %v847_v0  ;;  %v1350_v34 = vld [vmem:[%s1728_s9 + $0x10] sm:$0xff]  ;;  %1113 = vmatpush.bf16.msra.mxu1 %v1362_v40 }
 0x466   : > { %v849_v2 = vpack.c.bf16 %v848_v1, %v848_v1 }
 0x468   : > { %1262 = vmatmul.msk.bf16.vlgmr.msrb.gmra.mxu1 %vm567_vm0, %v849_v2  ;;  %v1393_v2 = vld [vmem:[%s1731_s12] ss:$0 sm:$0xff] }
 0x469   : > { %1114 = vmatpush.bf16.msra.mxu1 %v1361_v42 }
 0x46d   : > { %1115 = vmatpush.bf16.msra.mxu1 %v1360_v43 }
 0x471   : > { %1116 = vmatpush.bf16.msra.mxu1 %v1359_v46 }
 0x475   : > { %1117 = vmatpush.bf16.msra.mxu1 %v1358_v49 }
 0x479   : > { %1118 = vmatpush.bf16.msra.mxu1 %v1357_v58 }
 0x47d   : > { %1119 = vmatpush.bf16.msra.mxu1 %v1356_v59 }
 0x4e3   : > { %v791_v3 = vpop.f32.mrf.mxu2 }
 0x4e4   : > { %876 = vrot.lane.b32.xlu0 %v791_v3, %s1452_s21 }
 0x4e5   : > { %v867_v4 = vpop.f32.mrf.mxu1 }
 0x4e6   : > { %880 = vrot.lane.b32.xlu2 %v867_v4, %s1453_s0 }
 0x4eb   : > { %v793_v5 = vpop.f32.mrf.mxu2 }
 0x4ed   : > { %v869_v6 = vpop.f32.mrf.mxu1 }
 0x540   : > { %v881_v13 = vpop.permute.xlu2 %880 }
 0x556   : > { %v877_v12 = vpop.permute.xlu0 %876 }
 0x557   : > { %v885_v14 = vsel %vm884_vm1, %v883_v11, %v877_v12 }
 0x558   : > { %v887_v16 = vsel %vm886_vm5, %v885_v14, %v881_v13 }
 0x559   : > { %v892_v17 = vpack.c.bf16 %v887_v16, %v887_v16 }
 0x55b   : > { %1271 = vmatmul.msk.bf16.vlgmr.msra.gmra.mxu3 %vm909_vm6, %v892_v17 }
 0x5de   : > { %v922_v19 = vpop.f32.mrf.mxu3 }
 0x5df   : > { %v923_v20 = vadd.f32 %v1389_v18, %v922_v19 }
 0x5e1   : > { %v926_v21 = vadd.f32 %v923_v20, %v1581_v9  ;;  %v1354_v9 = vld [vmem:[%s1728_s9 + $0x30] sm:$0xff] }
 0x5e2   : > { %1030 = vmatpush.bf16.msrb.mxu2 %v1354_v9 }
 0x5e3   : > { %v930_v22 = vsel %vm929_vm7, %v926_v21, 0.0 }
 0x5e4   : > { %931 = vadd.xlane.f32.xlu0 %v930_v22 }
 0x5e6   : > { %v924_v23 = vpop.f32.mrf.mxu3  ;;  %1031 = vmatpush.bf16.msrb.mxu2 %v1353_v31 }
 0x5ea   : > { %1032 = vmatpush.bf16.msrb.mxu2 %v1352_v32 }
 0x5ee   : > { %1033 = vmatpush.bf16.msrb.mxu2 %v1351_v33 }
 0x5f2   : > { %1034 = vmatpush.bf16.msrb.mxu2 %v1350_v34 }
 0x5f6   : > { %1035 = vmatpush.bf16.msrb.mxu2 %v1349_v35 }
 0x5fa   : > { %1036 = vmatpush.bf16.msrb.mxu2 %v1348_v36 }
 0x657   : > { %v932_v26 = vpop.xlane.xlu0 %931 }
 0x658   : > { %v933_v27 = vmul.f32 0.03125, %v932_v26  ;;  %v1395_v26 = vld [vmem:[%s1733_s14] ss:$0 sm:$0xff] }
 0x65a   : > { %v934_v28 = vsub.f32 %v926_v21, %v933_v27 }
 0x65c   : > { %v935_v29 = vsel %vm929_vm7, %v934_v28, 0.0 }
 0x65d   : > { %v936_v30 = vmul.f32 %v935_v29, %v935_v29 }
 0x65f   : > { %937 = vadd.xlane.f32.xlu2 %v936_v30 }
 0x6d2   : > { %v938_v38 = vpop.xlane.xlu2 %937 }
 0x6d3   : > { %v939_v39 = vmul.f32 0.03125, %v938_v38 }
 0x6d5   : > { %v940_v41 = vadd.f32 1e-05, %v939_v39 }
 0x6d7   : > { %1412 = vrsqrt.f32 %v940_v41  ;;  %vm947_vm8 = vweird.f32 %v940_v41 }
 0x6dd   : > { %v1413_v44 = vpop.eup %1412 }
 0x6de   : > { %v942_v45 = vmul.f32 %v1413_v44, %v940_v41  ;;  %vm948_vm0 = vweird.f32 %v1413_v44 }
 0x6df   : > { %vm949_vm9 = vmor %vm947_vm8, %vm948_vm0 }
 0x6e0   : > { %v943_v47 = vmul.f32 %v1413_v44, %v942_v45 }
 0x6e2   : > { %v944_v48 = vmul.f32 0.5, %v943_v47 }
 0x6e4   : > { %v945_v50 = vsub.f32 1.5, %v944_v48 }
 0x6e6   : > { %v946_v51 = vmul.f32 %v1413_v44, %v945_v50 }
 0x6e8   : > { %v950_v52 = vsel %vm949_vm9, %v1413_v44, %v946_v51 }
 0x6e9   : > { %v951_v53 = vmul.f32 %v950_v52, %v935_v29 }
 0x6eb   : > { %v955_v55 = vmul.f32 %v1390_v15, %v951_v53 }
 0x6ed   : > { %v959_v56 = vadd.f32 %v1391_v54, %v955_v55 }
 0x6ef   : > { %v960_v57 = vpack.c.bf16 %v959_v56, %v959_v56 }
 0x6f1   : > { %1037 = vmatmul.bf16.vlgmr.msrb.gmra.mxu2 %v960_v57 }
 0x774   : > { %v1038_v61 = vpop.f32.mrf.mxu2 }
 0x775   : > { %v1039_v62 = vadd.f32 %v1392_v60, %v1038_v61 }
 0x777   : > { %v1042_v63 = vmax.f32 %v1039_v62, 0.0 }
 0x779   : > { %v1043_v0 = vpack.c.bf16 %v1042_v63, %v1042_v63 }
 0x77b   : > { %1120 = vmatmul.bf16.vlgmr.msra.gmra.mxu1 %v1043_v0 }
 0x77c   : > { %v1040_v1 = vpop.f32.mrf.mxu2 }
 0x7f8   : > { %v1121_v3 = vpop.f32.mrf.mxu1 }
 0x7f9   : > { %v1122_v4 = vadd.f32 %v1393_v2, %v1121_v3 }
 0x7fb   : > { %v1125_v5 = vadd.f32 %v1122_v4, %v959_v56 }
 0x7fd   : > { %v1128_v6 = vsel %vm929_vm7, %v1125_v5, 0.0 }
 0x7fe   : > { %1129 = vadd.xlane.f32.xlu1 %v1128_v6 }
 0x800   : > { %v1123_v7 = vpop.f32.mrf.mxu1 }
 0x871   : > { %v1130_v8 = vpop.xlane.xlu1 %1129 }
 0x872   : > { %v1131_v10 = vmul.f32 0.03125, %v1130_v8 }
 0x874   : > { %v1132_v11 = vsub.f32 %v1125_v5, %v1131_v10 }
 0x876   : > { %v1133_v12 = vsel %vm929_vm7, %v1132_v11, 0.0 }
 0x877   : > { %v1134_v13 = vmul.f32 %v1133_v12, %v1133_v12 }
 0x879   : > { %1135 = vadd.xlane.f32.xlu0 %v1134_v13 }
 0x8ec   : > { %v1136_v14 = vpop.xlane.xlu0 %1135 }
 0x8ed   : > { %v1137_v16 = vmul.f32 0.03125, %v1136_v14 }
 0x8ef   : > { %v1138_v17 = vadd.f32 1e-05, %v1137_v16 }
 0x8f1   : > { %1414 = vrsqrt.f32 %v1138_v17  ;;  %vm1145_vm11 = vweird.f32 %v1138_v17 }
 0x8f7   : > { %v1415_v18 = vpop.eup %1414 }
 0x8f8   : > { %v1140_v19 = vmul.f32 %v1415_v18, %v1138_v17  ;;  %vm1146_vm10 = vweird.f32 %v1415_v18 }
 0x8f9   : > { %vm1147_vm12 = vmor %vm1145_vm11, %vm1146_vm10 }
 0x8fa   : > { %v1141_v20 = vmul.f32 %v1415_v18, %v1140_v19 }
 0x8fc   : > { %v1142_v21 = vmul.f32 0.5, %v1141_v20 }
 0x8fe   : > { %v1143_v22 = vsub.f32 1.5, %v1142_v21 }
 0x900   : > { %v1144_v23 = vmul.f32 %v1415_v18, %v1143_v22 }
 0x902   : > { %v1148_v24 = vsel %vm1147_vm12, %v1415_v18, %v1144_v23 }
 0x903   : > { %v1149_v27 = vmul.f32 %v1148_v24, %v1133_v12 }
 0x905   : > { %v1153_v28 = vmul.f32 %v1394_v25, %v1149_v27 }
 0x907   : > { %v1157_v29 = vadd.f32 %v1395_v26, %v1153_v28 }
 0x909   : > { %1158 = vst [vmem:[%s471_s24] sm:$0xff] %v1157_v29 }
 0x90a PF: > { %s33_s22 = sadd.s32 1, %s1436_s22  }
 0x90b   : > { %p30_p4 = scmp.ge.s32.totalorder %s33_s22, 4  }
 0x90d   :  { %32 = sbr.rel (!%p30_p4) target bundleno = 7 (0x7), region = 106 }

// kernel: _lambda_.13
= control target key start
LH: loop header
LB: loop body
LE: loop exit
PB: predicated region body
PF: predicated region fallthrough
CT: control target
= control target key end

     0   :  { %s205_s1 = inlined_call_operand.vmem [shape: bf16[128,128], index: 1, kind: input, shape index: {}]   ;;  %s206_s2 = inlined_call_operand.vmem [shape: f32[1,128], index: 2, kind: input, shape index: {}]   ;;  %s207_s0 = inlined_call_operand.vmem [shape: f32[16,128], index: 0, kind: input, shape index: {}]   ;;  %s208_s3 = inlined_call_operand.vmem [shape: f32[16,128], index: 3, kind: output, shape index: {}]  }
   0x1   :  { %v144_v0 = vld [vmem:[%s205_s1 + $0x38] sm:$0xff]  ;;  %v143_v1 = vld [vmem:[%s205_s1 + $0x30] sm:$0xff]  ;;  %v142_v2 = vld [vmem:[%s205_s1 + $0x28] sm:$0xff] }
   0x2   :  { %85 = vmatpush.bf16.msra.mxu0 %v144_v0  ;;  %v141_v3 = vld [vmem:[%s205_s1 + $0x20] sm:$0xff]  ;;  %v140_v4 = vld [vmem:[%s205_s1 + $0x18] sm:$0xff]  ;;  %v139_v5 = vld [vmem:[%s205_s1 + $0x10] sm:$0xff] }
   0x3   :  { %v138_v6 = vld [vmem:[%s205_s1 + $0x8] sm:$0xff]  ;;  %v137_v7 = vld [vmem:[%s205_s1] sm:$0xff] }
   0x4   :  { %v14_v8 = vld [vmem:[%s207_s0] sm:$0xff]  ;;  %v15_v9 = vld [vmem:[%s207_s0 + $0x8] sm:$0xff] }
   0x5   :  { %v16_v10 = vpack.c.bf16 %v15_v9, %v14_v8  ;;  %v145_v11 = vld [vmem:[%s206_s2] ss:$0 sm:$0xff] }
   0x6   :  { %86 = vmatpush.bf16.msra.mxu0 %v143_v1 }
   0xa   :  { %87 = vmatpush.bf16.msra.mxu0 %v142_v2 }
   0xe   :  { %88 = vmatpush.bf16.msra.mxu0 %v141_v3 }
  0x12   :  { %89 = vmatpush.bf16.msra.mxu0 %v140_v4 }
  0x16   :  { %90 = vmatpush.bf16.msra.mxu0 %v139_v5 }
  0x1a   :  { %91 = vmatpush.bf16.msra.mxu0 %v138_v6 }
  0x1e   :  { %92 = vmatpush.bf16.msra.mxu0 %v137_v7 }
  0x21   :  { %93 = vmatmul.bf16.vlgmr.msra.gmra.mxu0 %v16_v10 }
  0x9e   :  { %v94_v12 = vpop.f32.mrf.mxu0 }
  0x9f   :  { %v95_v13 = vadd.f32 %v145_v11, %v94_v12 }
  0xa1   :  { %99 = vst [vmem:[%s208_s3] sm:$0xff] %v95_v13 }
  0xa6   :  { %v96_v14 = vpop.f32.mrf.mxu0 }
  0xa7   :  { %v97_v15 = vadd.f32 %v145_v11, %v96_v14 }
  0xa9   :  { %100 = vst [vmem:[%s208_s3 + $0x8] sm:$0xff] %v97_v15 }

// kernel: _lambda_.11
= control target key start
LH: loop header
LB: loop body
LE: loop exit
PB: predicated region body
PF: predicated region fallthrough
CT: control target
= control target key end

     0   :  { %s683_s12 = smov 0   ;;  %s782_s0 = inlined_call_operand.vmem [shape: f32[2,8,128], index: 0, kind: input, shape index: {}]   ;;  %s783_s1 = inlined_call_operand.vmem [shape: bf16[3,128,128], index: 1, kind: input, shape index: {}]   ;;  %s784_s2 = inlined_call_operand.vmem [shape: f32[1,128], index: 2, kind: input, shape index: {}]   ;;  %s785_s3 = inlined_call_operand.vmem [shape: f32[2,8,128], index: 3, kind: output, shape index: {}]  }
   0x1 LB: > { %s473_s13 = sadd.s32 4294967295, %s661_s12   ;;  %p477_p0 = scmp.ge.s32.totalorder %s661_s12, 1  ;;  %s661_s12 = sphi %s683_s12, %s13_s12  }
   0x2   : > { %p136_p1 = scmp.lt.s32.totalorder %s661_s12, 3 }
   0x4   : > { %p137_p2 = pnand %p477_p0, %p136_p1 }
   0x5   : > { %p158_p3 = scmp.lt.s32.totalorder (!%p137_p2), %s473_s13, 1 }
   0x6   : > { %140 = sbr.rel (%p137_p2) target bundleno = 186 (0xba), region = 32 }
   0xb   : > { %v635_v0 = vld [vmem:[%s783_s1 + $0x78] sm:$0xff]  ;;  %v634_v3 = vld [vmem:[%s783_s1 + $0x70] sm:$0xff]  ;;  %v633_v6 = vld [vmem:[%s783_s1 + $0x68] sm:$0xff]  ;;  %s787_s13 = smov (!%p158_p3, %s473_s13), 1  ;;  %v167_v18 = vlaneseq }
   0xc   : > { %v627_v1 = vld [vmem:[%s783_s1 + $0x38] sm:$0xff]  ;;  %258 = vmatpush.bf16.msra.mxu0 %v635_v0  ;;  %v626_v4 = vld [vmem:[%s783_s1 + $0x30] sm:$0xff]  ;;  %v625_v7 = vld [vmem:[%s783_s1 + $0x28] sm:$0xff]  ;;  %s478_s19 = sshll.u32 %s787_s13, 3 }
   0xd   : > { %v643_v2 = vld [vmem:[%s783_s1 + $0xb8] sm:$0xff]  ;;  %319 = vmatpush.bf16.msra.mxu1 %v627_v1  ;;  %v642_v5 = vld [vmem:[%s783_s1 + $0xb0] sm:$0xff]  ;;  %v641_v8 = vld [vmem:[%s783_s1 + $0xa8] sm:$0xff]  ;;  %s161_s28 = scalar_lea.vmem %s782_s0, %s478_s19  ;;  %v168_v23 = vshrl.u32 %v167_v18, 7  ;;  %s165_s21 = scalar_lea.vmem %s785_s3, %s478_s19 }
   0xe   : > { %398 = vmatpush.bf16.msra.mxu2 %v643_v2  ;;  %v632_v9 = vld [vmem:[%s783_s1 + $0x60] sm:$0xff]  ;;  %v631_v12 = vld [vmem:[%s783_s1 + $0x58] sm:$0xff]  ;;  %v630_v15 = vld [vmem:[%s783_s1 + $0x50] sm:$0xff] }
   0xf   : > { %v624_v10 = vld [vmem:[%s783_s1 + $0x20] sm:$0xff]  ;;  %v623_v13 = vld [vmem:[%s783_s1 + $0x18] sm:$0xff]  ;;  %v622_v16 = vld [vmem:[%s783_s1 + $0x10] sm:$0xff]  ;;  %vm644_vm0 = vcmp.ne.s32.totalorder %v168_v23, 0  ;;  %vm645_vm1 = vcmp.ne.s32.totalorder %v168_v23, 7 }
  0x10   : > { %259 = vmatpush.bf16.msra.mxu0 %v634_v3  ;;  %v640_v11 = vld [vmem:[%s783_s1 + $0xa0] sm:$0xff]  ;;  %v639_v14 = vld [vmem:[%s783_s1 + $0x98] sm:$0xff]  ;;  %v638_v17 = vld [vmem:[%s783_s1 + $0x90] sm:$0xff] }
  0x11   : > { %320 = vmatpush.bf16.msra.mxu1 %v626_v4  ;;  %v629_v19 = vld [vmem:[%s783_s1 + $0x48] sm:$0xff]  ;;  %v166_v21 = vld [vmem:[%s161_s28] sm:$0xff]  ;;  %vm562_vm2 = vmpackc.low %vm644_vm0, %vm644_vm0 }
  0x12   : > { %399 = vmatpush.bf16.msra.mxu2 %v642_v5  ;;  %v621_v20 = vld [vmem:[%s783_s1 + $0x8] sm:$0xff]  ;;  %v170_v24 = vrot.slane %v166_v21, 7  ;;  %v628_v25 = vld [vmem:[%s783_s1 + $0x40] sm:$0xff]  ;;  %v173_v27 = vrot.slane %v166_v21, 1  ;;  %v192_v29 = vpack.c.bf16 %v166_v21, %v166_v21  ;;  %vm615_vm3 = vmpackc.low %vm645_vm1, %vm645_vm1 }
  0x13   : > { %v637_v22 = vld [vmem:[%s783_s1 + $0x88] sm:$0xff]  ;;  %v620_v26 = vld [vmem:[%s783_s1] sm:$0xff] }
  0x14   : > { %260 = vmatpush.bf16.msra.mxu0 %v633_v6  ;;  %v636_v28 = vld [vmem:[%s783_s1 + $0x80] sm:$0xff]  ;;  %v563_v30 = vpack.c.bf16 %v170_v24, %v170_v24  ;;  %v616_v31 = vpack.c.bf16 %v173_v27, %v173_v27 }
  0x15   : > { %321 = vmatpush.bf16.msra.mxu1 %v625_v7  ;;  %v654_v35 = vld [vmem:[%s784_s2] ss:$0 sm:$0xff] }
  0x16   : > { %400 = vmatpush.bf16.msra.mxu2 %v641_v8 }
  0x18   : > { %261 = vmatpush.bf16.msra.mxu0 %v632_v9 }
  0x19   : > { %322 = vmatpush.bf16.msra.mxu1 %v624_v10 }
  0x1a   : > { %401 = vmatpush.bf16.msra.mxu2 %v640_v11 }
  0x1c   : > { %262 = vmatpush.bf16.msra.mxu0 %v631_v12 }
  0x1d   : > { %323 = vmatpush.bf16.msra.mxu1 %v623_v13 }
  0x1e   : > { %402 = vmatpush.bf16.msra.mxu2 %v639_v14 }
  0x20   : > { %263 = vmatpush.bf16.msra.mxu0 %v630_v15 }
  0x21   : > { %324 = vmatpush.bf16.msra.mxu1 %v622_v16 }
  0x22   : > { %403 = vmatpush.bf16.msra.mxu2 %v638_v17 }
  0x24   : > { %264 = vmatpush.bf16.msra.mxu0 %v629_v19 }
  0x25   : > { %325 = vmatpush.bf16.msra.mxu1 %v621_v20 }
  0x26   : > { %404 = vmatpush.bf16.msra.mxu2 %v637_v22 }
  0x28   : > { %265 = vmatpush.bf16.msra.mxu0 %v628_v25 }
  0x29   : > { %326 = vmatpush.bf16.msra.mxu1 %v620_v26 }
  0x2a   : > { %405 = vmatpush.bf16.msra.mxu2 %v636_v28 }
  0x2b   : > { %266 = vmatmul.bf16.vlgmr.msra.gmra.mxu0 %v192_v29 }
  0x2c   : > { %564 = vmatmul.msk.bf16.vlgmr.msra.gmra.mxu1 %vm562_vm2, %v563_v30 }
  0x2d   : > { %617 = vmatmul.msk.bf16.vlgmr.msra.gmra.mxu2 %vm615_vm3, %v616_v31 }
  0xa8   : > { %v267_v32 = vpop.f32.mrf.mxu0 }
  0xa9   : > { %v328_v33 = vpop.f32.mrf.mxu1 }
  0xaa   : > { %v329_v34 = vadd.f32 %v328_v33, %v267_v32 }
  0xb0   : > { %v407_v36 = vpop.f32.mrf.mxu2  ;;  %v269_v38 = vpop.f32.mrf.mxu0 }
  0xb1   : > { %v411_v37 = vadd.f32 %v407_v36, %v329_v34  ;;  %v330_v39 = vpop.f32.mrf.mxu1 }
  0xb3   : > { %v416_v40 = vadd.f32 %v654_v35, %v411_v37 }
  0xb5   : > { %v417_v41 = vmax.f32 %v416_v40, 0.0 }
  0xb7   : > { %v418_v42 = vadd.f32 %v417_v41, %v166_v21 }
  0xb8   : > { %v409_v43 = vpop.f32.mrf.mxu2 }
  0xb9   : > { %419 = vst [vmem:[%s165_s21] sm:$0xff] %v418_v42 }
  0xba PF: > { %s13_s12 = sadd.s32 1, %s661_s12  }
  0xbb   : > { %p10_p4 = scmp.ge.s32.totalorder %s13_s12, 4  }
  0xbd   :  { %12 = sbr.rel (!%p10_p4) target bundleno = 1 (0x1), region = 64 }

</bundles_post_ra>
